<compile_context>
chip_gen: v7x
topology: tpu7x:2x2x1
jax: 0.10.0
libtpu: 0.0.40
codegen_flags: <defaults>
</compile_context>

<pallas_src>
import functools

import jax
import jax.numpy as jnp
from jax.experimental import pallas as pl
from jax.experimental.pallas import tpu as pltpu


# ----------------------------------------------------------------------------
# helpers
# ----------------------------------------------------------------------------
def _compiler_params(vmem_bytes):
    """Explicit scoped-VMEM budget: double-buffered blocks + scratch + slack,
    clamped so the request is legal on every generation (v7x: 64 MiB phys)."""
    limit = int(min(max(vmem_bytes + (4 << 20), 8 << 20), 48 << 20))
    return pltpu.CompilerParams(dimension_semantics=("parallel",),
                                vmem_limit_bytes=limit)


# ----------------------------------------------------------------------------
# Kernel 1: polyphase ConvTranspose2d(Cin, Cin//2, k=4, s=2, p=1)
# ----------------------------------------------------------------------------
def _upconv_poly_kernel(x1_ref, wup_ref, bup_ref, out_ref, x1p_ref,
                        *, H, W, cin, ch):
    # x1_ref : (1, H, W, Cin)      bf16
    # wup_ref: (4, 4, Cin, ch)     bf16  spatially-flipped transposed-conv weight (HWIO)
    # bup_ref: (1, ch)             f32
    # out_ref: (1, 4*H, W, ch)     bf16  row block p*H.. holds phase p = 2*py + px,
    #                                    i.e. up[2m+py, 2n+px] = out[p*H + m, n]
    # x1p_ref: (H+2, W+2, Cin)     f32   VMEM scratch: zero-padded x1 (halo = 1)
    bf16 = jnp.bfloat16
    x1p_ref[...] = jnp.zeros_like(x1p_ref)                    # pad inside kernel
    x1p_ref[1:1 + H, 1:1 + W, :] = x1_ref[0].astype(jnp.float32)

    for py in range(2):                                       # output row phase
        for px in range(2):                                   # output col phase
            acc = jnp.zeros((H * W, ch), jnp.float32)
            for t in range(2):                                # 2x2 taps per phase
                for s in range(2):
                    patch = x1p_ref[py + t:py + t + H, px + s:px + s + W, :]
                    acc = acc + jnp.dot(
                        patch.reshape(H * W, cin).astype(bf16),
                        wup_ref[py + 2 * t, px + 2 * s],
                        preferred_element_type=jnp.float32)
            up = acc + bup_ref[...]
            p = 2 * py + px
            out_ref[0, p * H:(p + 1) * H, :, :] = (
                up.reshape(H, W, ch).astype(out_ref.dtype))


def upconv_poly(x1, w_up, b_up):
    """Polyphase transposed conv.  x1: (N, H, W, Cin) bf16.
    Returns phases (N, 4*H, W, ch) bf16 with phase-major row blocks."""
    N, H, W, Cin = x1.shape
    ch = w_up.shape[-1]
    kernel = functools.partial(_upconv_poly_kernel, H=H, W=W, cin=Cin, ch=ch)
    block_bytes = (H * W * Cin + 4 * 4 * Cin * ch + 4 * H * W * ch) * 2 + ch * 4
    scratch_bytes = (H + 2) * (W + 2) * Cin * 4
    return pl.pallas_call(
        kernel,
        out_shape=jax.ShapeDtypeStruct((N, 4 * H, W, ch), jnp.bfloat16),
        grid=(N,),
        in_specs=[
            pl.BlockSpec((1, H, W, Cin), lambda n: (n, 0, 0, 0)),
            pl.BlockSpec((4, 4, Cin, ch), lambda n: (0, 0, 0, 0)),
            pl.BlockSpec((1, ch), lambda n: (0, 0)),
        ],
        out_specs=pl.BlockSpec((1, 4 * H, W, ch), lambda n: (n, 0, 0, 0)),
        scratch_shapes=[pltpu.VMEM((H + 2, W + 2, Cin), jnp.float32)],
        compiler_params=_compiler_params(2 * block_bytes + scratch_bytes),
    )(x1, w_up, b_up.reshape(1, ch))


# ----------------------------------------------------------------------------
# Kernel 2: F.pad + concat + (Conv3x3 + BN + ReLU) x 2, fully fused
# ----------------------------------------------------------------------------
def _double_conv_kernel(up_ref, x2_ref, w1u_ref, w1s_ref, s1_ref, t1_ref,
                        w2_ref, s2_ref, t2_ref, out_ref,
                        upp_ref, x2p_ref, hp_ref,
                        *, Ho, Wo, Hu, Wu, dy0, dx0, ch, cout):
    # up_ref : (1, Hu, Wu, ch)      bf16   upsampled decoder feature
    # x2_ref : (1, Ho, Wo, ch)      bf16   skip connection
    # w1u/w1s: (3, 3, ch, Cout)     bf16   conv1 weights split over the concat
    # w2_ref : (3, 3, Cout, Cout)   bf16
    # s*/t*  : (1, Cout)            f32    folded BN scale / bias
    # out_ref: (1, Ho, Wo, Cout)    f32
    # scratch: upp/x2p (Ho+2, Wo+2, ch) f32,  hp (Ho+2, Wo+2, Cout) f32
    f32 = jnp.float32
    bf16 = jnp.bfloat16

    # ---- build zero-padded operands in VMEM: fuses F.pad (dy0/dx0 placement),
    #      torch.cat (separate buffers + split weights) and both 'SAME' pads.
    upp_ref[...] = jnp.zeros_like(upp_ref)
    x2p_ref[...] = jnp.zeros_like(x2p_ref)
    hp_ref[...] = jnp.zeros_like(hp_ref)
    upp_ref[1 + dy0:1 + dy0 + Hu, 1 + dx0:1 + dx0 + Wu, :] = up_ref[0].astype(f32)
    x2p_ref[1:1 + Ho, 1:1 + Wo, :] = x2_ref[0].astype(f32)

    # ---- conv1 (3x3) over the virtual concat [up, x2]: two bf16 MXU matmuls
    #      per tap into one f32 accumulator, then folded BN + ReLU.
    acc1 = jnp.zeros((Ho * Wo, cout), f32)
    for ky in range(3):
        for kx in range(3):
            pu = upp_ref[ky:ky + Ho, kx:kx + Wo, :].reshape(Ho * Wo, ch)
            ps = x2p_ref[ky:ky + Ho, kx:kx + Wo, :].reshape(Ho * Wo, ch)
            acc1 = acc1 + jnp.dot(pu.astype(bf16), w1u_ref[ky, kx],
                                  preferred_element_type=f32)
            acc1 = acc1 + jnp.dot(ps.astype(bf16), w1s_ref[ky, kx],
                                  preferred_element_type=f32)
    h = jnp.maximum(acc1 * s1_ref[...] + t1_ref[...], 0.0)

    # h never leaves VMEM (bf16-rounded, matching the HBM round trip it replaces)
    hp_ref[1:1 + Ho, 1:1 + Wo, :] = (
        h.reshape(Ho, Wo, cout).astype(bf16).astype(f32))

    # ---- conv2 (3x3) + folded BN + ReLU --------------------------------------
    acc2 = jnp.zeros((Ho * Wo, cout), f32)
    for ky in range(3):
        for kx in range(3):
            ph = hp_ref[ky:ky + Ho, kx:kx + Wo, :].reshape(Ho * Wo, cout)
            acc2 = acc2 + jnp.dot(ph.astype(bf16), w2_ref[ky, kx],
                                  preferred_element_type=f32)
    y = jnp.maximum(acc2 * s2_ref[...] + t2_ref[...], 0.0)
    out_ref[...] = y.reshape(1, Ho, Wo, cout).astype(out_ref.dtype)


def double_conv_fused(up, x2, w1u, w1s, s1, t1, w2, s2, t2, *, dy0, dx0):
    N, Hu, Wu, ch = up.shape
    _, Ho, Wo, _ = x2.shape
    Cout = w2.shape[-1]
    kernel = functools.partial(_double_conv_kernel, Ho=Ho, Wo=Wo, Hu=Hu, Wu=Wu,
                               dy0=dy0, dx0=dx0, ch=ch, cout=Cout)
    block_bytes = ((Hu * Wu * ch + Ho * Wo * ch + 2 * 9 * ch * Cout
                    + 9 * Cout * Cout) * 2 + 4 * Cout * 4 + Ho * Wo * Cout * 4)
    scratch_bytes = (Ho + 2) * (Wo + 2) * (2 * ch + Cout) * 4
    return pl.pallas_call(
        kernel,
        out_shape=jax.ShapeDtypeStruct((N, Ho, Wo, Cout), jnp.float32),
        grid=(N,),
        in_specs=[
            pl.BlockSpec((1, Hu, Wu, ch), lambda n: (n, 0, 0, 0)),
            pl.BlockSpec((1, Ho, Wo, ch), lambda n: (n, 0, 0, 0)),
            pl.BlockSpec((3, 3, ch, Cout), lambda n: (0, 0, 0, 0)),
            pl.BlockSpec((3, 3, ch, Cout), lambda n: (0, 0, 0, 0)),
            pl.BlockSpec((1, Cout), lambda n: (0, 0)),
            pl.BlockSpec((1, Cout), lambda n: (0, 0)),
            pl.BlockSpec((3, 3, Cout, Cout), lambda n: (0, 0, 0, 0)),
            pl.BlockSpec((1, Cout), lambda n: (0, 0)),
            pl.BlockSpec((1, Cout), lambda n: (0, 0)),
        ],
        out_specs=pl.BlockSpec((1, Ho, Wo, Cout), lambda n: (n, 0, 0, 0)),
        scratch_shapes=[
            pltpu.VMEM((Ho + 2, Wo + 2, ch), jnp.float32),
            pltpu.VMEM((Ho + 2, Wo + 2, ch), jnp.float32),
            pltpu.VMEM((Ho + 2, Wo + 2, Cout), jnp.float32),
        ],
        compiler_params=_compiler_params(2 * block_bytes + scratch_bytes),
    )(up, x2, w1u, w1s, s1.reshape(1, Cout), t1.reshape(1, Cout),
      w2, s2.reshape(1, Cout), t2.reshape(1, Cout))


# ----------------------------------------------------------------------------
# Parameters (deterministic init, matching the PyTorch module's shapes)
# ----------------------------------------------------------------------------
def init_params(key, in_channels, out_channels):
    eps = 1e-5
    ks = jax.random.split(key, 10)
    ch = in_channels // 2
    bf16 = jnp.bfloat16

    # ConvTranspose2d(in, in//2, 4, stride=2, padding=1): torch weight (Cin, ch, 4, 4)
    w_up_t = 0.1 * jax.random.normal(ks[0], (in_channels, ch, 4, 4), jnp.float32)
    b_up = 0.1 * jax.random.normal(ks[1], (ch,), jnp.float32)
    # Equivalent direct-conv weight: spatial flip, then HWIO.  The polyphase
    # kernel indexes it as w[py+2t, px+2s].
    w_up = jnp.transpose(w_up_t[:, :, ::-1, ::-1], (2, 3, 0, 1))

    def conv_bn(kw, kb, kg, kbeta, c_in, c_out):
        # Conv2d(c_in, c_out, 3, padding=1): torch weight (Cout, Cin, 3, 3)
        w_t = 0.1 * jax.random.normal(kw, (c_out, c_in, 3, 3), jnp.float32)
        b = 0.1 * jax.random.normal(kb, (c_out,), jnp.float32)
        gamma = 1.0 + 0.1 * jax.random.normal(kg, (c_out,), jnp.float32)
        beta = 0.1 * jax.random.normal(kbeta, (c_out,), jnp.float32)
        rmean = jnp.zeros((c_out,), jnp.float32)   # PyTorch BN default running stats
        rvar = jnp.ones((c_out,), jnp.float32)
        w = jnp.transpose(w_t, (2, 3, 1, 0))       # -> HWIO
        s = gamma / jnp.sqrt(rvar + eps)
        t = (b - rmean) * s + beta
        return w, s, t

    w1, s1, t1 = conv_bn(ks[2], ks[3], ks[4], ks[5], in_channels, out_channels)
    w2, s2, t2 = conv_bn(ks[6], ks[7], ks[8], ks[9], out_channels, out_channels)

    return dict(
        w_up=w_up.astype(bf16), b_up=b_up,
        w1u=w1[:, :, :ch, :].astype(bf16),   # conv1 weights for the up channels
        w1s=w1[:, :, ch:, :].astype(bf16),   # conv1 weights for the skip channels
        s1=s1, t1=t1,
        w2=w2.astype(bf16), s2=s2, t2=t2)


# ----------------------------------------------------------------------------
# Forward pass (wrapper: NCHW in / NCHW out, kernels run in NHWC / bf16)
# ----------------------------------------------------------------------------
def upsamp_forward(x1_nchw, x2_nchw, params):
    bf16 = jnp.bfloat16
    x1 = jnp.transpose(x1_nchw, (0, 2, 3, 1)).astype(bf16)   # NHWC
    x2 = jnp.transpose(x2_nchw, (0, 2, 3, 1)).astype(bf16)   # NHWC
    N, H, W, Cin = x1.shape
    ch = Cin // 2
    Ho, Wo = x2.shape[1], x2.shape[2]

    # 1) polyphase ConvTranspose2d -> 4 phases; interleave in the wrapper
    #    (pure layout plumbing on the smallest intermediate).
    phases = upconv_poly(x1, params["w_up"], params["b_up"])   # (N, 4H, W, ch)
    up = phases.reshape(N, 2, 2, H, W, ch)
    up = jnp.transpose(up, (0, 3, 1, 4, 2, 5)).reshape(N, 2 * H, 2 * W, ch)

    # 2) F.pad offsets to x2's size are static placement offsets inside the
    #    fused kernel; concat / SAME pads never touch HBM.
    dy, dx = Ho - 2 * H, Wo - 2 * W
    y = double_conv_fused(up, x2,
                          params["w1u"], params["w1s"], params["s1"], params["t1"],
                          params["w2"], params["s2"], params["t2"],
                          dy0=dy // 2, dx0=dx // 2)
    return jnp.transpose(y, (0, 3, 1, 2))                     # back to NCHW (f32)


# ----------------------------------------------------------------------------
# Pure-JAX reference (lax convolutions, mirroring the kernel's bf16 rounding)
# ----------------------------------------------------------------------------
def ref_forward(x1_nchw, x2_nchw, params):
    f32 = jnp.float32
    dn = ("NHWC", "HWIO", "NHWC")
    hi = jax.lax.Precision.HIGHEST
    x1 = jnp.transpose(x1_nchw, (0, 2, 3, 1)).astype(jnp.bfloat16).astype(f32)
    x2 = jnp.transpose(x2_nchw, (0, 2, 3, 1)).astype(jnp.bfloat16).astype(f32)

    up = jax.lax.conv_general_dilated(
        x1, params["w_up"].astype(f32), (1, 1), [(2, 2), (2, 2)],
        lhs_dilation=(2, 2), dimension_numbers=dn, precision=hi) + params["b_up"]
    up = up.astype(jnp.bfloat16).astype(f32)          # kernel hands bf16 to conv1

    Ho, Wo = x2.shape[1], x2.shape[2]
    dy, dx = Ho - up.shape[1], Wo - up.shape[2]
    up = jnp.pad(up, ((0, 0), (dy // 2, dy - dy // 2), (dx // 2, dx - dx // 2), (0, 0)))
    x = jnp.concatenate([up, x2], axis=-1)

    w1 = jnp.concatenate([params["w1u"], params["w1s"]], axis=2).astype(f32)
    h = jnp.maximum(
        jax.lax.conv_general_dilated(x, w1, (1, 1), "SAME",
                                     dimension_numbers=dn, precision=hi)
        * params["s1"] + params["t1"], 0.0)
    h = h.astype(jnp.bfloat16).astype(f32)            # kernel keeps h bf16 in VMEM
    y = jnp.maximum(
        jax.lax.conv_general_dilated(h, params["w2"].astype(f32), (1, 1), "SAME",
                                     dimension_numbers=dn, precision=hi)
        * params["s2"] + params["t2"], 0.0)
    return jnp.transpose(y, (0, 3, 1, 2))


if __name__ == "__main__":
    key = jax.random.PRNGKey(0)
    k1, k2, kp = jax.random.split(key, 3)

    in_channels, out_channels = 4, 8
    # x1: decoder feature (NCHW), x2: skip connection with in_channels//2 chans
    x1 = jax.random.normal(k1, (2, in_channels, 8, 8), jnp.float32)
    x2 = jax.random.normal(k2, (2, in_channels // 2, 16, 16), jnp.float32)

    params = init_params(kp, in_channels, out_channels)

    out = jax.block_until_ready(jax.jit(upsamp_forward)(x1, x2, params))
    ref = jax.block_until_ready(jax.jit(ref_forward)(x1, x2, params))

    assert out.shape == (2, out_channels, 16, 16), out.shape
    err = float(jnp.max(jnp.abs(out - ref)))
    assert err < 2e-2, f"max abs err {err}"

    print("KERNEL_OK")
</pallas_src>

<mosaic_0001>
module attributes {stable_mosaic.version = 11 : i64} {
  func.func @_upconv_poly_kernel(%arg0: i32, %arg1: memref<1x8x8x4xbf16, #tpu.memory_space<vmem>>, %arg2: memref<4x4x4x2xbf16, #tpu.memory_space<vmem>>, %arg3: memref<1x2xf32, #tpu.memory_space<vmem>>, %arg4: memref<1x32x8x2xbf16, #tpu.memory_space<vmem>>, %arg5: memref<10x10x4xf32, #tpu.memory_space<vmem>>) attributes {dimension_semantics = [#tpu.dimension_semantics<parallel>], iteration_bounds = array<i64: 2>, scalar_prefetch = 0 : i64, scratch_operands = 1 : i64, tpu.core_type = #tpu.core_type<tc>, window_params = [{transform_indices = @transform_0, window_bounds = array<i64: 1, 8, 8, 4>}, {pipeline_mode = #tpu.pipeline_mode<synchronous>, transform_indices = @transform_1, window_bounds = array<i64: 4, 4, 4, 2>}, {pipeline_mode = #tpu.pipeline_mode<synchronous>, transform_indices = @transform_2, window_bounds = array<i64: 1, 2>}, {transform_indices = @transform_3, window_bounds = array<i64: 1, 32, 8, 2>}]} {
    %cst = arith.constant 0.000000e+00 : f32
    %0 = vector.broadcast %cst : f32 to vector<10x10x4xf32>
    %c0 = arith.constant 0 : index
    %c0_0 = arith.constant 0 : index
    %c0_1 = arith.constant 0 : index
    %1 = vector.load %arg5[%c0, %c0_0, %c0_1] : memref<10x10x4xf32, #tpu.memory_space<vmem>>, vector<10x10x4xf32>
    tpu.vector_store %arg5[%c0, %c0_0, %c0_1], %0 {strides = array<i32>} : memref<10x10x4xf32, #tpu.memory_space<vmem>>, vector<10x10x4xf32>,
    %c0_2 = arith.constant 0 : index
    %c0_3 = arith.constant 0 : index
    %c0_4 = arith.constant 0 : index
    %c0_5 = arith.constant 0 : index
    %2 = vector.load %arg1[%c0_2, %c0_3, %c0_4, %c0_5] : memref<1x8x8x4xbf16, #tpu.memory_space<vmem>>, vector<1x8x8x4xbf16>
    %3 = vector.shape_cast %2 : vector<1x8x8x4xbf16> to vector<8x8x4xbf16>
    %4 = arith.extf %3 : vector<8x8x4xbf16> to vector<8x8x4xf32>
    %c1 = arith.constant 1 : index
    %c1_6 = arith.constant 1 : index
    %c0_7 = arith.constant 0 : index
    %5 = vector.load %arg5[%c1, %c1_6, %c0_7] : memref<10x10x4xf32, #tpu.memory_space<vmem>>, vector<8x8x4xf32>
    tpu.vector_store %arg5[%c1, %c1_6, %c0_7], %4 {strides = array<i32>} : memref<10x10x4xf32, #tpu.memory_space<vmem>>, vector<8x8x4xf32>,
    %cst_8 = arith.constant 0.000000e+00 : f32
    %6 = vector.broadcast %cst_8 : f32 to vector<64x2xf32>
    %c0_9 = arith.constant 0 : index
    %c0_10 = arith.constant 0 : index
    %c0_11 = arith.constant 0 : index
    %7 = vector.load %arg5[%c0_9, %c0_10, %c0_11] : memref<10x10x4xf32, #tpu.memory_space<vmem>>, vector<8x8x4xf32>
    %8 = vector.shape_cast %7 : vector<8x8x4xf32> to vector<64x4xf32>
    %9 = arith.truncf %8 : vector<64x4xf32> to vector<64x4xbf16>
    %c0_12 = arith.constant 0 : index
    %c0_13 = arith.constant 0 : index
    %c0_14 = arith.constant 0 : index
    %c0_15 = arith.constant 0 : index
    %10 = vector.load %arg2[%c0_12, %c0_13, %c0_14, %c0_15] : memref<4x4x4x2xbf16, #tpu.memory_space<vmem>>, vector<1x1x4x2xbf16>
    %11 = vector.shape_cast %10 : vector<1x1x4x2xbf16> to vector<4x2xbf16>
    %cst_16 = arith.constant dense<0.000000e+00> : vector<64x2xf32>
    %12 = tpu.matmul %9, %11, %cst_16 {dimension_numbers = #tpu.dot_dimension_numbers<[1], [0], [0], [1], [0, 0, 1, 1], [], []>} : vector<64x4xbf16>, vector<4x2xbf16>, vector<64x2xf32> -> vector<64x2xf32>
    %13 = arith.addf %6, %12 : vector<64x2xf32>
    %c0_17 = arith.constant 0 : index
    %c1_18 = arith.constant 1 : index
    %c0_19 = arith.constant 0 : index
    %14 = vector.load %arg5[%c0_17, %c1_18, %c0_19] : memref<10x10x4xf32, #tpu.memory_space<vmem>>, vector<8x8x4xf32>
    %15 = vector.shape_cast %14 : vector<8x8x4xf32> to vector<64x4xf32>
    %16 = arith.truncf %15 : vector<64x4xf32> to vector<64x4xbf16>
    %c0_20 = arith.constant 0 : index
    %c2 = arith.constant 2 : index
    %c0_21 = arith.constant 0 : index
    %c0_22 = arith.constant 0 : index
    %17 = vector.load %arg2[%c0_20, %c2, %c0_21, %c0_22] : memref<4x4x4x2xbf16, #tpu.memory_space<vmem>>, vector<1x1x4x2xbf16>
    %18 = vector.shape_cast %17 : vector<1x1x4x2xbf16> to vector<4x2xbf16>
    %cst_23 = arith.constant dense<0.000000e+00> : vector<64x2xf32>
    %19 = tpu.matmul %16, %18, %cst_23 {dimension_numbers = #tpu.dot_dimension_numbers<[1], [0], [0], [1], [0, 0, 1, 1], [], []>} : vector<64x4xbf16>, vector<4x2xbf16>, vector<64x2xf32> -> vector<64x2xf32>
    %20 = arith.addf %13, %19 : vector<64x2xf32>
    %c1_24 = arith.constant 1 : index
    %c0_25 = arith.constant 0 : index
    %c0_26 = arith.constant 0 : index
    %21 = vector.load %arg5[%c1_24, %c0_25, %c0_26] : memref<10x10x4xf32, #tpu.memory_space<vmem>>, vector<8x8x4xf32>
    %22 = vector.shape_cast %21 : vector<8x8x4xf32> to vector<64x4xf32>
    %23 = arith.truncf %22 : vector<64x4xf32> to vector<64x4xbf16>
    %c2_27 = arith.constant 2 : index
    %c0_28 = arith.constant 0 : index
    %c0_29 = arith.constant 0 : index
    %c0_30 = arith.constant 0 : index
    %24 = vector.load %arg2[%c2_27, %c0_28, %c0_29, %c0_30] : memref<4x4x4x2xbf16, #tpu.memory_space<vmem>>, vector<1x1x4x2xbf16>
    %25 = vector.shape_cast %24 : vector<1x1x4x2xbf16> to vector<4x2xbf16>
    %cst_31 = arith.constant dense<0.000000e+00> : vector<64x2xf32>
    %26 = tpu.matmul %23, %25, %cst_31 {dimension_numbers = #tpu.dot_dimension_numbers<[1], [0], [0], [1], [0, 0, 1, 1], [], []>} : vector<64x4xbf16>, vector<4x2xbf16>, vector<64x2xf32> -> vector<64x2xf32>
    %27 = arith.addf %20, %26 : vector<64x2xf32>
    %c1_32 = arith.constant 1 : index
    %c1_33 = arith.constant 1 : index
    %c0_34 = arith.constant 0 : index
    %28 = vector.load %arg5[%c1_32, %c1_33, %c0_34] : memref<10x10x4xf32, #tpu.memory_space<vmem>>, vector<8x8x4xf32>
    %29 = vector.shape_cast %28 : vector<8x8x4xf32> to vector<64x4xf32>
    %30 = arith.truncf %29 : vector<64x4xf32> to vector<64x4xbf16>
    %c2_35 = arith.constant 2 : index
    %c2_36 = arith.constant 2 : index
    %c0_37 = arith.constant 0 : index
    %c0_38 = arith.constant 0 : index
    %31 = vector.load %arg2[%c2_35, %c2_36, %c0_37, %c0_38] : memref<4x4x4x2xbf16, #tpu.memory_space<vmem>>, vector<1x1x4x2xbf16>
    %32 = vector.shape_cast %31 : vector<1x1x4x2xbf16> to vector<4x2xbf16>
    %cst_39 = arith.constant dense<0.000000e+00> : vector<64x2xf32>
    %33 = tpu.matmul %30, %32, %cst_39 {dimension_numbers = #tpu.dot_dimension_numbers<[1], [0], [0], [1], [0, 0, 1, 1], [], []>} : vector<64x4xbf16>, vector<4x2xbf16>, vector<64x2xf32> -> vector<64x2xf32>
    %34 = arith.addf %27, %33 : vector<64x2xf32>
    %c0_40 = arith.constant 0 : index
    %c0_41 = arith.constant 0 : index
    %35 = vector.load %arg3[%c0_40, %c0_41] : memref<1x2xf32, #tpu.memory_space<vmem>>, vector<1x2xf32>
    %36 = vector.broadcast %35 : vector<1x2xf32> to vector<64x2xf32>
    %37 = arith.addf %34, %36 : vector<64x2xf32>
    %38 = vector.shape_cast %37 : vector<64x2xf32> to vector<8x8x2xf32>
    %39 = arith.truncf %38 : vector<8x8x2xf32> to vector<8x8x2xbf16>
    %c0_42 = arith.constant 0 : index
    %c0_43 = arith.constant 0 : index
    %c0_44 = arith.constant 0 : index
    %c0_45 = arith.constant 0 : index
    %40 = vector.load %arg4[%c0_42, %c0_43, %c0_44, %c0_45] : memref<1x32x8x2xbf16, #tpu.memory_space<vmem>>, vector<1x8x8x2xbf16>
    %41 = vector.shape_cast %40 : vector<1x8x8x2xbf16> to vector<8x8x2xbf16>
    %42 = vector.shape_cast %39 : vector<8x8x2xbf16> to vector<1x8x8x2xbf16>
    tpu.vector_store %arg4[%c0_42, %c0_43, %c0_44, %c0_45], %42 {strides = array<i32>} : memref<1x32x8x2xbf16, #tpu.memory_space<vmem>>, vector<1x8x8x2xbf16>,
    %cst_46 = arith.constant 0.000000e+00 : f32
    %43 = vector.broadcast %cst_46 : f32 to vector<64x2xf32>
    %c0_47 = arith.constant 0 : index
    %c1_48 = arith.constant 1 : index
    %c0_49 = arith.constant 0 : index
    %44 = vector.load %arg5[%c0_47, %c1_48, %c0_49] : memref<10x10x4xf32, #tpu.memory_space<vmem>>, vector<8x8x4xf32>
    %45 = vector.shape_cast %44 : vector<8x8x4xf32> to vector<64x4xf32>
    %46 = arith.truncf %45 : vector<64x4xf32> to vector<64x4xbf16>
    %c0_50 = arith.constant 0 : index
    %c1_51 = arith.constant 1 : index
    %c0_52 = arith.constant 0 : index
    %c0_53 = arith.constant 0 : index
    %47 = vector.load %arg2[%c0_50, %c1_51, %c0_52, %c0_53] : memref<4x4x4x2xbf16, #tpu.memory_space<vmem>>, vector<1x1x4x2xbf16>
    %48 = vector.shape_cast %47 : vector<1x1x4x2xbf16> to vector<4x2xbf16>
    %cst_54 = arith.constant dense<0.000000e+00> : vector<64x2xf32>
    %49 = tpu.matmul %46, %48, %cst_54 {dimension_numbers = #tpu.dot_dimension_numbers<[1], [0], [0], [1], [0, 0, 1, 1], [], []>} : vector<64x4xbf16>, vector<4x2xbf16>, vector<64x2xf32> -> vector<64x2xf32>
    %50 = arith.addf %43, %49 : vector<64x2xf32>
    %c0_55 = arith.constant 0 : index
    %c2_56 = arith.constant 2 : index
    %c0_57 = arith.constant 0 : index
    %51 = vector.load %arg5[%c0_55, %c2_56, %c0_57] : memref<10x10x4xf32, #tpu.memory_space<vmem>>, vector<8x8x4xf32>
    %52 = vector.shape_cast %51 : vector<8x8x4xf32> to vector<64x4xf32>
    %53 = arith.truncf %52 : vector<64x4xf32> to vector<64x4xbf16>
    %c0_58 = arith.constant 0 : index
    %c3 = arith.constant 3 : index
    %c0_59 = arith.constant 0 : index
    %c0_60 = arith.constant 0 : index
    %54 = vector.load %arg2[%c0_58, %c3, %c0_59, %c0_60] : memref<4x4x4x2xbf16, #tpu.memory_space<vmem>>, vector<1x1x4x2xbf16>
    %55 = vector.shape_cast %54 : vector<1x1x4x2xbf16> to vector<4x2xbf16>
    %cst_61 = arith.constant dense<0.000000e+00> : vector<64x2xf32>
    %56 = tpu.matmul %53, %55, %cst_61 {dimension_numbers = #tpu.dot_dimension_numbers<[1], [0], [0], [1], [0, 0, 1, 1], [], []>} : vector<64x4xbf16>, vector<4x2xbf16>, vector<64x2xf32> -> vector<64x2xf32>
    %57 = arith.addf %50, %56 : vector<64x2xf32>
    %c1_62 = arith.constant 1 : index
    %c1_63 = arith.constant 1 : index
    %c0_64 = arith.constant 0 : index
    %58 = vector.load %arg5[%c1_62, %c1_63, %c0_64] : memref<10x10x4xf32, #tpu.memory_space<vmem>>, vector<8x8x4xf32>
    %59 = vector.shape_cast %58 : vector<8x8x4xf32> to vector<64x4xf32>
    %60 = arith.truncf %59 : vector<64x4xf32> to vector<64x4xbf16>
    %c2_65 = arith.constant 2 : index
    %c1_66 = arith.constant 1 : index
    %c0_67 = arith.constant 0 : index
    %c0_68 = arith.constant 0 : index
    %61 = vector.load %arg2[%c2_65, %c1_66, %c0_67, %c0_68] : memref<4x4x4x2xbf16, #tpu.memory_space<vmem>>, vector<1x1x4x2xbf16>
    %62 = vector.shape_cast %61 : vector<1x1x4x2xbf16> to vector<4x2xbf16>
    %cst_69 = arith.constant dense<0.000000e+00> : vector<64x2xf32>
    %63 = tpu.matmul %60, %62, %cst_69 {dimension_numbers = #tpu.dot_dimension_numbers<[1], [0], [0], [1], [0, 0, 1, 1], [], []>} : vector<64x4xbf16>, vector<4x2xbf16>, vector<64x2xf32> -> vector<64x2xf32>
    %64 = arith.addf %57, %63 : vector<64x2xf32>
    %c1_70 = arith.constant 1 : index
    %c2_71 = arith.constant 2 : index
    %c0_72 = arith.constant 0 : index
    %65 = vector.load %arg5[%c1_70, %c2_71, %c0_72] : memref<10x10x4xf32, #tpu.memory_space<vmem>>, vector<8x8x4xf32>
    %66 = vector.shape_cast %65 : vector<8x8x4xf32> to vector<64x4xf32>
    %67 = arith.truncf %66 : vector<64x4xf32> to vector<64x4xbf16>
    %c2_73 = arith.constant 2 : index
    %c3_74 = arith.constant 3 : index
    %c0_75 = arith.constant 0 : index
    %c0_76 = arith.constant 0 : index
    %68 = vector.load %arg2[%c2_73, %c3_74, %c0_75, %c0_76] : memref<4x4x4x2xbf16, #tpu.memory_space<vmem>>, vector<1x1x4x2xbf16>
    %69 = vector.shape_cast %68 : vector<1x1x4x2xbf16> to vector<4x2xbf16>
    %cst_77 = arith.constant dense<0.000000e+00> : vector<64x2xf32>
    %70 = tpu.matmul %67, %69, %cst_77 {dimension_numbers = #tpu.dot_dimension_numbers<[1], [0], [0], [1], [0, 0, 1, 1], [], []>} : vector<64x4xbf16>, vector<4x2xbf16>, vector<64x2xf32> -> vector<64x2xf32>
    %71 = arith.addf %64, %70 : vector<64x2xf32>
    %c0_78 = arith.constant 0 : index
    %c0_79 = arith.constant 0 : index
    %72 = vector.load %arg3[%c0_78, %c0_79] : memref<1x2xf32, #tpu.memory_space<vmem>>, vector<1x2xf32>
    %73 = vector.broadcast %72 : vector<1x2xf32> to vector<64x2xf32>
    %74 = arith.addf %71, %73 : vector<64x2xf32>
    %75 = vector.shape_cast %74 : vector<64x2xf32> to vector<8x8x2xf32>
    %76 = arith.truncf %75 : vector<8x8x2xf32> to vector<8x8x2xbf16>
    %c0_80 = arith.constant 0 : index
    %c8 = arith.constant 8 : index
    %c0_81 = arith.constant 0 : index
    %c0_82 = arith.constant 0 : index
    %77 = vector.load %arg4[%c0_80, %c8, %c0_81, %c0_82] : memref<1x32x8x2xbf16, #tpu.memory_space<vmem>>, vector<1x8x8x2xbf16>
    %78 = vector.shape_cast %77 : vector<1x8x8x2xbf16> to vector<8x8x2xbf16>
    %79 = vector.shape_cast %76 : vector<8x8x2xbf16> to vector<1x8x8x2xbf16>
    tpu.vector_store %arg4[%c0_80, %c8, %c0_81, %c0_82], %79 {strides = array<i32>} : memref<1x32x8x2xbf16, #tpu.memory_space<vmem>>, vector<1x8x8x2xbf16>,
    %cst_83 = arith.constant 0.000000e+00 : f32
    %80 = vector.broadcast %cst_83 : f32 to vector<64x2xf32>
    %c1_84 = arith.constant 1 : index
    %c0_85 = arith.constant 0 : index
    %c0_86 = arith.constant 0 : index
    %81 = vector.load %arg5[%c1_84, %c0_85, %c0_86] : memref<10x10x4xf32, #tpu.memory_space<vmem>>, vector<8x8x4xf32>
    %82 = vector.shape_cast %81 : vector<8x8x4xf32> to vector<64x4xf32>
    %83 = arith.truncf %82 : vector<64x4xf32> to vector<64x4xbf16>
    %c1_87 = arith.constant 1 : index
    %c0_88 = arith.constant 0 : index
    %c0_89 = arith.constant 0 : index
    %c0_90 = arith.constant 0 : index
    %84 = vector.load %arg2[%c1_87, %c0_88, %c0_89, %c0_90] : memref<4x4x4x2xbf16, #tpu.memory_space<vmem>>, vector<1x1x4x2xbf16>
    %85 = vector.shape_cast %84 : vector<1x1x4x2xbf16> to vector<4x2xbf16>
    %cst_91 = arith.constant dense<0.000000e+00> : vector<64x2xf32>
    %86 = tpu.matmul %83, %85, %cst_91 {dimension_numbers = #tpu.dot_dimension_numbers<[1], [0], [0], [1], [0, 0, 1, 1], [], []>} : vector<64x4xbf16>, vector<4x2xbf16>, vector<64x2xf32> -> vector<64x2xf32>
    %87 = arith.addf %80, %86 : vector<64x2xf32>
    %c1_92 = arith.constant 1 : index
    %c1_93 = arith.constant 1 : index
    %c0_94 = arith.constant 0 : index
    %88 = vector.load %arg5[%c1_92, %c1_93, %c0_94] : memref<10x10x4xf32, #tpu.memory_space<vmem>>, vector<8x8x4xf32>
    %89 = vector.shape_cast %88 : vector<8x8x4xf32> to vector<64x4xf32>
    %90 = arith.truncf %89 : vector<64x4xf32> to vector<64x4xbf16>
    %c1_95 = arith.constant 1 : index
    %c2_96 = arith.constant 2 : index
    %c0_97 = arith.constant 0 : index
    %c0_98 = arith.constant 0 : index
    %91 = vector.load %arg2[%c1_95, %c2_96, %c0_97, %c0_98] : memref<4x4x4x2xbf16, #tpu.memory_space<vmem>>, vector<1x1x4x2xbf16>
    %92 = vector.shape_cast %91 : vector<1x1x4x2xbf16> to vector<4x2xbf16>
    %cst_99 = arith.constant dense<0.000000e+00> : vector<64x2xf32>
    %93 = tpu.matmul %90, %92, %cst_99 {dimension_numbers = #tpu.dot_dimension_numbers<[1], [0], [0], [1], [0, 0, 1, 1], [], []>} : vector<64x4xbf16>, vector<4x2xbf16>, vector<64x2xf32> -> vector<64x2xf32>
    %94 = arith.addf %87, %93 : vector<64x2xf32>
    %c2_100 = arith.constant 2 : index
    %c0_101 = arith.constant 0 : index
    %c0_102 = arith.constant 0 : index
    %95 = vector.load %arg5[%c2_100, %c0_101, %c0_102] : memref<10x10x4xf32, #tpu.memory_space<vmem>>, vector<8x8x4xf32>
    %96 = vector.shape_cast %95 : vector<8x8x4xf32> to vector<64x4xf32>
    %97 = arith.truncf %96 : vector<64x4xf32> to vector<64x4xbf16>
    %c3_103 = arith.constant 3 : index
    %c0_104 = arith.constant 0 : index
    %c0_105 = arith.constant 0 : index
    %c0_106 = arith.constant 0 : index
    %98 = vector.load %arg2[%c3_103, %c0_104, %c0_105, %c0_106] : memref<4x4x4x2xbf16, #tpu.memory_space<vmem>>, vector<1x1x4x2xbf16>
    %99 = vector.shape_cast %98 : vector<1x1x4x2xbf16> to vector<4x2xbf16>
    %cst_107 = arith.constant dense<0.000000e+00> : vector<64x2xf32>
    %100 = tpu.matmul %97, %99, %cst_107 {dimension_numbers = #tpu.dot_dimension_numbers<[1], [0], [0], [1], [0, 0, 1, 1], [], []>} : vector<64x4xbf16>, vector<4x2xbf16>, vector<64x2xf32> -> vector<64x2xf32>
    %101 = arith.addf %94, %100 : vector<64x2xf32>
    %c2_108 = arith.constant 2 : index
    %c1_109 = arith.constant 1 : index
    %c0_110 = arith.constant 0 : index
    %102 = vector.load %arg5[%c2_108, %c1_109, %c0_110] : memref<10x10x4xf32, #tpu.memory_space<vmem>>, vector<8x8x4xf32>
    %103 = vector.shape_cast %102 : vector<8x8x4xf32> to vector<64x4xf32>
    %104 = arith.truncf %103 : vector<64x4xf32> to vector<64x4xbf16>
    %c3_111 = arith.constant 3 : index
    %c2_112 = arith.constant 2 : index
    %c0_113 = arith.constant 0 : index
    %c0_114 = arith.constant 0 : index
    %105 = vector.load %arg2[%c3_111, %c2_112, %c0_113, %c0_114] : memref<4x4x4x2xbf16, #tpu.memory_space<vmem>>, vector<1x1x4x2xbf16>
    %106 = vector.shape_cast %105 : vector<1x1x4x2xbf16> to vector<4x2xbf16>
    %cst_115 = arith.constant dense<0.000000e+00> : vector<64x2xf32>
    %107 = tpu.matmul %104, %106, %cst_115 {dimension_numbers = #tpu.dot_dimension_numbers<[1], [0], [0], [1], [0, 0, 1, 1], [], []>} : vector<64x4xbf16>, vector<4x2xbf16>, vector<64x2xf32> -> vector<64x2xf32>
    %108 = arith.addf %101, %107 : vector<64x2xf32>
    %c0_116 = arith.constant 0 : index
    %c0_117 = arith.constant 0 : index
    %109 = vector.load %arg3[%c0_116, %c0_117] : memref<1x2xf32, #tpu.memory_space<vmem>>, vector<1x2xf32>
    %110 = vector.broadcast %109 : vector<1x2xf32> to vector<64x2xf32>
    %111 = arith.addf %108, %110 : vector<64x2xf32>
    %112 = vector.shape_cast %111 : vector<64x2xf32> to vector<8x8x2xf32>
    %113 = arith.truncf %112 : vector<8x8x2xf32> to vector<8x8x2xbf16>
    %c0_118 = arith.constant 0 : index
    %c16 = arith.constant 16 : index
    %c0_119 = arith.constant 0 : index
    %c0_120 = arith.constant 0 : index
    %114 = vector.load %arg4[%c0_118, %c16, %c0_119, %c0_120] : memref<1x32x8x2xbf16, #tpu.memory_space<vmem>>, vector<1x8x8x2xbf16>
    %115 = vector.shape_cast %114 : vector<1x8x8x2xbf16> to vector<8x8x2xbf16>
    %116 = vector.shape_cast %113 : vector<8x8x2xbf16> to vector<1x8x8x2xbf16>
    tpu.vector_store %arg4[%c0_118, %c16, %c0_119, %c0_120], %116 {strides = array<i32>} : memref<1x32x8x2xbf16, #tpu.memory_space<vmem>>, vector<1x8x8x2xbf16>,
    %cst_121 = arith.constant 0.000000e+00 : f32
    %117 = vector.broadcast %cst_121 : f32 to vector<64x2xf32>
    %c1_122 = arith.constant 1 : index
    %c1_123 = arith.constant 1 : index
    %c0_124 = arith.constant 0 : index
    %118 = vector.load %arg5[%c1_122, %c1_123, %c0_124] : memref<10x10x4xf32, #tpu.memory_space<vmem>>, vector<8x8x4xf32>
    %119 = vector.shape_cast %118 : vector<8x8x4xf32> to vector<64x4xf32>
    %120 = arith.truncf %119 : vector<64x4xf32> to vector<64x4xbf16>
    %c1_125 = arith.constant 1 : index
    %c1_126 = arith.constant 1 : index
    %c0_127 = arith.constant 0 : index
    %c0_128 = arith.constant 0 : index
    %121 = vector.load %arg2[%c1_125, %c1_126, %c0_127, %c0_128] : memref<4x4x4x2xbf16, #tpu.memory_space<vmem>>, vector<1x1x4x2xbf16>
    %122 = vector.shape_cast %121 : vector<1x1x4x2xbf16> to vector<4x2xbf16>
    %cst_129 = arith.constant dense<0.000000e+00> : vector<64x2xf32>
    %123 = tpu.matmul %120, %122, %cst_129 {dimension_numbers = #tpu.dot_dimension_numbers<[1], [0], [0], [1], [0, 0, 1, 1], [], []>} : vector<64x4xbf16>, vector<4x2xbf16>, vector<64x2xf32> -> vector<64x2xf32>
    %124 = arith.addf %117, %123 : vector<64x2xf32>
    %c1_130 = arith.constant 1 : index
    %c2_131 = arith.constant 2 : index
    %c0_132 = arith.constant 0 : index
    %125 = vector.load %arg5[%c1_130, %c2_131, %c0_132] : memref<10x10x4xf32, #tpu.memory_space<vmem>>, vector<8x8x4xf32>
    %126 = vector.shape_cast %125 : vector<8x8x4xf32> to vector<64x4xf32>
    %127 = arith.truncf %126 : vector<64x4xf32> to vector<64x4xbf16>
    %c1_133 = arith.constant 1 : index
    %c3_134 = arith.constant 3 : index
    %c0_135 = arith.constant 0 : index
    %c0_136 = arith.constant 0 : index
    %128 = vector.load %arg2[%c1_133, %c3_134, %c0_135, %c0_136] : memref<4x4x4x2xbf16, #tpu.memory_space<vmem>>, vector<1x1x4x2xbf16>
    %129 = vector.shape_cast %128 : vector<1x1x4x2xbf16> to vector<4x2xbf16>
    %cst_137 = arith.constant dense<0.000000e+00> : vector<64x2xf32>
    %130 = tpu.matmul %127, %129, %cst_137 {dimension_numbers = #tpu.dot_dimension_numbers<[1], [0], [0], [1], [0, 0, 1, 1], [], []>} : vector<64x4xbf16>, vector<4x2xbf16>, vector<64x2xf32> -> vector<64x2xf32>
    %131 = arith.addf %124, %130 : vector<64x2xf32>
    %c2_138 = arith.constant 2 : index
    %c1_139 = arith.constant 1 : index
    %c0_140 = arith.constant 0 : index
    %132 = vector.load %arg5[%c2_138, %c1_139, %c0_140] : memref<10x10x4xf32, #tpu.memory_space<vmem>>, vector<8x8x4xf32>
    %133 = vector.shape_cast %132 : vector<8x8x4xf32> to vector<64x4xf32>
    %134 = arith.truncf %133 : vector<64x4xf32> to vector<64x4xbf16>
    %c3_141 = arith.constant 3 : index
    %c1_142 = arith.constant 1 : index
    %c0_143 = arith.constant 0 : index
    %c0_144 = arith.constant 0 : index
    %135 = vector.load %arg2[%c3_141, %c1_142, %c0_143, %c0_144] : memref<4x4x4x2xbf16, #tpu.memory_space<vmem>>, vector<1x1x4x2xbf16>
    %136 = vector.shape_cast %135 : vector<1x1x4x2xbf16> to vector<4x2xbf16>
    %cst_145 = arith.constant dense<0.000000e+00> : vector<64x2xf32>
    %137 = tpu.matmul %134, %136, %cst_145 {dimension_numbers = #tpu.dot_dimension_numbers<[1], [0], [0], [1], [0, 0, 1, 1], [], []>} : vector<64x4xbf16>, vector<4x2xbf16>, vector<64x2xf32> -> vector<64x2xf32>
    %138 = arith.addf %131, %137 : vector<64x2xf32>
    %c2_146 = arith.constant 2 : index
    %c2_147 = arith.constant 2 : index
    %c0_148 = arith.constant 0 : index
    %139 = vector.load %arg5[%c2_146, %c2_147, %c0_148] : memref<10x10x4xf32, #tpu.memory_space<vmem>>, vector<8x8x4xf32>
    %140 = vector.shape_cast %139 : vector<8x8x4xf32> to vector<64x4xf32>
    %141 = arith.truncf %140 : vector<64x4xf32> to vector<64x4xbf16>
    %c3_149 = arith.constant 3 : index
    %c3_150 = arith.constant 3 : index
    %c0_151 = arith.constant 0 : index
    %c0_152 = arith.constant 0 : index
    %142 = vector.load %arg2[%c3_149, %c3_150, %c0_151, %c0_152] : memref<4x4x4x2xbf16, #tpu.memory_space<vmem>>, vector<1x1x4x2xbf16>
    %143 = vector.shape_cast %142 : vector<1x1x4x2xbf16> to vector<4x2xbf16>
    %cst_153 = arith.constant dense<0.000000e+00> : vector<64x2xf32>
    %144 = tpu.matmul %141, %143, %cst_153 {dimension_numbers = #tpu.dot_dimension_numbers<[1], [0], [0], [1], [0, 0, 1, 1], [], []>} : vector<64x4xbf16>, vector<4x2xbf16>, vector<64x2xf32> -> vector<64x2xf32>
    %145 = arith.addf %138, %144 : vector<64x2xf32>
    %c0_154 = arith.constant 0 : index
    %c0_155 = arith.constant 0 : index
    %146 = vector.load %arg3[%c0_154, %c0_155] : memref<1x2xf32, #tpu.memory_space<vmem>>, vector<1x2xf32>
    %147 = vector.broadcast %146 : vector<1x2xf32> to vector<64x2xf32>
    %148 = arith.addf %145, %147 : vector<64x2xf32>
    %149 = vector.shape_cast %148 : vector<64x2xf32> to vector<8x8x2xf32>
    %150 = arith.truncf %149 : vector<8x8x2xf32> to vector<8x8x2xbf16>
    %c0_156 = arith.constant 0 : index
    %c24 = arith.constant 24 : index
    %c0_157 = arith.constant 0 : index
    %c0_158 = arith.constant 0 : index
    %151 = vector.load %arg4[%c0_156, %c24, %c0_157, %c0_158] : memref<1x32x8x2xbf16, #tpu.memory_space<vmem>>, vector<1x8x8x2xbf16>
    %152 = vector.shape_cast %151 : vector<1x8x8x2xbf16> to vector<8x8x2xbf16>
    %153 = vector.shape_cast %150 : vector<8x8x2xbf16> to vector<1x8x8x2xbf16>
    tpu.vector_store %arg4[%c0_156, %c24, %c0_157, %c0_158], %153 {strides = array<i32>} : memref<1x32x8x2xbf16, #tpu.memory_space<vmem>>, vector<1x8x8x2xbf16>,
    return
  }
  func.func @transform_0(%arg0: i32) -> (i32, i32, i32, i32) {
    %c0_i32 = arith.constant 0 : i32
    %c0_i32_0 = arith.constant 0 : i32
    %c0_i32_1 = arith.constant 0 : i32
    %c0_i32_2 = arith.constant 0 : i32
    return %arg0, %c0_i32, %c0_i32_0, %c0_i32_1 : i32, i32, i32, i32
  }
  func.func @transform_1(%arg0: i32) -> (i32, i32, i32, i32) {
    %c0_i32 = arith.constant 0 : i32
    %c0_i32_0 = arith.constant 0 : i32
    %c0_i32_1 = arith.constant 0 : i32
    %c0_i32_2 = arith.constant 0 : i32
    %c0_i32_3 = arith.constant 0 : i32
    return %c0_i32, %c0_i32_0, %c0_i32_1, %c0_i32_2 : i32, i32, i32, i32
  }
  func.func @transform_2(%arg0: i32) -> (i32, i32) {
    %c0_i32 = arith.constant 0 : i32
    %c0_i32_0 = arith.constant 0 : i32
    %c0_i32_1 = arith.constant 0 : i32
    return %c0_i32, %c0_i32_0 : i32, i32
  }
  func.func @transform_3(%arg0: i32) -> (i32, i32, i32, i32) {
    %c0_i32 = arith.constant 0 : i32
    %c0_i32_0 = arith.constant 0 : i32
    %c0_i32_1 = arith.constant 0 : i32
    %c0_i32_2 = arith.constant 0 : i32
    return %arg0, %c0_i32, %c0_i32_0, %c0_i32_1 : i32, i32, i32, i32
  }
}

module attributes {stable_mosaic.version = 11 : i64} {
  func.func @_double_conv_kernel(%arg0: i32, %arg1: memref<1x16x16x2xbf16, #tpu.memory_space<vmem>>, %arg2: memref<1x16x16x2xbf16, #tpu.memory_space<vmem>>, %arg3: memref<3x3x2x8xbf16, #tpu.memory_space<vmem>>, %arg4: memref<3x3x2x8xbf16, #tpu.memory_space<vmem>>, %arg5: memref<1x8xf32, #tpu.memory_space<vmem>>, %arg6: memref<1x8xf32, #tpu.memory_space<vmem>>, %arg7: memref<3x3x8x8xbf16, #tpu.memory_space<vmem>>, %arg8: memref<1x8xf32, #tpu.memory_space<vmem>>, %arg9: memref<1x8xf32, #tpu.memory_space<vmem>>, %arg10: memref<1x16x16x8xf32, #tpu.memory_space<vmem>>, %arg11: memref<18x18x2xf32, #tpu.memory_space<vmem>>, %arg12: memref<18x18x2xf32, #tpu.memory_space<vmem>>, %arg13: memref<18x18x8xf32, #tpu.memory_space<vmem>>) attributes {dimension_semantics = [#tpu.dimension_semantics<parallel>], iteration_bounds = array<i64: 2>, scalar_prefetch = 0 : i64, scratch_operands = 3 : i64, tpu.core_type = #tpu.core_type<tc>, window_params = [{transform_indices = @transform_0, window_bounds = array<i64: 1, 16, 16, 2>}, {transform_indices = @transform_1, window_bounds = array<i64: 1, 16, 16, 2>}, {pipeline_mode = #tpu.pipeline_mode<synchronous>, transform_indices = @transform_2, window_bounds = array<i64: 3, 3, 2, 8>}, {pipeline_mode = #tpu.pipeline_mode<synchronous>, transform_indices = @transform_3, window_bounds = array<i64: 3, 3, 2, 8>}, {pipeline_mode = #tpu.pipeline_mode<synchronous>, transform_indices = @transform_4, window_bounds = array<i64: 1, 8>}, {pipeline_mode = #tpu.pipeline_mode<synchronous>, transform_indices = @transform_5, window_bounds = array<i64: 1, 8>}, {pipeline_mode = #tpu.pipeline_mode<synchronous>, transform_indices = @transform_6, window_bounds = array<i64: 3, 3, 8, 8>}, {pipeline_mode = #tpu.pipeline_mode<synchronous>, transform_indices = @transform_7, window_bounds = array<i64: 1, 8>}, {pipeline_mode = #tpu.pipeline_mode<synchronous>, transform_indices = @transform_8, window_bounds = array<i64: 1, 8>}, {transform_indices = @transform_9, window_bounds = array<i64: 1, 16, 16, 8>}]} {
    %cst = arith.constant 0.000000e+00 : f32
    %0 = vector.broadcast %cst : f32 to vector<18x18x2xf32>
    %c0 = arith.constant 0 : index
    %c0_0 = arith.constant 0 : index
    %c0_1 = arith.constant 0 : index
    %1 = vector.load %arg11[%c0, %c0_0, %c0_1] : memref<18x18x2xf32, #tpu.memory_space<vmem>>, vector<18x18x2xf32>
    tpu.vector_store %arg11[%c0, %c0_0, %c0_1], %0 {strides = array<i32>} : memref<18x18x2xf32, #tpu.memory_space<vmem>>, vector<18x18x2xf32>,
    %cst_2 = arith.constant 0.000000e+00 : f32
    %2 = vector.broadcast %cst_2 : f32 to vector<18x18x2xf32>
    %c0_3 = arith.constant 0 : index
    %c0_4 = arith.constant 0 : index
    %c0_5 = arith.constant 0 : index
    %3 = vector.load %arg12[%c0_3, %c0_4, %c0_5] : memref<18x18x2xf32, #tpu.memory_space<vmem>>, vector<18x18x2xf32>
    tpu.vector_store %arg12[%c0_3, %c0_4, %c0_5], %2 {strides = array<i32>} : memref<18x18x2xf32, #tpu.memory_space<vmem>>, vector<18x18x2xf32>,
    %cst_6 = arith.constant 0.000000e+00 : f32
    %4 = vector.broadcast %cst_6 : f32 to vector<18x18x8xf32>
    %c0_7 = arith.constant 0 : index
    %c0_8 = arith.constant 0 : index
    %c0_9 = arith.constant 0 : index
    %5 = vector.load %arg13[%c0_7, %c0_8, %c0_9] : memref<18x18x8xf32, #tpu.memory_space<vmem>>, vector<18x18x8xf32>
    tpu.vector_store %arg13[%c0_7, %c0_8, %c0_9], %4 {strides = array<i32>} : memref<18x18x8xf32, #tpu.memory_space<vmem>>, vector<18x18x8xf32>,
    %c0_10 = arith.constant 0 : index
    %c0_11 = arith.constant 0 : index
    %c0_12 = arith.constant 0 : index
    %c0_13 = arith.constant 0 : index
    %6 = vector.load %arg1[%c0_10, %c0_11, %c0_12, %c0_13] : memref<1x16x16x2xbf16, #tpu.memory_space<vmem>>, vector<1x16x16x2xbf16>
    %7 = vector.shape_cast %6 : vector<1x16x16x2xbf16> to vector<16x16x2xbf16>
    %8 = arith.extf %7 : vector<16x16x2xbf16> to vector<16x16x2xf32>
    %c1 = arith.constant 1 : index
    %c1_14 = arith.constant 1 : index
    %c0_15 = arith.constant 0 : index
    %9 = vector.load %arg11[%c1, %c1_14, %c0_15] : memref<18x18x2xf32, #tpu.memory_space<vmem>>, vector<16x16x2xf32>
    tpu.vector_store %arg11[%c1, %c1_14, %c0_15], %8 {strides = array<i32>} : memref<18x18x2xf32, #tpu.memory_space<vmem>>, vector<16x16x2xf32>,
    %c0_16 = arith.constant 0 : index
    %c0_17 = arith.constant 0 : index
    %c0_18 = arith.constant 0 : index
    %c0_19 = arith.constant 0 : index
    %10 = vector.load %arg2[%c0_16, %c0_17, %c0_18, %c0_19] : memref<1x16x16x2xbf16, #tpu.memory_space<vmem>>, vector<1x16x16x2xbf16>
    %11 = vector.shape_cast %10 : vector<1x16x16x2xbf16> to vector<16x16x2xbf16>
    %12 = arith.extf %11 : vector<16x16x2xbf16> to vector<16x16x2xf32>
    %c1_20 = arith.constant 1 : index
    %c1_21 = arith.constant 1 : index
    %c0_22 = arith.constant 0 : index
    %13 = vector.load %arg12[%c1_20, %c1_21, %c0_22] : memref<18x18x2xf32, #tpu.memory_space<vmem>>, vector<16x16x2xf32>
    tpu.vector_store %arg12[%c1_20, %c1_21, %c0_22], %12 {strides = array<i32>} : memref<18x18x2xf32, #tpu.memory_space<vmem>>, vector<16x16x2xf32>,
    %cst_23 = arith.constant 0.000000e+00 : f32
    %14 = vector.broadcast %cst_23 : f32 to vector<256x8xf32>
    %c0_24 = arith.constant 0 : index
    %c0_25 = arith.constant 0 : index
    %c0_26 = arith.constant 0 : index
    %15 = vector.load %arg11[%c0_24, %c0_25, %c0_26] : memref<18x18x2xf32, #tpu.memory_space<vmem>>, vector<16x16x2xf32>
    %16 = vector.shape_cast %15 : vector<16x16x2xf32> to vector<256x2xf32>
    %c0_27 = arith.constant 0 : index
    %c0_28 = arith.constant 0 : index
    %c0_29 = arith.constant 0 : index
    %17 = vector.load %arg12[%c0_27, %c0_28, %c0_29] : memref<18x18x2xf32, #tpu.memory_space<vmem>>, vector<16x16x2xf32>
    %18 = vector.shape_cast %17 : vector<16x16x2xf32> to vector<256x2xf32>
    %19 = arith.truncf %16 : vector<256x2xf32> to vector<256x2xbf16>
    %c0_30 = arith.constant 0 : index
    %c0_31 = arith.constant 0 : index
    %c0_32 = arith.constant 0 : index
    %c0_33 = arith.constant 0 : index
    %20 = vector.load %arg3[%c0_30, %c0_31, %c0_32, %c0_33] : memref<3x3x2x8xbf16, #tpu.memory_space<vmem>>, vector<1x1x2x8xbf16>
    %21 = vector.shape_cast %20 : vector<1x1x2x8xbf16> to vector<2x8xbf16>
    %cst_34 = arith.constant dense<0.000000e+00> : vector<256x8xf32>
    %22 = tpu.matmul %19, %21, %cst_34 {dimension_numbers = #tpu.dot_dimension_numbers<[1], [0], [0], [1], [0, 0, 1, 1], [], []>} : vector<256x2xbf16>, vector<2x8xbf16>, vector<256x8xf32> -> vector<256x8xf32>
    %23 = arith.addf %14, %22 : vector<256x8xf32>
    %24 = arith.truncf %18 : vector<256x2xf32> to vector<256x2xbf16>
    %c0_35 = arith.constant 0 : index
    %c0_36 = arith.constant 0 : index
    %c0_37 = arith.constant 0 : index
    %c0_38 = arith.constant 0 : index
    %25 = vector.load %arg4[%c0_35, %c0_36, %c0_37, %c0_38] : memref<3x3x2x8xbf16, #tpu.memory_space<vmem>>, vector<1x1x2x8xbf16>
    %26 = vector.shape_cast %25 : vector<1x1x2x8xbf16> to vector<2x8xbf16>
    %cst_39 = arith.constant dense<0.000000e+00> : vector<256x8xf32>
    %27 = tpu.matmul %24, %26, %cst_39 {dimension_numbers = #tpu.dot_dimension_numbers<[1], [0], [0], [1], [0, 0, 1, 1], [], []>} : vector<256x2xbf16>, vector<2x8xbf16>, vector<256x8xf32> -> vector<256x8xf32>
    %28 = arith.addf %23, %27 : vector<256x8xf32>
    %c0_40 = arith.constant 0 : index
    %c1_41 = arith.constant 1 : index
    %c0_42 = arith.constant 0 : index
    %29 = vector.load %arg11[%c0_40, %c1_41, %c0_42] : memref<18x18x2xf32, #tpu.memory_space<vmem>>, vector<16x16x2xf32>
    %30 = vector.shape_cast %29 : vector<16x16x2xf32> to vector<256x2xf32>
    %c0_43 = arith.constant 0 : index
    %c1_44 = arith.constant 1 : index
    %c0_45 = arith.constant 0 : index
    %31 = vector.load %arg12[%c0_43, %c1_44, %c0_45] : memref<18x18x2xf32, #tpu.memory_space<vmem>>, vector<16x16x2xf32>
    %32 = vector.shape_cast %31 : vector<16x16x2xf32> to vector<256x2xf32>
    %33 = arith.truncf %30 : vector<256x2xf32> to vector<256x2xbf16>
    %c0_46 = arith.constant 0 : index
    %c1_47 = arith.constant 1 : index
    %c0_48 = arith.constant 0 : index
    %c0_49 = arith.constant 0 : index
    %34 = vector.load %arg3[%c0_46, %c1_47, %c0_48, %c0_49] : memref<3x3x2x8xbf16, #tpu.memory_space<vmem>>, vector<1x1x2x8xbf16>
    %35 = vector.shape_cast %34 : vector<1x1x2x8xbf16> to vector<2x8xbf16>
    %cst_50 = arith.constant dense<0.000000e+00> : vector<256x8xf32>
    %36 = tpu.matmul %33, %35, %cst_50 {dimension_numbers = #tpu.dot_dimension_numbers<[1], [0], [0], [1], [0, 0, 1, 1], [], []>} : vector<256x2xbf16>, vector<2x8xbf16>, vector<256x8xf32> -> vector<256x8xf32>
    %37 = arith.addf %28, %36 : vector<256x8xf32>
    %38 = arith.truncf %32 : vector<256x2xf32> to vector<256x2xbf16>
    %c0_51 = arith.constant 0 : index
    %c1_52 = arith.constant 1 : index
    %c0_53 = arith.constant 0 : index
    %c0_54 = arith.constant 0 : index
    %39 = vector.load %arg4[%c0_51, %c1_52, %c0_53, %c0_54] : memref<3x3x2x8xbf16, #tpu.memory_space<vmem>>, vector<1x1x2x8xbf16>
    %40 = vector.shape_cast %39 : vector<1x1x2x8xbf16> to vector<2x8xbf16>
    %cst_55 = arith.constant dense<0.000000e+00> : vector<256x8xf32>
    %41 = tpu.matmul %38, %40, %cst_55 {dimension_numbers = #tpu.dot_dimension_numbers<[1], [0], [0], [1], [0, 0, 1, 1], [], []>} : vector<256x2xbf16>, vector<2x8xbf16>, vector<256x8xf32> -> vector<256x8xf32>
    %42 = arith.addf %37, %41 : vector<256x8xf32>
    %c0_56 = arith.constant 0 : index
    %c2 = arith.constant 2 : index
    %c0_57 = arith.constant 0 : index
    %43 = vector.load %arg11[%c0_56, %c2, %c0_57] : memref<18x18x2xf32, #tpu.memory_space<vmem>>, vector<16x16x2xf32>
    %44 = vector.shape_cast %43 : vector<16x16x2xf32> to vector<256x2xf32>
    %c0_58 = arith.constant 0 : index
    %c2_59 = arith.constant 2 : index
    %c0_60 = arith.constant 0 : index
    %45 = vector.load %arg12[%c0_58, %c2_59, %c0_60] : memref<18x18x2xf32, #tpu.memory_space<vmem>>, vector<16x16x2xf32>
    %46 = vector.shape_cast %45 : vector<16x16x2xf32> to vector<256x2xf32>
    %47 = arith.truncf %44 : vector<256x2xf32> to vector<256x2xbf16>
    %c0_61 = arith.constant 0 : index
    %c2_62 = arith.constant 2 : index
    %c0_63 = arith.constant 0 : index
    %c0_64 = arith.constant 0 : index
    %48 = vector.load %arg3[%c0_61, %c2_62, %c0_63, %c0_64] : memref<3x3x2x8xbf16, #tpu.memory_space<vmem>>, vector<1x1x2x8xbf16>
    %49 = vector.shape_cast %48 : vector<1x1x2x8xbf16> to vector<2x8xbf16>
    %cst_65 = arith.constant dense<0.000000e+00> : vector<256x8xf32>
    %50 = tpu.matmul %47, %49, %cst_65 {dimension_numbers = #tpu.dot_dimension_numbers<[1], [0], [0], [1], [0, 0, 1, 1], [], []>} : vector<256x2xbf16>, vector<2x8xbf16>, vector<256x8xf32> -> vector<256x8xf32>
    %51 = arith.addf %42, %50 : vector<256x8xf32>
    %52 = arith.truncf %46 : vector<256x2xf32> to vector<256x2xbf16>
    %c0_66 = arith.constant 0 : index
    %c2_67 = arith.constant 2 : index
    %c0_68 = arith.constant 0 : index
    %c0_69 = arith.constant 0 : index
    %53 = vector.load %arg4[%c0_66, %c2_67, %c0_68, %c0_69] : memref<3x3x2x8xbf16, #tpu.memory_space<vmem>>, vector<1x1x2x8xbf16>
    %54 = vector.shape_cast %53 : vector<1x1x2x8xbf16> to vector<2x8xbf16>
    %cst_70 = arith.constant dense<0.000000e+00> : vector<256x8xf32>
    %55 = tpu.matmul %52, %54, %cst_70 {dimension_numbers = #tpu.dot_dimension_numbers<[1], [0], [0], [1], [0, 0, 1, 1], [], []>} : vector<256x2xbf16>, vector<2x8xbf16>, vector<256x8xf32> -> vector<256x8xf32>
    %56 = arith.addf %51, %55 : vector<256x8xf32>
    %c1_71 = arith.constant 1 : index
    %c0_72 = arith.constant 0 : index
    %c0_73 = arith.constant 0 : index
    %57 = vector.load %arg11[%c1_71, %c0_72, %c0_73] : memref<18x18x2xf32, #tpu.memory_space<vmem>>, vector<16x16x2xf32>
    %58 = vector.shape_cast %57 : vector<16x16x2xf32> to vector<256x2xf32>
    %c1_74 = arith.constant 1 : index
    %c0_75 = arith.constant 0 : index
    %c0_76 = arith.constant 0 : index
    %59 = vector.load %arg12[%c1_74, %c0_75, %c0_76] : memref<18x18x2xf32, #tpu.memory_space<vmem>>, vector<16x16x2xf32>
    %60 = vector.shape_cast %59 : vector<16x16x2xf32> to vector<256x2xf32>
    %61 = arith.truncf %58 : vector<256x2xf32> to vector<256x2xbf16>
    %c1_77 = arith.constant 1 : index
    %c0_78 = arith.constant 0 : index
    %c0_79 = arith.constant 0 : index
    %c0_80 = arith.constant 0 : index
    %62 = vector.load %arg3[%c1_77, %c0_78, %c0_79, %c0_80] : memref<3x3x2x8xbf16, #tpu.memory_space<vmem>>, vector<1x1x2x8xbf16>
    %63 = vector.shape_cast %62 : vector<1x1x2x8xbf16> to vector<2x8xbf16>
    %cst_81 = arith.constant dense<0.000000e+00> : vector<256x8xf32>
    %64 = tpu.matmul %61, %63, %cst_81 {dimension_numbers = #tpu.dot_dimension_numbers<[1], [0], [0], [1], [0, 0, 1, 1], [], []>} : vector<256x2xbf16>, vector<2x8xbf16>, vector<256x8xf32> -> vector<256x8xf32>
    %65 = arith.addf %56, %64 : vector<256x8xf32>
    %66 = arith.truncf %60 : vector<256x2xf32> to vector<256x2xbf16>
    %c1_82 = arith.constant 1 : index
    %c0_83 = arith.constant 0 : index
    %c0_84 = arith.constant 0 : index
    %c0_85 = arith.constant 0 : index
    %67 = vector.load %arg4[%c1_82, %c0_83, %c0_84, %c0_85] : memref<3x3x2x8xbf16, #tpu.memory_space<vmem>>, vector<1x1x2x8xbf16>
    %68 = vector.shape_cast %67 : vector<1x1x2x8xbf16> to vector<2x8xbf16>
    %cst_86 = arith.constant dense<0.000000e+00> : vector<256x8xf32>
    %69 = tpu.matmul %66, %68, %cst_86 {dimension_numbers = #tpu.dot_dimension_numbers<[1], [0], [0], [1], [0, 0, 1, 1], [], []>} : vector<256x2xbf16>, vector<2x8xbf16>, vector<256x8xf32> -> vector<256x8xf32>
    %70 = arith.addf %65, %69 : vector<256x8xf32>
    %c1_87 = arith.constant 1 : index
    %c1_88 = arith.constant 1 : index
    %c0_89 = arith.constant 0 : index
    %71 = vector.load %arg11[%c1_87, %c1_88, %c0_89] : memref<18x18x2xf32, #tpu.memory_space<vmem>>, vector<16x16x2xf32>
    %72 = vector.shape_cast %71 : vector<16x16x2xf32> to vector<256x2xf32>
    %c1_90 = arith.constant 1 : index
    %c1_91 = arith.constant 1 : index
    %c0_92 = arith.constant 0 : index
    %73 = vector.load %arg12[%c1_90, %c1_91, %c0_92] : memref<18x18x2xf32, #tpu.memory_space<vmem>>, vector<16x16x2xf32>
    %74 = vector.shape_cast %73 : vector<16x16x2xf32> to vector<256x2xf32>
    %75 = arith.truncf %72 : vector<256x2xf32> to vector<256x2xbf16>
    %c1_93 = arith.constant 1 : index
    %c1_94 = arith.constant 1 : index
    %c0_95 = arith.constant 0 : index
    %c0_96 = arith.constant 0 : index
    %76 = vector.load %arg3[%c1_93, %c1_94, %c0_95, %c0_96] : memref<3x3x2x8xbf16, #tpu.memory_space<vmem>>, vector<1x1x2x8xbf16>
    %77 = vector.shape_cast %76 : vector<1x1x2x8xbf16> to vector<2x8xbf16>
    %cst_97 = arith.constant dense<0.000000e+00> : vector<256x8xf32>
    %78 = tpu.matmul %75, %77, %cst_97 {dimension_numbers = #tpu.dot_dimension_numbers<[1], [0], [0], [1], [0, 0, 1, 1], [], []>} : vector<256x2xbf16>, vector<2x8xbf16>, vector<256x8xf32> -> vector<256x8xf32>
    %79 = arith.addf %70, %78 : vector<256x8xf32>
    %80 = arith.truncf %74 : vector<256x2xf32> to vector<256x2xbf16>
    %c1_98 = arith.constant 1 : index
    %c1_99 = arith.constant 1 : index
    %c0_100 = arith.constant 0 : index
    %c0_101 = arith.constant 0 : index
    %81 = vector.load %arg4[%c1_98, %c1_99, %c0_100, %c0_101] : memref<3x3x2x8xbf16, #tpu.memory_space<vmem>>, vector<1x1x2x8xbf16>
    %82 = vector.shape_cast %81 : vector<1x1x2x8xbf16> to vector<2x8xbf16>
    %cst_102 = arith.constant dense<0.000000e+00> : vector<256x8xf32>
    %83 = tpu.matmul %80, %82, %cst_102 {dimension_numbers = #tpu.dot_dimension_numbers<[1], [0], [0], [1], [0, 0, 1, 1], [], []>} : vector<256x2xbf16>, vector<2x8xbf16>, vector<256x8xf32> -> vector<256x8xf32>
    %84 = arith.addf %79, %83 : vector<256x8xf32>
    %c1_103 = arith.constant 1 : index
    %c2_104 = arith.constant 2 : index
    %c0_105 = arith.constant 0 : index
    %85 = vector.load %arg11[%c1_103, %c2_104, %c0_105] : memref<18x18x2xf32, #tpu.memory_space<vmem>>, vector<16x16x2xf32>
    %86 = vector.shape_cast %85 : vector<16x16x2xf32> to vector<256x2xf32>
    %c1_106 = arith.constant 1 : index
    %c2_107 = arith.constant 2 : index
    %c0_108 = arith.constant 0 : index
    %87 = vector.load %arg12[%c1_106, %c2_107, %c0_108] : memref<18x18x2xf32, #tpu.memory_space<vmem>>, vector<16x16x2xf32>
    %88 = vector.shape_cast %87 : vector<16x16x2xf32> to vector<256x2xf32>
    %89 = arith.truncf %86 : vector<256x2xf32> to vector<256x2xbf16>
    %c1_109 = arith.constant 1 : index
    %c2_110 = arith.constant 2 : index
    %c0_111 = arith.constant 0 : index
    %c0_112 = arith.constant 0 : index
    %90 = vector.load %arg3[%c1_109, %c2_110, %c0_111, %c0_112] : memref<3x3x2x8xbf16, #tpu.memory_space<vmem>>, vector<1x1x2x8xbf16>
    %91 = vector.shape_cast %90 : vector<1x1x2x8xbf16> to vector<2x8xbf16>
    %cst_113 = arith.constant dense<0.000000e+00> : vector<256x8xf32>
    %92 = tpu.matmul %89, %91, %cst_113 {dimension_numbers = #tpu.dot_dimension_numbers<[1], [0], [0], [1], [0, 0, 1, 1], [], []>} : vector<256x2xbf16>, vector<2x8xbf16>, vector<256x8xf32> -> vector<256x8xf32>
    %93 = arith.addf %84, %92 : vector<256x8xf32>
    %94 = arith.truncf %88 : vector<256x2xf32> to vector<256x2xbf16>
    %c1_114 = arith.constant 1 : index
    %c2_115 = arith.constant 2 : index
    %c0_116 = arith.constant 0 : index
    %c0_117 = arith.constant 0 : index
    %95 = vector.load %arg4[%c1_114, %c2_115, %c0_116, %c0_117] : memref<3x3x2x8xbf16, #tpu.memory_space<vmem>>, vector<1x1x2x8xbf16>
    %96 = vector.shape_cast %95 : vector<1x1x2x8xbf16> to vector<2x8xbf16>
    %cst_118 = arith.constant dense<0.000000e+00> : vector<256x8xf32>
    %97 = tpu.matmul %94, %96, %cst_118 {dimension_numbers = #tpu.dot_dimension_numbers<[1], [0], [0], [1], [0, 0, 1, 1], [], []>} : vector<256x2xbf16>, vector<2x8xbf16>, vector<256x8xf32> -> vector<256x8xf32>
    %98 = arith.addf %93, %97 : vector<256x8xf32>
    %c2_119 = arith.constant 2 : index
    %c0_120 = arith.constant 0 : index
    %c0_121 = arith.constant 0 : index
    %99 = vector.load %arg11[%c2_119, %c0_120, %c0_121] : memref<18x18x2xf32, #tpu.memory_space<vmem>>, vector<16x16x2xf32>
    %100 = vector.shape_cast %99 : vector<16x16x2xf32> to vector<256x2xf32>
    %c2_122 = arith.constant 2 : index
    %c0_123 = arith.constant 0 : index
    %c0_124 = arith.constant 0 : index
    %101 = vector.load %arg12[%c2_122, %c0_123, %c0_124] : memref<18x18x2xf32, #tpu.memory_space<vmem>>, vector<16x16x2xf32>
    %102 = vector.shape_cast %101 : vector<16x16x2xf32> to vector<256x2xf32>
    %103 = arith.truncf %100 : vector<256x2xf32> to vector<256x2xbf16>
    %c2_125 = arith.constant 2 : index
    %c0_126 = arith.constant 0 : index
    %c0_127 = arith.constant 0 : index
    %c0_128 = arith.constant 0 : index
    %104 = vector.load %arg3[%c2_125, %c0_126, %c0_127, %c0_128] : memref<3x3x2x8xbf16, #tpu.memory_space<vmem>>, vector<1x1x2x8xbf16>
    %105 = vector.shape_cast %104 : vector<1x1x2x8xbf16> to vector<2x8xbf16>
    %cst_129 = arith.constant dense<0.000000e+00> : vector<256x8xf32>
    %106 = tpu.matmul %103, %105, %cst_129 {dimension_numbers = #tpu.dot_dimension_numbers<[1], [0], [0], [1], [0, 0, 1, 1], [], []>} : vector<256x2xbf16>, vector<2x8xbf16>, vector<256x8xf32> -> vector<256x8xf32>
    %107 = arith.addf %98, %106 : vector<256x8xf32>
    %108 = arith.truncf %102 : vector<256x2xf32> to vector<256x2xbf16>
    %c2_130 = arith.constant 2 : index
    %c0_131 = arith.constant 0 : index
    %c0_132 = arith.constant 0 : index
    %c0_133 = arith.constant 0 : index
    %109 = vector.load %arg4[%c2_130, %c0_131, %c0_132, %c0_133] : memref<3x3x2x8xbf16, #tpu.memory_space<vmem>>, vector<1x1x2x8xbf16>
    %110 = vector.shape_cast %109 : vector<1x1x2x8xbf16> to vector<2x8xbf16>
    %cst_134 = arith.constant dense<0.000000e+00> : vector<256x8xf32>
    %111 = tpu.matmul %108, %110, %cst_134 {dimension_numbers = #tpu.dot_dimension_numbers<[1], [0], [0], [1], [0, 0, 1, 1], [], []>} : vector<256x2xbf16>, vector<2x8xbf16>, vector<256x8xf32> -> vector<256x8xf32>
    %112 = arith.addf %107, %111 : vector<256x8xf32>
    %c2_135 = arith.constant 2 : index
    %c1_136 = arith.constant 1 : index
    %c0_137 = arith.constant 0 : index
    %113 = vector.load %arg11[%c2_135, %c1_136, %c0_137] : memref<18x18x2xf32, #tpu.memory_space<vmem>>, vector<16x16x2xf32>
    %114 = vector.shape_cast %113 : vector<16x16x2xf32> to vector<256x2xf32>
    %c2_138 = arith.constant 2 : index
    %c1_139 = arith.constant 1 : index
    %c0_140 = arith.constant 0 : index
    %115 = vector.load %arg12[%c2_138, %c1_139, %c0_140] : memref<18x18x2xf32, #tpu.memory_space<vmem>>, vector<16x16x2xf32>
    %116 = vector.shape_cast %115 : vector<16x16x2xf32> to vector<256x2xf32>
    %117 = arith.truncf %114 : vector<256x2xf32> to vector<256x2xbf16>
    %c2_141 = arith.constant 2 : index
    %c1_142 = arith.constant 1 : index
    %c0_143 = arith.constant 0 : index
    %c0_144 = arith.constant 0 : index
    %118 = vector.load %arg3[%c2_141, %c1_142, %c0_143, %c0_144] : memref<3x3x2x8xbf16, #tpu.memory_space<vmem>>, vector<1x1x2x8xbf16>
    %119 = vector.shape_cast %118 : vector<1x1x2x8xbf16> to vector<2x8xbf16>
    %cst_145 = arith.constant dense<0.000000e+00> : vector<256x8xf32>
    %120 = tpu.matmul %117, %119, %cst_145 {dimension_numbers = #tpu.dot_dimension_numbers<[1], [0], [0], [1], [0, 0, 1, 1], [], []>} : vector<256x2xbf16>, vector<2x8xbf16>, vector<256x8xf32> -> vector<256x8xf32>
    %121 = arith.addf %112, %120 : vector<256x8xf32>
    %122 = arith.truncf %116 : vector<256x2xf32> to vector<256x2xbf16>
    %c2_146 = arith.constant 2 : index
    %c1_147 = arith.constant 1 : index
    %c0_148 = arith.constant 0 : index
    %c0_149 = arith.constant 0 : index
    %123 = vector.load %arg4[%c2_146, %c1_147, %c0_148, %c0_149] : memref<3x3x2x8xbf16, #tpu.memory_space<vmem>>, vector<1x1x2x8xbf16>
    %124 = vector.shape_cast %123 : vector<1x1x2x8xbf16> to vector<2x8xbf16>
    %cst_150 = arith.constant dense<0.000000e+00> : vector<256x8xf32>
    %125 = tpu.matmul %122, %124, %cst_150 {dimension_numbers = #tpu.dot_dimension_numbers<[1], [0], [0], [1], [0, 0, 1, 1], [], []>} : vector<256x2xbf16>, vector<2x8xbf16>, vector<256x8xf32> -> vector<256x8xf32>
    %126 = arith.addf %121, %125 : vector<256x8xf32>
    %c2_151 = arith.constant 2 : index
    %c2_152 = arith.constant 2 : index
    %c0_153 = arith.constant 0 : index
    %127 = vector.load %arg11[%c2_151, %c2_152, %c0_153] : memref<18x18x2xf32, #tpu.memory_space<vmem>>, vector<16x16x2xf32>
    %128 = vector.shape_cast %127 : vector<16x16x2xf32> to vector<256x2xf32>
    %c2_154 = arith.constant 2 : index
    %c2_155 = arith.constant 2 : index
    %c0_156 = arith.constant 0 : index
    %129 = vector.load %arg12[%c2_154, %c2_155, %c0_156] : memref<18x18x2xf32, #tpu.memory_space<vmem>>, vector<16x16x2xf32>
    %130 = vector.shape_cast %129 : vector<16x16x2xf32> to vector<256x2xf32>
    %131 = arith.truncf %128 : vector<256x2xf32> to vector<256x2xbf16>
    %c2_157 = arith.constant 2 : index
    %c2_158 = arith.constant 2 : index
    %c0_159 = arith.constant 0 : index
    %c0_160 = arith.constant 0 : index
    %132 = vector.load %arg3[%c2_157, %c2_158, %c0_159, %c0_160] : memref<3x3x2x8xbf16, #tpu.memory_space<vmem>>, vector<1x1x2x8xbf16>
    %133 = vector.shape_cast %132 : vector<1x1x2x8xbf16> to vector<2x8xbf16>
    %cst_161 = arith.constant dense<0.000000e+00> : vector<256x8xf32>
    %134 = tpu.matmul %131, %133, %cst_161 {dimension_numbers = #tpu.dot_dimension_numbers<[1], [0], [0], [1], [0, 0, 1, 1], [], []>} : vector<256x2xbf16>, vector<2x8xbf16>, vector<256x8xf32> -> vector<256x8xf32>
    %135 = arith.addf %126, %134 : vector<256x8xf32>
    %136 = arith.truncf %130 : vector<256x2xf32> to vector<256x2xbf16>
    %c2_162 = arith.constant 2 : index
    %c2_163 = arith.constant 2 : index
    %c0_164 = arith.constant 0 : index
    %c0_165 = arith.constant 0 : index
    %137 = vector.load %arg4[%c2_162, %c2_163, %c0_164, %c0_165] : memref<3x3x2x8xbf16, #tpu.memory_space<vmem>>, vector<1x1x2x8xbf16>
    %138 = vector.shape_cast %137 : vector<1x1x2x8xbf16> to vector<2x8xbf16>
    %cst_166 = arith.constant dense<0.000000e+00> : vector<256x8xf32>
    %139 = tpu.matmul %136, %138, %cst_166 {dimension_numbers = #tpu.dot_dimension_numbers<[1], [0], [0], [1], [0, 0, 1, 1], [], []>} : vector<256x2xbf16>, vector<2x8xbf16>, vector<256x8xf32> -> vector<256x8xf32>
    %140 = arith.addf %135, %139 : vector<256x8xf32>
    %c0_167 = arith.constant 0 : index
    %c0_168 = arith.constant 0 : index
    %141 = vector.load %arg5[%c0_167, %c0_168] : memref<1x8xf32, #tpu.memory_space<vmem>>, vector<1x8xf32>
    %142 = vector.broadcast %141 : vector<1x8xf32> to vector<256x8xf32>
    %143 = arith.mulf %140, %142 : vector<256x8xf32>
    %c0_169 = arith.constant 0 : index
    %c0_170 = arith.constant 0 : index
    %144 = vector.load %arg6[%c0_169, %c0_170] : memref<1x8xf32, #tpu.memory_space<vmem>>, vector<1x8xf32>
    %145 = vector.broadcast %144 : vector<1x8xf32> to vector<256x8xf32>
    %146 = arith.addf %143, %145 : vector<256x8xf32>
    %cst_171 = arith.constant 0.000000e+00 : f32
    %147 = vector.broadcast %cst_171 : f32 to vector<256x8xf32>
    %148 = arith.maximumf %146, %147 : vector<256x8xf32>
    %149 = vector.shape_cast %148 : vector<256x8xf32> to vector<16x16x8xf32>
    %150 = arith.truncf %149 : vector<16x16x8xf32> to vector<16x16x8xbf16>
    %151 = arith.extf %150 : vector<16x16x8xbf16> to vector<16x16x8xf32>
    %c1_172 = arith.constant 1 : index
    %c1_173 = arith.constant 1 : index
    %c0_174 = arith.constant 0 : index
    %152 = vector.load %arg13[%c1_172, %c1_173, %c0_174] : memref<18x18x8xf32, #tpu.memory_space<vmem>>, vector<16x16x8xf32>
    tpu.vector_store %arg13[%c1_172, %c1_173, %c0_174], %151 {strides = array<i32>} : memref<18x18x8xf32, #tpu.memory_space<vmem>>, vector<16x16x8xf32>,
    %cst_175 = arith.constant 0.000000e+00 : f32
    %153 = vector.broadcast %cst_175 : f32 to vector<256x8xf32>
    %c0_176 = arith.constant 0 : index
    %c0_177 = arith.constant 0 : index
    %c0_178 = arith.constant 0 : index
    %154 = vector.load %arg13[%c0_176, %c0_177, %c0_178] : memref<18x18x8xf32, #tpu.memory_space<vmem>>, vector<16x16x8xf32>
    %155 = vector.shape_cast %154 : vector<16x16x8xf32> to vector<256x8xf32>
    %156 = arith.truncf %155 : vector<256x8xf32> to vector<256x8xbf16>
    %c0_179 = arith.constant 0 : index
    %c0_180 = arith.constant 0 : index
    %c0_181 = arith.constant 0 : index
    %c0_182 = arith.constant 0 : index
    %157 = vector.load %arg7[%c0_179, %c0_180, %c0_181, %c0_182] : memref<3x3x8x8xbf16, #tpu.memory_space<vmem>>, vector<1x1x8x8xbf16>
    %158 = vector.shape_cast %157 : vector<1x1x8x8xbf16> to vector<8x8xbf16>
    %cst_183 = arith.constant dense<0.000000e+00> : vector<256x8xf32>
    %159 = tpu.matmul %156, %158, %cst_183 {dimension_numbers = #tpu.dot_dimension_numbers<[1], [0], [0], [1], [0, 0, 1, 1], [], []>} : vector<256x8xbf16>, vector<8x8xbf16>, vector<256x8xf32> -> vector<256x8xf32>
    %160 = arith.addf %153, %159 : vector<256x8xf32>
    %c0_184 = arith.constant 0 : index
    %c1_185 = arith.constant 1 : index
    %c0_186 = arith.constant 0 : index
    %161 = vector.load %arg13[%c0_184, %c1_185, %c0_186] : memref<18x18x8xf32, #tpu.memory_space<vmem>>, vector<16x16x8xf32>
    %162 = vector.shape_cast %161 : vector<16x16x8xf32> to vector<256x8xf32>
    %163 = arith.truncf %162 : vector<256x8xf32> to vector<256x8xbf16>
    %c0_187 = arith.constant 0 : index
    %c1_188 = arith.constant 1 : index
    %c0_189 = arith.constant 0 : index
    %c0_190 = arith.constant 0 : index
    %164 = vector.load %arg7[%c0_187, %c1_188, %c0_189, %c0_190] : memref<3x3x8x8xbf16, #tpu.memory_space<vmem>>, vector<1x1x8x8xbf16>
    %165 = vector.shape_cast %164 : vector<1x1x8x8xbf16> to vector<8x8xbf16>
    %cst_191 = arith.constant dense<0.000000e+00> : vector<256x8xf32>
    %166 = tpu.matmul %163, %165, %cst_191 {dimension_numbers = #tpu.dot_dimension_numbers<[1], [0], [0], [1], [0, 0, 1, 1], [], []>} : vector<256x8xbf16>, vector<8x8xbf16>, vector<256x8xf32> -> vector<256x8xf32>
    %167 = arith.addf %160, %166 : vector<256x8xf32>
    %c0_192 = arith.constant 0 : index
    %c2_193 = arith.constant 2 : index
    %c0_194 = arith.constant 0 : index
    %168 = vector.load %arg13[%c0_192, %c2_193, %c0_194] : memref<18x18x8xf32, #tpu.memory_space<vmem>>, vector<16x16x8xf32>
    %169 = vector.shape_cast %168 : vector<16x16x8xf32> to vector<256x8xf32>
    %170 = arith.truncf %169 : vector<256x8xf32> to vector<256x8xbf16>
    %c0_195 = arith.constant 0 : index
    %c2_196 = arith.constant 2 : index
    %c0_197 = arith.constant 0 : index
    %c0_198 = arith.constant 0 : index
    %171 = vector.load %arg7[%c0_195, %c2_196, %c0_197, %c0_198] : memref<3x3x8x8xbf16, #tpu.memory_space<vmem>>, vector<1x1x8x8xbf16>
    %172 = vector.shape_cast %171 : vector<1x1x8x8xbf16> to vector<8x8xbf16>
    %cst_199 = arith.constant dense<0.000000e+00> : vector<256x8xf32>
    %173 = tpu.matmul %170, %172, %cst_199 {dimension_numbers = #tpu.dot_dimension_numbers<[1], [0], [0], [1], [0, 0, 1, 1], [], []>} : vector<256x8xbf16>, vector<8x8xbf16>, vector<256x8xf32> -> vector<256x8xf32>
    %174 = arith.addf %167, %173 : vector<256x8xf32>
    %c1_200 = arith.constant 1 : index
    %c0_201 = arith.constant 0 : index
    %c0_202 = arith.constant 0 : index
    %175 = vector.load %arg13[%c1_200, %c0_201, %c0_202] : memref<18x18x8xf32, #tpu.memory_space<vmem>>, vector<16x16x8xf32>
    %176 = vector.shape_cast %175 : vector<16x16x8xf32> to vector<256x8xf32>
    %177 = arith.truncf %176 : vector<256x8xf32> to vector<256x8xbf16>
    %c1_203 = arith.constant 1 : index
    %c0_204 = arith.constant 0 : index
    %c0_205 = arith.constant 0 : index
    %c0_206 = arith.constant 0 : index
    %178 = vector.load %arg7[%c1_203, %c0_204, %c0_205, %c0_206] : memref<3x3x8x8xbf16, #tpu.memory_space<vmem>>, vector<1x1x8x8xbf16>
    %179 = vector.shape_cast %178 : vector<1x1x8x8xbf16> to vector<8x8xbf16>
    %cst_207 = arith.constant dense<0.000000e+00> : vector<256x8xf32>
    %180 = tpu.matmul %177, %179, %cst_207 {dimension_numbers = #tpu.dot_dimension_numbers<[1], [0], [0], [1], [0, 0, 1, 1], [], []>} : vector<256x8xbf16>, vector<8x8xbf16>, vector<256x8xf32> -> vector<256x8xf32>
    %181 = arith.addf %174, %180 : vector<256x8xf32>
    %c1_208 = arith.constant 1 : index
    %c1_209 = arith.constant 1 : index
    %c0_210 = arith.constant 0 : index
    %182 = vector.load %arg13[%c1_208, %c1_209, %c0_210] : memref<18x18x8xf32, #tpu.memory_space<vmem>>, vector<16x16x8xf32>
    %183 = vector.shape_cast %182 : vector<16x16x8xf32> to vector<256x8xf32>
    %184 = arith.truncf %183 : vector<256x8xf32> to vector<256x8xbf16>
    %c1_211 = arith.constant 1 : index
    %c1_212 = arith.constant 1 : index
    %c0_213 = arith.constant 0 : index
    %c0_214 = arith.constant 0 : index
    %185 = vector.load %arg7[%c1_211, %c1_212, %c0_213, %c0_214] : memref<3x3x8x8xbf16, #tpu.memory_space<vmem>>, vector<1x1x8x8xbf16>
    %186 = vector.shape_cast %185 : vector<1x1x8x8xbf16> to vector<8x8xbf16>
    %cst_215 = arith.constant dense<0.000000e+00> : vector<256x8xf32>
    %187 = tpu.matmul %184, %186, %cst_215 {dimension_numbers = #tpu.dot_dimension_numbers<[1], [0], [0], [1], [0, 0, 1, 1], [], []>} : vector<256x8xbf16>, vector<8x8xbf16>, vector<256x8xf32> -> vector<256x8xf32>
    %188 = arith.addf %181, %187 : vector<256x8xf32>
    %c1_216 = arith.constant 1 : index
    %c2_217 = arith.constant 2 : index
    %c0_218 = arith.constant 0 : index
    %189 = vector.load %arg13[%c1_216, %c2_217, %c0_218] : memref<18x18x8xf32, #tpu.memory_space<vmem>>, vector<16x16x8xf32>
    %190 = vector.shape_cast %189 : vector<16x16x8xf32> to vector<256x8xf32>
    %191 = arith.truncf %190 : vector<256x8xf32> to vector<256x8xbf16>
    %c1_219 = arith.constant 1 : index
    %c2_220 = arith.constant 2 : index
    %c0_221 = arith.constant 0 : index
    %c0_222 = arith.constant 0 : index
    %192 = vector.load %arg7[%c1_219, %c2_220, %c0_221, %c0_222] : memref<3x3x8x8xbf16, #tpu.memory_space<vmem>>, vector<1x1x8x8xbf16>
    %193 = vector.shape_cast %192 : vector<1x1x8x8xbf16> to vector<8x8xbf16>
    %cst_223 = arith.constant dense<0.000000e+00> : vector<256x8xf32>
    %194 = tpu.matmul %191, %193, %cst_223 {dimension_numbers = #tpu.dot_dimension_numbers<[1], [0], [0], [1], [0, 0, 1, 1], [], []>} : vector<256x8xbf16>, vector<8x8xbf16>, vector<256x8xf32> -> vector<256x8xf32>
    %195 = arith.addf %188, %194 : vector<256x8xf32>
    %c2_224 = arith.constant 2 : index
    %c0_225 = arith.constant 0 : index
    %c0_226 = arith.constant 0 : index
    %196 = vector.load %arg13[%c2_224, %c0_225, %c0_226] : memref<18x18x8xf32, #tpu.memory_space<vmem>>, vector<16x16x8xf32>
    %197 = vector.shape_cast %196 : vector<16x16x8xf32> to vector<256x8xf32>
    %198 = arith.truncf %197 : vector<256x8xf32> to vector<256x8xbf16>
    %c2_227 = arith.constant 2 : index
    %c0_228 = arith.constant 0 : index
    %c0_229 = arith.constant 0 : index
    %c0_230 = arith.constant 0 : index
    %199 = vector.load %arg7[%c2_227, %c0_228, %c0_229, %c0_230] : memref<3x3x8x8xbf16, #tpu.memory_space<vmem>>, vector<1x1x8x8xbf16>
    %200 = vector.shape_cast %199 : vector<1x1x8x8xbf16> to vector<8x8xbf16>
    %cst_231 = arith.constant dense<0.000000e+00> : vector<256x8xf32>
    %201 = tpu.matmul %198, %200, %cst_231 {dimension_numbers = #tpu.dot_dimension_numbers<[1], [0], [0], [1], [0, 0, 1, 1], [], []>} : vector<256x8xbf16>, vector<8x8xbf16>, vector<256x8xf32> -> vector<256x8xf32>
    %202 = arith.addf %195, %201 : vector<256x8xf32>
    %c2_232 = arith.constant 2 : index
    %c1_233 = arith.constant 1 : index
    %c0_234 = arith.constant 0 : index
    %203 = vector.load %arg13[%c2_232, %c1_233, %c0_234] : memref<18x18x8xf32, #tpu.memory_space<vmem>>, vector<16x16x8xf32>
    %204 = vector.shape_cast %203 : vector<16x16x8xf32> to vector<256x8xf32>
    %205 = arith.truncf %204 : vector<256x8xf32> to vector<256x8xbf16>
    %c2_235 = arith.constant 2 : index
    %c1_236 = arith.constant 1 : index
    %c0_237 = arith.constant 0 : index
    %c0_238 = arith.constant 0 : index
    %206 = vector.load %arg7[%c2_235, %c1_236, %c0_237, %c0_238] : memref<3x3x8x8xbf16, #tpu.memory_space<vmem>>, vector<1x1x8x8xbf16>
    %207 = vector.shape_cast %206 : vector<1x1x8x8xbf16> to vector<8x8xbf16>
    %cst_239 = arith.constant dense<0.000000e+00> : vector<256x8xf32>
    %208 = tpu.matmul %205, %207, %cst_239 {dimension_numbers = #tpu.dot_dimension_numbers<[1], [0], [0], [1], [0, 0, 1, 1], [], []>} : vector<256x8xbf16>, vector<8x8xbf16>, vector<256x8xf32> -> vector<256x8xf32>
    %209 = arith.addf %202, %208 : vector<256x8xf32>
    %c2_240 = arith.constant 2 : index
    %c2_241 = arith.constant 2 : index
    %c0_242 = arith.constant 0 : index
    %210 = vector.load %arg13[%c2_240, %c2_241, %c0_242] : memref<18x18x8xf32, #tpu.memory_space<vmem>>, vector<16x16x8xf32>
    %211 = vector.shape_cast %210 : vector<16x16x8xf32> to vector<256x8xf32>
    %212 = arith.truncf %211 : vector<256x8xf32> to vector<256x8xbf16>
    %c2_243 = arith.constant 2 : index
    %c2_244 = arith.constant 2 : index
    %c0_245 = arith.constant 0 : index
    %c0_246 = arith.constant 0 : index
    %213 = vector.load %arg7[%c2_243, %c2_244, %c0_245, %c0_246] : memref<3x3x8x8xbf16, #tpu.memory_space<vmem>>, vector<1x1x8x8xbf16>
    %214 = vector.shape_cast %213 : vector<1x1x8x8xbf16> to vector<8x8xbf16>
    %cst_247 = arith.constant dense<0.000000e+00> : vector<256x8xf32>
    %215 = tpu.matmul %212, %214, %cst_247 {dimension_numbers = #tpu.dot_dimension_numbers<[1], [0], [0], [1], [0, 0, 1, 1], [], []>} : vector<256x8xbf16>, vector<8x8xbf16>, vector<256x8xf32> -> vector<256x8xf32>
    %216 = arith.addf %209, %215 : vector<256x8xf32>
    %c0_248 = arith.constant 0 : index
    %c0_249 = arith.constant 0 : index
    %217 = vector.load %arg8[%c0_248, %c0_249] : memref<1x8xf32, #tpu.memory_space<vmem>>, vector<1x8xf32>
    %218 = vector.broadcast %217 : vector<1x8xf32> to vector<256x8xf32>
    %219 = arith.mulf %216, %218 : vector<256x8xf32>
    %c0_250 = arith.constant 0 : index
    %c0_251 = arith.constant 0 : index
    %220 = vector.load %arg9[%c0_250, %c0_251] : memref<1x8xf32, #tpu.memory_space<vmem>>, vector<1x8xf32>
    %221 = vector.broadcast %220 : vector<1x8xf32> to vector<256x8xf32>
    %222 = arith.addf %219, %221 : vector<256x8xf32>
    %cst_252 = arith.constant 0.000000e+00 : f32
    %223 = vector.broadcast %cst_252 : f32 to vector<256x8xf32>
    %224 = arith.maximumf %222, %223 : vector<256x8xf32>
    %225 = vector.shape_cast %224 : vector<256x8xf32> to vector<1x16x16x8xf32>
    %c0_253 = arith.constant 0 : index
    %c0_254 = arith.constant 0 : index
    %c0_255 = arith.constant 0 : index
    %c0_256 = arith.constant 0 : index
    %226 = vector.load %arg10[%c0_253, %c0_254, %c0_255, %c0_256] : memref<1x16x16x8xf32, #tpu.memory_space<vmem>>, vector<1x16x16x8xf32>
    tpu.vector_store %arg10[%c0_253, %c0_254, %c0_255, %c0_256], %225 {strides = array<i32>} : memref<1x16x16x8xf32, #tpu.memory_space<vmem>>, vector<1x16x16x8xf32>,
    return
  }
  func.func @transform_0(%arg0: i32) -> (i32, i32, i32, i32) {
    %c0_i32 = arith.constant 0 : i32
    %c0_i32_0 = arith.constant 0 : i32
    %c0_i32_1 = arith.constant 0 : i32
    %c0_i32_2 = arith.constant 0 : i32
    return %arg0, %c0_i32, %c0_i32_0, %c0_i32_1 : i32, i32, i32, i32
  }
  func.func @transform_1(%arg0: i32) -> (i32, i32, i32, i32) {
    %c0_i32 = arith.constant 0 : i32
    %c0_i32_0 = arith.constant 0 : i32
    %c0_i32_1 = arith.constant 0 : i32
    %c0_i32_2 = arith.constant 0 : i32
    return %arg0, %c0_i32, %c0_i32_0, %c0_i32_1 : i32, i32, i32, i32
  }
  func.func @transform_2(%arg0: i32) -> (i32, i32, i32, i32) {
    %c0_i32 = arith.constant 0 : i32
    %c0_i32_0 = arith.constant 0 : i32
    %c0_i32_1 = arith.constant 0 : i32
    %c0_i32_2 = arith.constant 0 : i32
    %c0_i32_3 = arith.constant 0 : i32
    return %c0_i32, %c0_i32_0, %c0_i32_1, %c0_i32_2 : i32, i32, i32, i32
  }
  func.func @transform_3(%arg0: i32) -> (i32, i32, i32, i32) {
    %c0_i32 = arith.constant 0 : i32
    %c0_i32_0 = arith.constant 0 : i32
    %c0_i32_1 = arith.constant 0 : i32
    %c0_i32_2 = arith.constant 0 : i32
    %c0_i32_3 = arith.constant 0 : i32
    return %c0_i32, %c0_i32_0, %c0_i32_1, %c0_i32_2 : i32, i32, i32, i32
  }
  func.func @transform_4(%arg0: i32) -> (i32, i32) {
    %c0_i32 = arith.constant 0 : i32
    %c0_i32_0 = arith.constant 0 : i32
    %c0_i32_1 = arith.constant 0 : i32
    return %c0_i32, %c0_i32_0 : i32, i32
  }
  func.func @transform_5(%arg0: i32) -> (i32, i32) {
    %c0_i32 = arith.constant 0 : i32
    %c0_i32_0 = arith.constant 0 : i32
    %c0_i32_1 = arith.constant 0 : i32
    return %c0_i32, %c0_i32_0 : i32, i32
  }
  func.func @transform_6(%arg0: i32) -> (i32, i32, i32, i32) {
    %c0_i32 = arith.constant 0 : i32
    %c0_i32_0 = arith.constant 0 : i32
    %c0_i32_1 = arith.constant 0 : i32
    %c0_i32_2 = arith.constant 0 : i32
    %c0_i32_3 = arith.constant 0 : i32
    return %c0_i32, %c0_i32_0, %c0_i32_1, %c0_i32_2 : i32, i32, i32, i32
  }
  func.func @transform_7(%arg0: i32) -> (i32, i32) {
    %c0_i32 = arith.constant 0 : i32
    %c0_i32_0 = arith.constant 0 : i32
    %c0_i32_1 = arith.constant 0 : i32
    return %c0_i32, %c0_i32_0 : i32, i32
  }
  func.func @transform_8(%arg0: i32) -> (i32, i32) {
    %c0_i32 = arith.constant 0 : i32
    %c0_i32_0 = arith.constant 0 : i32
    %c0_i32_1 = arith.constant 0 : i32
    return %c0_i32, %c0_i32_0 : i32, i32
  }
  func.func @transform_9(%arg0: i32) -> (i32, i32, i32, i32) {
    %c0_i32 = arith.constant 0 : i32
    %c0_i32_0 = arith.constant 0 : i32
    %c0_i32_1 = arith.constant 0 : i32
    %c0_i32_2 = arith.constant 0 : i32
    return %arg0, %c0_i32, %c0_i32_0, %c0_i32_1 : i32, i32, i32, i32
  }
}

</mosaic_0001>

<bundles_post_ra>
// kernel: upsamp_forward.2
= control target key start
LH: loop header
LB: loop body
LE: loop exit
PB: predicated region body
PF: predicated region fallthrough
CT: control target
= control target key end

     0   :  { %s2500_s12 = smov 0   ;;  %s2920_s0 = inlined_call_operand.vmem [shape: bf16[2,8,8,4], index: 0, kind: input, shape index: {}]   ;;  %s2921_s1 = inlined_call_operand.vmem [shape: bf16[4,4,4,2], index: 1, kind: input, shape index: {}]   ;;  %s2922_s2 = inlined_call_operand.vmem [shape: f32[1,2], index: 2, kind: input, shape index: {}]   ;;  %s2923_s3 = inlined_call_operand.vmem [shape: bf16[2,32,8,2], index: 3, kind: output, shape index: {}]  }
   0x1 LB: > { %s1971_s13 = sadd.s32 4294967295, %s2477_s12   ;;  %p1975_p0 = scmp.ge.s32.totalorder %s2477_s12, 1  ;;  %s2477_s12 = sphi %s2500_s12, %s13_s12  }
   0x2   : > { %p137_p1 = scmp.lt.s32.totalorder %s2477_s12, 3 }
   0x4   : > { %p138_p2 = pnand %p1975_p0, %p137_p1 }
   0x5   : > { %v1980_v0 = vld [vmem:[%s2921_s1 + $0x4] sm:$0x3] (!%p138_p2)  ;;  %vm258_vm0 = vcmask (!%p138_p2), 1041408   ;;  %v2001_v1 = vld [vmem:[%s2921_s1 + $0x6] sm:$0x3] (!%p138_p2)  ;;  %p161_p3 = scmp.lt.s32.totalorder (!%p138_p2), %s1971_s13, 1 }
   0x6   : > { %141 = sbr.rel (%p138_p2) target bundleno = 372 (0x174), region = 32  ;;  %2446 = vmatprep.subr.msk.bf16.mxu0 (!%p138_p2), %vm258_vm0, %v1980_v0  ;;  %2450 = vmatprep.subr.msk.bf16.mxu1 (!%p138_p2), %vm258_vm0, %v2001_v1  ;;  %v260_v2 = vsel (!%p138_p2), %vm258_vm0, %v1980_v0, 0  ;;  %v684_v3 = vsel (!%p138_p2), %vm258_vm0, %v2001_v1, 0  ;;  %vm172_vm1 = vcmask (!%p138_p2), 31744   ;;  %v231_v4 = vld [vmem:[%s2921_s1] sm:$0x3] (!%p138_p2) }
   0x7   : > { %2191 = vmatpush3.bf16.msra.mxu0 (!%p138_p2), %v260_v2  ;;  %2231 = vmatpush3.bf16.msra.mxu1 (!%p138_p2), %v684_v3  ;;  %v2479_v5 = vmov (!%p138_p2), 0.0   ;;  %vm174_vm2 = vcmask (!%p138_p2), 25600   ;;  %v2000_v6 = vld [vmem:[%s2921_s1 + $0x2] sm:$0x3] (!%p138_p2)  ;;  %v340_v30 = vsel (!%p138_p2), %vm258_vm0, %v231_v4, 0  ;;  %vm634_vm3 = vcmask (!%p138_p2), 11264  }
   0x8   : > { %173 = vst.msk [vmem:[#allocation2] sm:$0xff] (!%p138_p2), %vm172_vm1, %v2479_v5  ;;  %176 = vst.msk [vmem:[#allocation2 + $0x10] sm:$0xff] (!%p138_p2), %vm172_vm1, %v2479_v5  ;;  %2447 = vmatprep.subr.msk.bf16.mxu0 (!%p138_p2), %vm258_vm0, %v231_v4  ;;  %2451 = vmatprep.subr.msk.bf16.mxu1 (!%p138_p2), %vm258_vm0, %v2000_v6  ;;  %v764_v32 = vsel (!%p138_p2), %vm258_vm0, %v2000_v6, 0  ;;  %v1989_v40 = vld [vmem:[%s2921_s1 + $0x10] sm:$0x3] (!%p138_p2) }
   0x9   : > { %178 = vst.msk [vmem:[#allocation2 + $0x20] sm:$0xff] (!%p138_p2), %vm172_vm1, %v2479_v5  ;;  %180 = vst.msk [vmem:[#allocation2 + $0x30] sm:$0xff] (!%p138_p2), %vm172_vm1, %v2479_v5  ;;  %v2010_v41 = vld [vmem:[%s2921_s1 + $0x12] sm:$0x3] (!%p138_p2)  ;;  %v434_v55 = vsel (!%p138_p2), %vm258_vm0, %v1989_v40, 0 }
   0xa   : > { %182 = vst.msk [vmem:[#allocation2 + $0x40] sm:$0xff] (!%p138_p2), %vm172_vm1, %v2479_v5  ;;  %184 = vst.msk [vmem:[#allocation2 + $0x50] sm:$0xff] (!%p138_p2), %vm172_vm1, %v2479_v5  ;;  %v858_v56 = vsel (!%p138_p2), %vm258_vm0, %v2010_v41, 0  ;;  %v1994_v58 = vld [vmem:[%s2921_s1 + $0x14] sm:$0x3] (!%p138_p2) }
   0xb   : > { %186 = vst.msk [vmem:[#allocation2 + $0x60] sm:$0xff] (!%p138_p2), %vm172_vm1, %v2479_v5  ;;  %188 = vst.msk [vmem:[#allocation2 + $0x70] sm:$0xff] (!%p138_p2), %vm172_vm1, %v2479_v5  ;;  %v2015_v59 = vld [vmem:[%s2921_s1 + $0x16] sm:$0x3] (!%p138_p2)  ;;  %v536_v3 = vsel (!%p138_p2), %vm258_vm0, %v1994_v58, 0 }
   0xc   : > { %190 = vst.msk [vmem:[#allocation2 + $0x80] sm:$0xff] (!%p138_p2), %vm172_vm1, %v2479_v5  ;;  %192 = vst.msk [vmem:[#allocation2 + $0x90] sm:$0xff] (!%p138_p2), %vm172_vm1, %v2479_v5  ;;  %v960_v4 = vsel (!%p138_p2), %vm258_vm0, %v2015_v59, 0 }
   0xd   : > { %s2925_s13 = smov (!%p161_p3, %s1971_s13), 1  ;;  %175 = vst.msk [vmem:[#allocation2 + $0x8] sm:$0x3] %vm174_vm2, %v2479_v5  ;;  %177 = vst.msk [vmem:[#allocation2 + $0x18] sm:$0x3] %vm174_vm2, %v2479_v5 }
   0xe   : > { %179 = vst.msk [vmem:[#allocation2 + $0x28] sm:$0x3] %vm174_vm2, %v2479_v5  ;;  %181 = vst.msk [vmem:[#allocation2 + $0x38] sm:$0x3] %vm174_vm2, %v2479_v5  ;;  %s2089_s22 = sshll.u32 %s2925_s13, 5  ;;  %s2090_s27 = sshll.u32 %s2925_s13, 7 }
   0xf   : > { %183 = vst.msk [vmem:[#allocation2 + $0x48] sm:$0x3] %vm174_vm2, %v2479_v5  ;;  %185 = vst.msk [vmem:[#allocation2 + $0x58] sm:$0x3] %vm174_vm2, %v2479_v5  ;;  %s165_s25 = scalar_lea.vmem %s2920_s0, %s2089_s22  ;;  %v219_v45 = vld [vmem:[#allocation2] sm:$0xff]  ;;  %s2821_s30 = scalar_lea.vmem %s2923_s3, %s2090_s27 }
  0x10   : > { %187 = vst.msk [vmem:[#allocation2 + $0x68] sm:$0x3] %vm174_vm2, %v2479_v5  ;;  %189 = vst.msk [vmem:[#allocation2 + $0x78] sm:$0x3] %vm174_vm2, %v2479_v5  ;;  %v2092_v7 = vld [vmem:[%s165_s25] sm:$0xff]   ;;  %v2107_v8 = vld [vmem:[%s165_s25 + $0x8] sm:$0xff]  }
  0x11   : > { %191 = vst.msk [vmem:[#allocation2 + $0x88] sm:$0x3] %vm174_vm2, %v2479_v5  ;;  %193 = vst.msk [vmem:[#allocation2 + $0x98] sm:$0x3] %vm174_vm2, %v2479_v5  ;;  %v2108_v9 = vld [vmem:[%s165_s25 + $0x10] sm:$0xff]   ;;  %v2093_v10 = vunpack.c.l.bf16 %v2092_v7  ;;  %v2094_v11 = vunpack.c.h.bf16 %v2092_v7  ;;  %v2097_v12 = vunpack.c.l.bf16 %v2107_v8  ;;  %v2098_v13 = vunpack.c.h.bf16 %v2107_v8  ;;  %v2109_v14 = vld [vmem:[%s165_s25 + $0x18] sm:$0xff]  }
  0x12   : > { %v2101_v15 = vunpack.c.l.bf16 %v2108_v9  ;;  %v2102_v16 = vunpack.c.h.bf16 %v2108_v9  ;;  %v2105_v17 = vunpack.c.l.bf16 %v2109_v14  ;;  %v2106_v18 = vunpack.c.h.bf16 %v2109_v14  ;;  %v2030_v7 = vld [vmem:[%s2921_s1 + $0xc] sm:$0x3]  ;;  %v2059_v8 = vld [vmem:[%s2921_s1 + $0xe] sm:$0x3] }
  0x13   : > { %211 = vst.msk [vmem:[#allocation2 + $0x11] sm:$0xff] %vm172_vm1, %v2093_v10  ;;  %212 = vst.msk [vmem:[#allocation2 + $0x21] sm:$0xff] %vm172_vm1, %v2094_v11 }
  0x14   : > { %213 = vst.msk [vmem:[#allocation2 + $0x31] sm:$0xff] %vm172_vm1, %v2097_v12  ;;  %214 = vst.msk [vmem:[#allocation2 + $0x41] sm:$0xff] %vm172_vm1, %v2098_v13  ;;  %v232_v19 = vld [vmem:[#allocation2 + $0x1] sm:$0xff] }
  0x15   : > { %215 = vst.msk [vmem:[#allocation2 + $0x51] sm:$0xff] %vm172_vm1, %v2101_v15  ;;  %216 = vst.msk [vmem:[#allocation2 + $0x61] sm:$0xff] %vm172_vm1, %v2102_v16  ;;  %v657_v20 = vld [vmem:[#allocation2 + $0x2] sm:$0xff]  ;;  %v1108_v15 = vsel %vm258_vm0, %v2030_v7, 0  ;;  %v1533_v16 = vsel %vm258_vm0, %v2059_v8, 0 }
  0x16   : > { %217 = vst.msk [vmem:[#allocation2 + $0x71] sm:$0xff] %vm172_vm1, %v2105_v17  ;;  %218 = vst.msk [vmem:[#allocation2 + $0x81] sm:$0xff] %vm172_vm1, %v2106_v18  ;;  %v2029_v18 = vld [vmem:[%s2921_s1 + $0x8] sm:$0x3] }
  0x1a   : > { %v2560_v21 = vld [vmem:[#allocation2 + $0x11] sm:$0xff]  ;;  %v2564_v23 = vld [vmem:[#allocation2 + $0x21] sm:$0xff] }
  0x1b   : > { %v2562_v22 = vld [vmem:[#allocation2 + $0x12] sm:$0xff]  ;;  %v240_v24 = vpack.c.bf16 %v2560_v21, %v232_v19  ;;  %v2570_v27 = vld [vmem:[#allocation2 + $0x22] sm:$0xff]  ;;  %v2656_v0 = vpack.c.bf16 %v2564_v23, %v2560_v21  ;;  %v2058_v19 = vld [vmem:[%s2921_s1 + $0xa] sm:$0x3] }
  0x1c   : > { %v665_v25 = vpack.c.bf16 %v2562_v22, %v657_v20  ;;  %v2568_v26 = vld [vmem:[#allocation2 + $0x31] sm:$0xff]  ;;  %v236_v33 = vld [vmem:[#allocation2 + $0x41] sm:$0xff]  ;;  %v941_v13 = vpack.c.bf16 %v2570_v27, %v2562_v22  ;;  %v1188_v22 = vsel %vm258_vm0, %v2029_v18, 0 }
  0x1d   : > { %v2572_v28 = vld [vmem:[#allocation2 + $0x32] sm:$0xff]  ;;  %v2576_v29 = vpack.c.bf16 %v2568_v26, %v2564_v23  ;;  %v2584_v35 = vld [vmem:[#allocation2 + $0x42] sm:$0xff]  ;;  %2192 = vmatprep.mubr.msk.bf16.mxu0 %vm172_vm1, %v240_v24  ;;  %v2669_v2 = vpack.c.bf16 %v236_v33, %v2568_v26  ;;  %v1613_v23 = vsel %vm258_vm0, %v2058_v19, 0 }
  0x1e   : > { %v2581_v31 = vpack.c.bf16 %v2572_v28, %v2570_v27  ;;  %v237_v34 = vld [vmem:[#allocation2 + $0x51] sm:$0xff]  ;;  %2232 = vmatprep.mubr.msk.bf16.mxu1 %vm172_vm1, %v665_v25  ;;  %v238_v39 = vld [vmem:[#allocation2 + $0x61] sm:$0xff]  ;;  %v942_v14 = vpack.c.bf16 %v2584_v35, %v2572_v28  ;;  %v2068_v25 = vld [vmem:[%s2921_s1 + $0x1a] sm:$0x3] }
  0x1f   : > { %v2588_v36 = vpack.c.bf16 %v237_v34, %v236_v33  ;;  %v2590_v37 = vld [vmem:[#allocation2 + $0x52] sm:$0xff]  ;;  %2193 = vmatmul.mubr.msk.bf16.vlgmr.msra.gmra.mrb[0].mxu0 %vm172_vm1, %v2576_v29  ;;  %v2606_v43 = vld [vmem:[#allocation2 + $0x62] sm:$0xff]  ;;  %v2675_v6 = vpack.c.bf16 %v238_v39, %v237_v34  ;;  %v1707_v27 = vsel %vm258_vm0, %v2068_v25, 0  ;;  %v2044_v28 = vld [vmem:[%s2921_s1 + $0x1c] sm:$0x3] }
  0x20   : > { %2233 = vmatmul.mubr.msk.bf16.vlgmr.msra.gmra.mrb[0].mxu1 %vm172_vm1, %v2581_v31  ;;  %v2598_v38 = vpack.c.bf16 %v2590_v37, %v2584_v35  ;;  %2201 = vmatpush3.bf16.msra.mxu0 %v340_v30  ;;  %v239_v42 = vld [vmem:[#allocation2 + $0x71] sm:$0xff]  ;;  %v221_v50 = vld [vmem:[#allocation2 + $0x20] sm:$0xff]  ;;  %v943_v17 = vpack.c.bf16 %v2606_v43, %v2590_v37  ;;  %v2073_v30 = vld [vmem:[%s2921_s1 + $0x1e] sm:$0x3] }
  0x21   : > { %2241 = vmatpush3.bf16.msra.mxu1 %v764_v32  ;;  %v2608_v44 = vld [vmem:[#allocation2 + $0x72] sm:$0xff]  ;;  %2196 = vmatprep.mubr.msk.bf16.mxu0 %vm172_vm1, %v2588_v36  ;;  %v2616_v47 = vpack.c.bf16 %v239_v42, %v238_v39  ;;  %v223_v52 = vld [vmem:[#allocation2 + $0x40] sm:$0xff]  ;;  %v1385_v32 = vsel %vm258_vm0, %v2044_v28, 0  ;;  %v1809_v33 = vsel %vm258_vm0, %v2073_v30, 0 }
  0x22   : > { %2236 = vmatprep.mubr.msk.bf16.mxu1 %vm172_vm1, %v2598_v38  ;;  %v220_v46 = vld [vmem:[#allocation2 + $0x10] sm:$0xff]  ;;  %2448 = vmatprep.subr.msk.bf16.mxu0 %vm258_vm0, %v1989_v40  ;;  %v2620_v48 = vpack.c.bf16 %v2608_v44, %v2606_v43  ;;  %v225_v60 = vld [vmem:[#allocation2 + $0x60] sm:$0xff] }
  0x23   : > { %2452 = vmatprep.subr.msk.bf16.mxu1 %vm258_vm0, %v2010_v41  ;;  %v227_v49 = vpack.c.bf16 %v220_v46, %v219_v45  ;;  %v222_v51 = vld [vmem:[#allocation2 + $0x30] sm:$0xff]  ;;  %v2652_v63 = vpack.c.bf16 %v221_v50, %v220_v46  ;;  %v2687_v9 = vld [vmem:[#allocation2 + $0x80] sm:$0xff] }
  0x24   : > { %v224_v53 = vld [vmem:[#allocation2 + $0x50] sm:$0xff]  ;;  %v2628_v54 = vpack.c.bf16 %v222_v51, %v221_v50  ;;  %v2666_v1 = vpack.c.bf16 %v223_v52, %v222_v51  ;;  %v2689_v10 = vld [vmem:[#allocation2 + $0x81] sm:$0xff] }
  0x25   : > { %v2632_v57 = vpack.c.bf16 %v224_v53, %v223_v52  ;;  %v226_v61 = vld [vmem:[#allocation2 + $0x70] sm:$0xff]  ;;  %v2673_v5 = vpack.c.bf16 %v225_v60, %v224_v53  ;;  %v842_v12 = vpack.c.bf16 %v2689_v10, %v239_v42  ;;  %v2721_v20 = vld [vmem:[#allocation2 + $0x82] sm:$0xff] }
  0x26   : > { %v2650_v62 = vpack.c.bf16 %v226_v61, %v225_v60  ;;  %v418_v11 = vpack.c.bf16 %v2687_v9, %v226_v61  ;;  %v944_v21 = vpack.c.bf16 %v2721_v20, %v2608_v44  ;;  %v1263_v34 = vld [vmem:[#allocation2 + $0x90] sm:$0xff] }
  0x27   : > { %2197 = vmatmul.mubr.msk.bf16.gmra.mrb[4].mxu0 %vm172_vm1, %v2616_v47  ;;  %v1687_v35 = vld [vmem:[#allocation2 + $0x91] sm:$0xff]  ;;  %v1267_v37 = vpack.c.bf16 %v1263_v34, %v2687_v9 }
  0x28   : > { %2237 = vmatmul.mubr.msk.bf16.gmra.mrb[4].mxu1 %vm172_vm1, %v2620_v48  ;;  %2202 = vmatprep.mubr.msk.bf16.mxu0 %vm172_vm1, %v227_v49  ;;  %v1691_v39 = vpack.c.bf16 %v1687_v35, %v2689_v10  ;;  %v1789_v40 = vld [vmem:[#allocation2 + $0x92] sm:$0xff] }
  0x29   : > { %2242 = vmatprep.mubr.msk.bf16.mxu1 %vm172_vm1, %v240_v24  ;;  %v2039_v24 = vld [vmem:[%s2921_s1 + $0x18] sm:$0x3]  ;;  %v1793_v41 = vpack.c.bf16 %v1789_v40, %v2721_v20 }
  0x2a   : > { %v1283_v26 = vsel %vm258_vm0, %v2039_v24, 0 }
  0x2f   : > { %2203 = vmatmul.mubr.msk.bf16.vlgmr.msra.gmra.mrb[0].mxu0 %vm172_vm1, %v2628_v54 }
  0x30   : > { %2243 = vmatmul.mubr.msk.bf16.vlgmr.msra.gmra.mrb[0].mxu1 %vm172_vm1, %v2576_v29  ;;  %2211 = vmatpush3.bf16.msra.mxu0 %v434_v55 }
  0x31   : > { %2251 = vmatpush3.bf16.msra.mxu1 %v858_v56  ;;  %2206 = vmatprep.mubr.msk.bf16.mxu0 %vm172_vm1, %v2632_v57 }
  0x32   : > { %2246 = vmatprep.mubr.msk.bf16.mxu1 %vm172_vm1, %v2588_v36  ;;  %2449 = vmatprep.subr.msk.bf16.mxu0 %vm258_vm0, %v1994_v58 }
  0x33   : > { %2453 = vmatprep.subr.msk.bf16.mxu1 %vm258_vm0, %v2015_v59 }
  0x37   : > { %2207 = vmatmul.mubr.msk.bf16.gmra.mrb[4].mxu0 %vm172_vm1, %v2650_v62 }
  0x38   : > { %2247 = vmatmul.mubr.msk.bf16.gmra.mrb[4].mxu1 %vm172_vm1, %v2616_v47  ;;  %2212 = vmatprep.mubr.msk.bf16.mxu0 %vm172_vm1, %v2652_v63 }
  0x39   : > { %2252 = vmatprep.mubr.msk.bf16.mxu1 %vm172_vm1, %v2656_v0 }
  0x3f   : > { %2213 = vmatmul.mubr.msk.bf16.vlgmr.msra.gmra.mrb[0].mxu0 %vm172_vm1, %v2666_v1 }
  0x40   : > { %2253 = vmatmul.mubr.msk.bf16.vlgmr.msra.gmra.mrb[0].mxu1 %vm172_vm1, %v2669_v2  ;;  %2221 = vmatpush3.bf16.msra.mxu0 %v536_v3 }
  0x41   : > { %2261 = vmatpush3.bf16.msra.mxu1 %v960_v4  ;;  %2216 = vmatprep.mubr.msk.bf16.mxu0 %vm172_vm1, %v2673_v5 }
  0x42   : > { %2256 = vmatprep.mubr.msk.bf16.mxu1 %vm172_vm1, %v2675_v6  ;;  %2454 = vmatprep.subr.msk.bf16.mxu0 %vm258_vm0, %v2030_v7 }
  0x43   : > { %2458 = vmatprep.subr.msk.bf16.mxu1 %vm258_vm0, %v2059_v8 }
  0x47   : > { %2217 = vmatmul.mubr.msk.bf16.gmra.mrb[4].mxu0 %vm172_vm1, %v418_v11 }
  0x48   : > { %2257 = vmatmul.mubr.msk.bf16.gmra.mrb[4].mxu1 %vm172_vm1, %v842_v12  ;;  %2222 = vmatprep.mubr.msk.bf16.mxu0 %vm172_vm1, %v2656_v0 }
  0x49   : > { %2262 = vmatprep.mubr.msk.bf16.mxu1 %vm172_vm1, %v941_v13 }
  0x4f   : > { %2223 = vmatmul.mubr.msk.bf16.vlgmr.msra.gmra.mrb[0].mxu0 %vm172_vm1, %v2669_v2 }
  0x50   : > { %2263 = vmatmul.mubr.msk.bf16.vlgmr.msra.gmra.mrb[0].mxu1 %vm172_vm1, %v942_v14  ;;  %2271 = vmatpush3.bf16.msra.mxu0 %v1108_v15 }
  0x51   : > { %2311 = vmatpush3.bf16.msra.mxu1 %v1533_v16  ;;  %2226 = vmatprep.mubr.msk.bf16.mxu0 %vm172_vm1, %v2675_v6 }
  0x52   : > { %2266 = vmatprep.mubr.msk.bf16.mxu1 %vm172_vm1, %v943_v17  ;;  %2455 = vmatprep.subr.msk.bf16.mxu0 %vm258_vm0, %v2029_v18 }
  0x53   : > { %2459 = vmatprep.subr.msk.bf16.mxu1 %vm258_vm0, %v2058_v19 }
  0x57   : > { %2227 = vmatmul.mubr.msk.bf16.gmra.mrb[4].mxu0 %vm172_vm1, %v842_v12 }
  0x58   : > { %2267 = vmatmul.mubr.msk.bf16.gmra.mrb[4].mxu1 %vm172_vm1, %v944_v21  ;;  %2272 = vmatprep.mubr.msk.bf16.mxu0 %vm172_vm1, %v2656_v0 }
  0x59   : > { %2312 = vmatprep.mubr.msk.bf16.mxu1 %vm172_vm1, %v941_v13 }
  0x5f   : > { %2273 = vmatmul.mubr.msk.bf16.vlgmr.msra.gmra.mrb[8].mxu0 %vm172_vm1, %v2669_v2 }
  0x60   : > { %2313 = vmatmul.mubr.msk.bf16.vlgmr.msra.gmra.mrb[8].mxu1 %vm172_vm1, %v942_v14  ;;  %2281 = vmatpush3.bf16.msra.mxu0 %v1188_v22 }
  0x61   : > { %2321 = vmatpush3.bf16.msra.mxu1 %v1613_v23  ;;  %2276 = vmatprep.mubr.msk.bf16.mxu0 %vm172_vm1, %v2675_v6 }
  0x62   : > { %2316 = vmatprep.mubr.msk.bf16.mxu1 %vm172_vm1, %v943_v17  ;;  %2456 = vmatprep.subr.msk.bf16.mxu0 %vm258_vm0, %v2039_v24 }
  0x63   : > { %2460 = vmatprep.subr.msk.bf16.mxu1 %vm258_vm0, %v2068_v25 }
  0x67   : > { %2277 = vmatmul.mubr.msk.bf16.gmra.mrb[12].mxu0 %vm172_vm1, %v842_v12 }
  0x68   : > { %2317 = vmatmul.mubr.msk.bf16.gmra.mrb[12].mxu1 %vm172_vm1, %v944_v21  ;;  %2282 = vmatprep.mubr.msk.bf16.mxu0 %vm172_vm1, %v2652_v63 }
  0x69   : > { %2322 = vmatprep.mubr.msk.bf16.mxu1 %vm172_vm1, %v2656_v0 }
  0x6f   : > { %2283 = vmatmul.mubr.msk.bf16.vlgmr.msra.gmra.mrb[8].mxu0 %vm172_vm1, %v2666_v1 }
  0x70   : > { %2323 = vmatmul.mubr.msk.bf16.vlgmr.msra.gmra.mrb[8].mxu1 %vm172_vm1, %v2669_v2  ;;  %2291 = vmatpush3.bf16.msra.mxu0 %v1283_v26 }
  0x71   : > { %2331 = vmatpush3.bf16.msra.mxu1 %v1707_v27  ;;  %2286 = vmatprep.mubr.msk.bf16.mxu0 %vm172_vm1, %v2673_v5 }
  0x72   : > { %2326 = vmatprep.mubr.msk.bf16.mxu1 %vm172_vm1, %v2675_v6  ;;  %2457 = vmatprep.subr.msk.bf16.mxu0 %vm258_vm0, %v2044_v28 }
  0x73   : > { %2461 = vmatprep.subr.msk.bf16.mxu1 %vm258_vm0, %v2073_v30 }
  0x77   : > { %2287 = vmatmul.mubr.msk.bf16.gmra.mrb[12].mxu0 %vm172_vm1, %v418_v11 }
  0x78   : > { %2327 = vmatmul.mubr.msk.bf16.gmra.mrb[12].mxu1 %vm172_vm1, %v842_v12  ;;  %2292 = vmatprep.mubr.msk.bf16.mxu0 %vm172_vm1, %v2628_v54 }
  0x79   : > { %2332 = vmatprep.mubr.msk.bf16.mxu1 %vm172_vm1, %v2576_v29 }
  0x7f   : > { %2293 = vmatmul.mubr.msk.bf16.vlgmr.msra.gmra.mrb[8].mxu0 %vm172_vm1, %v2632_v57 }
  0x80   : > { %2333 = vmatmul.mubr.msk.bf16.vlgmr.msra.gmra.mrb[8].mxu1 %vm172_vm1, %v2588_v36  ;;  %2301 = vmatpush3.bf16.msra.mxu0 %v1385_v32 }
  0x81   : > { %2341 = vmatpush3.bf16.msra.mxu1 %v1809_v33  ;;  %2296 = vmatprep.mubr.msk.bf16.mxu0 %vm172_vm1, %v2650_v62 }
  0x82   : > { %2336 = vmatprep.mubr.msk.bf16.mxu1 %vm172_vm1, %v2616_v47 }
  0x87   : > { %2297 = vmatmul.mubr.msk.bf16.gmra.mrb[12].mxu0 %vm172_vm1, %v1267_v37 }
  0x88   : > { %2337 = vmatmul.mubr.msk.bf16.gmra.mrb[12].mxu1 %vm172_vm1, %v1691_v39  ;;  %2302 = vmatprep.mubr.msk.bf16.mxu0 %vm172_vm1, %v2576_v29  ;;  %v2813_v29 = vld [vmem:[%s2922_s2] ss:$0 sm:$0xff] }
  0x89   : > { %2342 = vmatprep.mubr.msk.bf16.mxu1 %vm172_vm1, %v2581_v31 }
  0x8f   : > { %2303 = vmatmul.mubr.msk.bf16.vlgmr.msra.gmra.mrb[8].mxu0 %vm172_vm1, %v2588_v36 }
  0x90   : > { %2343 = vmatmul.mubr.msk.bf16.vlgmr.msra.gmra.mrb[8].mxu1 %vm172_vm1, %v2598_v38  ;;  %2306 = vmatprep.mubr.msk.bf16.mxu0 %vm172_vm1, %v2616_v47 }
  0x91   : > { %2346 = vmatprep.mubr.msk.bf16.mxu1 %vm172_vm1, %v2620_v48 }
  0x97   : > { %2307 = vmatmul.mubr.msk.bf16.gmra.mrb[12].mxu0 %vm172_vm1, %v1691_v39 }
  0x98   : > { %2347 = vmatmul.mubr.msk.bf16.gmra.mrb[12].mxu1 %vm172_vm1, %v1793_v41 }
 0x122   : > { %v2224_v31 = vpop.f32.mrb[0].mxu0 }
 0x123   : > { %v2264_v36 = vpop.f32.mrb[0].mxu1  ;;  %v620_v38 = vadd.f32 %v2224_v31, %v2813_v29  ;;  %v572_v43 = vpop.f32.mrb[1].mxu0 }
 0x124   : > { %v1044_v42 = vadd.f32 %v2264_v36, %v2813_v29  ;;  %v996_v44 = vpop.f32.mrb[1].mxu1  ;;  %v618_v45 = vadd.f32 %v2813_v29, %v572_v43  ;;  %v2225_v47 = vpop.f32.mrb[2].mxu0 }
 0x125   : > { %v1042_v46 = vadd.f32 %v2813_v29, %v996_v44  ;;  %v2265_v48 = vpop.f32.mrb[2].mxu1  ;;  %v628_v49 = vpack.c.bf16 %v620_v38, %v620_v38  ;;  %v621_v51 = vadd.f32 %v2225_v47, %v2813_v29  ;;  %v575_v53 = vpop.f32.mrb[3].mxu0 }
 0x126   : > { %v1052_v50 = vpack.c.bf16 %v1044_v42, %v1044_v42  ;;  %v1045_v52 = vadd.f32 %v2265_v48, %v2813_v29  ;;  %v999_v54 = vpop.f32.mrb[3].mxu1  ;;  %v626_v55 = vpack.c.bf16 %v618_v45, %v618_v45  ;;  %v619_v57 = vadd.f32 %v2813_v29, %v575_v53 }
 0x127   : > { %v1050_v56 = vpack.c.bf16 %v1042_v46, %v1042_v46  ;;  %v1043_v58 = vadd.f32 %v2813_v29, %v999_v54  ;;  %637 = vst.msk [vmem:[%s2821_s30 + $0x8] sm:$0xf] %vm634_vm3, %v628_v49  ;;  %v629_v59 = vpack.c.bf16 %v621_v51, %v621_v51 }
 0x128   : > { %2023 = vst.msk [vmem:[%s2821_s30 + $0x28] sm:$0xf] %vm634_vm3, %v1052_v50  ;;  %v1053_v60 = vpack.c.bf16 %v1045_v52, %v1045_v52  ;;  %635 = vst.msk [vmem:[%s2821_s30] sm:$0xf] %vm634_vm3, %v626_v55  ;;  %v627_v61 = vpack.c.bf16 %v619_v57, %v619_v57 }
 0x129   : > { %2021 = vst.msk [vmem:[%s2821_s30 + $0x20] sm:$0xf] %vm634_vm3, %v1050_v56  ;;  %v1051_v62 = vpack.c.bf16 %v1043_v58, %v1043_v58  ;;  %638 = vst.msk [vmem:[%s2821_s30 + $0xc] sm:$0xf] %vm634_vm3, %v629_v59 }
 0x12a   : > { %2024 = vst.msk [vmem:[%s2821_s30 + $0x2c] sm:$0xf] %vm634_vm3, %v1053_v60  ;;  %636 = vst.msk [vmem:[%s2821_s30 + $0x4] sm:$0xf] %vm634_vm3, %v627_v61  ;;  %v2228_v63 = vpop.f32.mrb[4].mxu0 }
 0x12b   : > { %2022 = vst.msk [vmem:[%s2821_s30 + $0x24] sm:$0xf] %vm634_vm3, %v1051_v62  ;;  %v2268_v0 = vpop.f32.mrb[4].mxu1  ;;  %v624_v1 = vadd.f32 %v2228_v63, %v2813_v29  ;;  %v588_v3 = vpop.f32.mrb[5].mxu0 }
 0x12c   : > { %v1048_v2 = vadd.f32 %v2268_v0, %v2813_v29  ;;  %v1012_v4 = vpop.f32.mrb[5].mxu1  ;;  %v622_v5 = vadd.f32 %v2813_v29, %v588_v3  ;;  %v2229_v7 = vpop.f32.mrb[6].mxu0 }
 0x12d   : > { %v1046_v6 = vadd.f32 %v2813_v29, %v1012_v4  ;;  %v2269_v8 = vpop.f32.mrb[6].mxu1  ;;  %v632_v9 = vpack.c.bf16 %v624_v1, %v624_v1  ;;  %v625_v11 = vadd.f32 %v2229_v7, %v2813_v29  ;;  %v591_v13 = vpop.f32.mrb[7].mxu0 }
 0x12e   : > { %v1056_v10 = vpack.c.bf16 %v1048_v2, %v1048_v2  ;;  %v1049_v12 = vadd.f32 %v2269_v8, %v2813_v29  ;;  %v1015_v14 = vpop.f32.mrb[7].mxu1  ;;  %v630_v15 = vpack.c.bf16 %v622_v5, %v622_v5  ;;  %v623_v17 = vadd.f32 %v2813_v29, %v591_v13 }
 0x12f   : > { %v1054_v16 = vpack.c.bf16 %v1046_v6, %v1046_v6  ;;  %v1047_v18 = vadd.f32 %v2813_v29, %v1015_v14  ;;  %641 = vst.msk [vmem:[%s2821_s30 + $0x18] sm:$0xf] %vm634_vm3, %v632_v9  ;;  %v633_v19 = vpack.c.bf16 %v625_v11, %v625_v11 }
 0x130   : > { %2027 = vst.msk [vmem:[%s2821_s30 + $0x38] sm:$0xf] %vm634_vm3, %v1056_v10  ;;  %v1057_v20 = vpack.c.bf16 %v1049_v12, %v1049_v12  ;;  %639 = vst.msk [vmem:[%s2821_s30 + $0x10] sm:$0xf] %vm634_vm3, %v630_v15  ;;  %v631_v21 = vpack.c.bf16 %v623_v17, %v623_v17 }
 0x131   : > { %2025 = vst.msk [vmem:[%s2821_s30 + $0x30] sm:$0xf] %vm634_vm3, %v1054_v16  ;;  %v1055_v22 = vpack.c.bf16 %v1047_v18, %v1047_v18  ;;  %642 = vst.msk [vmem:[%s2821_s30 + $0x1c] sm:$0xf] %vm634_vm3, %v633_v19 }
 0x132   : > { %2028 = vst.msk [vmem:[%s2821_s30 + $0x3c] sm:$0xf] %vm634_vm3, %v1057_v20  ;;  %640 = vst.msk [vmem:[%s2821_s30 + $0x14] sm:$0xf] %vm634_vm3, %v631_v21 }
 0x133   : > { %2026 = vst.msk [vmem:[%s2821_s30 + $0x34] sm:$0xf] %vm634_vm3, %v1055_v22 }
 0x162   : > { %v2304_v23 = vpop.f32.mrb[8].mxu0 }
 0x163   : > { %v2344_v24 = vpop.f32.mrb[8].mxu1  ;;  %v1469_v25 = vadd.f32 %v2304_v23, %v2813_v29  ;;  %v1421_v27 = vpop.f32.mrb[9].mxu0 }
 0x164   : > { %v1893_v26 = vadd.f32 %v2344_v24, %v2813_v29  ;;  %v1845_v28 = vpop.f32.mrb[9].mxu1  ;;  %v1467_v30 = vadd.f32 %v2813_v29, %v1421_v27  ;;  %v2305_v33 = vpop.f32.mrb[10].mxu0 }
 0x165   : > { %v1891_v32 = vadd.f32 %v2813_v29, %v1845_v28  ;;  %v2345_v34 = vpop.f32.mrb[10].mxu1  ;;  %v1477_v35 = vpack.c.bf16 %v1469_v25, %v1469_v25  ;;  %v1470_v39 = vadd.f32 %v2305_v33, %v2813_v29  ;;  %v1424_v41 = vpop.f32.mrb[11].mxu0 }
 0x166   : > { %v1901_v37 = vpack.c.bf16 %v1893_v26, %v1893_v26  ;;  %v1894_v40 = vadd.f32 %v2345_v34, %v2813_v29  ;;  %v1848_v31 = vpop.f32.mrb[11].mxu1  ;;  %v1475_v36 = vpack.c.bf16 %v1467_v30, %v1467_v30  ;;  %v1468_v42 = vadd.f32 %v2813_v29, %v1424_v41 }
 0x167   : > { %v1899_v38 = vpack.c.bf16 %v1891_v32, %v1891_v32  ;;  %v1892_v43 = vadd.f32 %v2813_v29, %v1848_v31  ;;  %2052 = vst.msk [vmem:[%s2821_s30 + $0x48] sm:$0xf] %vm634_vm3, %v1477_v35  ;;  %v1478_v44 = vpack.c.bf16 %v1470_v39, %v1470_v39 }
 0x168   : > { %2081 = vst.msk [vmem:[%s2821_s30 + $0x68] sm:$0xf] %vm634_vm3, %v1901_v37  ;;  %v1902_v45 = vpack.c.bf16 %v1894_v40, %v1894_v40  ;;  %2050 = vst.msk [vmem:[%s2821_s30 + $0x40] sm:$0xf] %vm634_vm3, %v1475_v36  ;;  %v1476_v46 = vpack.c.bf16 %v1468_v42, %v1468_v42 }
 0x169   : > { %2079 = vst.msk [vmem:[%s2821_s30 + $0x60] sm:$0xf] %vm634_vm3, %v1899_v38  ;;  %v1900_v47 = vpack.c.bf16 %v1892_v43, %v1892_v43  ;;  %2053 = vst.msk [vmem:[%s2821_s30 + $0x4c] sm:$0xf] %vm634_vm3, %v1478_v44 }
 0x16a   : > { %2082 = vst.msk [vmem:[%s2821_s30 + $0x6c] sm:$0xf] %vm634_vm3, %v1902_v45  ;;  %2051 = vst.msk [vmem:[%s2821_s30 + $0x44] sm:$0xf] %vm634_vm3, %v1476_v46  ;;  %v2308_v48 = vpop.f32.mrb[12].mxu0 }
 0x16b   : > { %2080 = vst.msk [vmem:[%s2821_s30 + $0x64] sm:$0xf] %vm634_vm3, %v1900_v47  ;;  %v2348_v49 = vpop.f32.mrb[12].mxu1  ;;  %v1473_v50 = vadd.f32 %v2308_v48, %v2813_v29  ;;  %v1437_v52 = vpop.f32.mrb[13].mxu0 }
 0x16c   : > { %v1897_v51 = vadd.f32 %v2348_v49, %v2813_v29  ;;  %v1861_v53 = vpop.f32.mrb[13].mxu1  ;;  %v1471_v54 = vadd.f32 %v2813_v29, %v1437_v52  ;;  %v2309_v56 = vpop.f32.mrb[14].mxu0 }
 0x16d   : > { %v1895_v55 = vadd.f32 %v2813_v29, %v1861_v53  ;;  %v2349_v57 = vpop.f32.mrb[14].mxu1  ;;  %v1481_v58 = vpack.c.bf16 %v1473_v50, %v1473_v50  ;;  %v1474_v60 = vadd.f32 %v2309_v56, %v2813_v29  ;;  %v1440_v62 = vpop.f32.mrb[15].mxu0 }
 0x16e   : > { %v1905_v59 = vpack.c.bf16 %v1897_v51, %v1897_v51  ;;  %v1898_v61 = vadd.f32 %v2349_v57, %v2813_v29  ;;  %v1864_v63 = vpop.f32.mrb[15].mxu1  ;;  %v1479_v0 = vpack.c.bf16 %v1471_v54, %v1471_v54  ;;  %v1472_v2 = vadd.f32 %v2813_v29, %v1440_v62 }
 0x16f   : > { %v1903_v1 = vpack.c.bf16 %v1895_v55, %v1895_v55  ;;  %v1896_v3 = vadd.f32 %v2813_v29, %v1864_v63  ;;  %2056 = vst.msk [vmem:[%s2821_s30 + $0x58] sm:$0xf] %vm634_vm3, %v1481_v58  ;;  %v1482_v4 = vpack.c.bf16 %v1474_v60, %v1474_v60 }
 0x170   : > { %2085 = vst.msk [vmem:[%s2821_s30 + $0x78] sm:$0xf] %vm634_vm3, %v1905_v59  ;;  %v1906_v5 = vpack.c.bf16 %v1898_v61, %v1898_v61  ;;  %2054 = vst.msk [vmem:[%s2821_s30 + $0x50] sm:$0xf] %vm634_vm3, %v1479_v0  ;;  %v1480_v6 = vpack.c.bf16 %v1472_v2, %v1472_v2 }
 0x171   : > { %2083 = vst.msk [vmem:[%s2821_s30 + $0x70] sm:$0xf] %vm634_vm3, %v1903_v1  ;;  %v1904_v7 = vpack.c.bf16 %v1896_v3, %v1896_v3  ;;  %2057 = vst.msk [vmem:[%s2821_s30 + $0x5c] sm:$0xf] %vm634_vm3, %v1482_v4 }
 0x172   : > { %2086 = vst.msk [vmem:[%s2821_s30 + $0x7c] sm:$0xf] %vm634_vm3, %v1906_v5  ;;  %2055 = vst.msk [vmem:[%s2821_s30 + $0x54] sm:$0xf] %vm634_vm3, %v1480_v6 }
 0x173   : > { %2084 = vst.msk [vmem:[%s2821_s30 + $0x74] sm:$0xf] %vm634_vm3, %v1904_v7 }
 0x174 PF: > { %s13_s12 = sadd.s32 1, %s2477_s12  }
 0x175   : > { %p10_p4 = scmp.ge.s32.totalorder %s13_s12, 4  }
 0x177   :  { %12 = sbr.rel (!%p10_p4) target bundleno = 1 (0x1), region = 82 }

// kernel: upsamp_forward.3
= control target key start
LH: loop header
LB: loop body
LE: loop exit
PB: predicated region body
PF: predicated region fallthrough
CT: control target
= control target key end

     0   :  { %s11836_s30 = smov 0   ;;  %s13769_s0 = inlined_call_operand.vmem [shape: bf16[2,16,16,2], index: 0, kind: input, shape index: {}]   ;;  %s13770_s1 = inlined_call_operand.vmem [shape: bf16[2,16,16,2], index: 1, kind: input, shape index: {}]   ;;  %s13771_s2 = inlined_call_operand.vmem [shape: bf16[3,3,2,8], index: 2, kind: input, shape index: {}]   ;;  %s13772_s3 = inlined_call_operand.vmem [shape: bf16[3,3,2,8], index: 3, kind: input, shape index: {}]   ;;  %s13773_s4 = inlined_call_operand.vmem [shape: f32[1,8], index: 4, kind: input, shape index: {}]   ;;  %s13774_s5 = inlined_call_operand.vmem [shape: f32[1,8], index: 5, kind: input, shape index: {}]   ;;  %s13775_s6 = inlined_call_operand.vmem [shape: bf16[3,3,8,8], index: 6, kind: input, shape index: {}]   ;;  %s13776_s7 = inlined_call_operand.vmem [shape: f32[1,8], index: 7, kind: input, shape index: {}]   ;;  %s13777_s8 = inlined_call_operand.vmem [shape: f32[1,8], index: 8, kind: input, shape index: {}]   ;;  %s13778_s9 = inlined_call_operand.vmem [shape: f32[2,16,16,8], index: 9, kind: output, shape index: {}]  }
   0x1 LB: > { %s8926_s10 = sadd.s32 4294967295, %s11783_s30   ;;  %p8930_p0 = scmp.ge.s32.totalorder %s11783_s30, 1  ;;  %s11783_s30 = sphi %s11836_s30, %s19_s30  }
   0x2   : > { %p297_p1 = scmp.lt.s32.totalorder %s11783_s30, 3 }
   0x4   : > { %p298_p2 = pnand %p8930_p0, %p297_p1 }
   0x5   : > { %vm860_vm0 = vcmask (!%p298_p2), 1040384   ;;  %v9003_v0 = vld [vmem:[%s13771_s2 + $0x2] sm:$0x1] (!%p298_p2)  ;;  %vm354_vm1 = vcmask (!%p298_p2), 15360   ;;  %vm357_vm2 = vcmask (!%p298_p2), 9216   ;;  %v11785_v2 = vmov (!%p298_p2), 0.0  }
   0x6   : > { %301 = sbr.rel (%p298_p2) target bundleno = 1897 (0x769), region = 56  ;;  %11743 = vmatprep.subr.msk.bf16.mxu0 (!%p298_p2), %vm860_vm0, %v9003_v0  ;;  %v11849_v1 = vsel (!%p298_p2), %vm860_vm0, %v9003_v0, 0  ;;  %355 = vst.msk [vmem:[#allocation2] sm:$0xff] (!%p298_p2), %vm354_vm1, %v11785_v2  ;;  %356 = vst.msk [vmem:[#allocation2 + $0x8] sm:$0xff] (!%p298_p2), %vm354_vm1, %v11785_v2  ;;  %v9020_v3 = vld [vmem:[%s13772_s3 + $0x2] sm:$0x1] (!%p298_p2) }
   0x7   : > { %358 = vst.msk [vmem:[#allocation2 + $0x10] sm:$0x3] (!%p298_p2), %vm357_vm2, %v11785_v2  ;;  %361 = vst.msk [vmem:[#allocation2 + $0x28] sm:$0x3] (!%p298_p2), %vm357_vm2, %v11785_v2  ;;  %p338_p3 = scmp.lt.s32.totalorder (!%p298_p2), %s8926_s10, 1  ;;  %10156 = vmatpush3.bf16.msra.mxu0 (!%p298_p2), %v11849_v1  ;;  %v12103_v26 = vsel (!%p298_p2), %vm860_vm0, %v9020_v3, 0 }
   0x8   : > { %359 = vst.msk [vmem:[#allocation2 + $0x18] sm:$0xff] (!%p298_p2), %vm354_vm1, %v11785_v2  ;;  %360 = vst.msk [vmem:[#allocation2 + $0x20] sm:$0xff] (!%p298_p2), %vm354_vm1, %v11785_v2  ;;  %11745 = vmatprep.subr.msk.bf16.mxu0 (!%p298_p2), %vm860_vm0, %v9020_v3  ;;  %vm6281_vm3 = vcmask (!%p298_p2), 1043456   ;;  %vm464_vm4 = vcmask (!%p298_p2), 64512   ;;  %vm467_vm5 = vcmask (!%p298_p2), 58368  }
   0x9   : > { %362 = vst.msk [vmem:[#allocation2 + $0x30] sm:$0xff] (!%p298_p2), %vm354_vm1, %v11785_v2  ;;  %363 = vst.msk [vmem:[#allocation2 + $0x38] sm:$0xff] (!%p298_p2), %vm354_vm1, %v11785_v2 }
   0xa   : > { %364 = vst.msk [vmem:[#allocation2 + $0x40] sm:$0x3] (!%p298_p2), %vm357_vm2, %v11785_v2  ;;  %367 = vst.msk [vmem:[#allocation2 + $0x58] sm:$0x3] (!%p298_p2), %vm357_vm2, %v11785_v2 }
   0xb   : > { %365 = vst.msk [vmem:[#allocation2 + $0x48] sm:$0xff] (!%p298_p2), %vm354_vm1, %v11785_v2  ;;  %366 = vst.msk [vmem:[#allocation2 + $0x50] sm:$0xff] (!%p298_p2), %vm354_vm1, %v11785_v2 }
   0xc   : > { %368 = vst.msk [vmem:[#allocation2 + $0x60] sm:$0xff] (!%p298_p2), %vm354_vm1, %v11785_v2  ;;  %369 = vst.msk [vmem:[#allocation2 + $0x68] sm:$0xff] (!%p298_p2), %vm354_vm1, %v11785_v2 }
   0xd   : > { %370 = vst.msk [vmem:[#allocation2 + $0x70] sm:$0x3] %vm357_vm2, %v11785_v2  ;;  %373 = vst.msk [vmem:[#allocation2 + $0x88] sm:$0x3] %vm357_vm2, %v11785_v2  ;;  %s13780_s10 = smov (!%p338_p3, %s8926_s10), 1  ;;  %v1825_v7 = vld [vmem:[#allocation2 + $0x2] sm:$0xff] }
   0xe   : > { %371 = vst.msk [vmem:[#allocation2 + $0x78] sm:$0xff] %vm354_vm1, %v11785_v2  ;;  %372 = vst.msk [vmem:[#allocation2 + $0x80] sm:$0xff] %vm354_vm1, %v11785_v2  ;;  %s9399_s15 = sshll.u32 %s13780_s10, 7  ;;  %v1826_v8 = vld [vmem:[#allocation2 + $0xa] sm:$0xff]  ;;  %s9401_s25 = sshll.u32 %s13780_s10, 8 }
   0xf   : > { %374 = vst.msk [vmem:[#allocation2 + $0x90] sm:$0xff] %vm354_vm1, %v11785_v2  ;;  %375 = vst.msk [vmem:[#allocation2 + $0x98] sm:$0xff] %vm354_vm1, %v11785_v2  ;;  %s12082_s18 = scalar_lea.vmem %s13769_s0, %s9399_s15  ;;  %s12087_s21 = scalar_lea.vmem %s13770_s1, %s9399_s15  ;;  %v1889_v14 = vpack.c.bf16 %v1826_v8, %v1825_v7 }
  0x10   : > { %376 = vst.msk [vmem:[#allocation2 + $0xa0] sm:$0x3] %vm357_vm2, %v11785_v2  ;;  %379 = vst.msk [vmem:[#allocation2 + $0xb8] sm:$0x3] %vm357_vm2, %v11785_v2  ;;  %v9403_v4 = vld [vmem:[%s12082_s18] sm:$0xff]   ;;  %v9530_v5 = vld [vmem:[%s12082_s18 + $0x8] sm:$0xff]   ;;  %s13640_s28 = scalar_lea.vmem %s13778_s9, %s9401_s25 }
  0x11   : > { %377 = vst.msk [vmem:[#allocation2 + $0xa8] sm:$0xff] %vm354_vm1, %v11785_v2  ;;  %378 = vst.msk [vmem:[#allocation2 + $0xb0] sm:$0xff] %vm354_vm1, %v11785_v2  ;;  %v9531_v6 = vld [vmem:[%s12082_s18 + $0x10] sm:$0xff]   ;;  %v9404_v9 = vunpack.c.l.bf16 %v9403_v4  ;;  %v9405_v10 = vunpack.c.h.bf16 %v9403_v4  ;;  %v9408_v11 = vunpack.c.l.bf16 %v9530_v5  ;;  %v9409_v12 = vunpack.c.h.bf16 %v9530_v5  ;;  %v9532_v13 = vld [vmem:[%s12082_s18 + $0x18] sm:$0xff]   ;;  %10157 = vmatprep.mubr.msk.bf16.mxu0 %vm354_vm1, %v1889_v14 }
  0x12   : > { %380 = vst.msk [vmem:[#allocation2 + $0xc0] sm:$0xff] %vm354_vm1, %v11785_v2  ;;  %381 = vst.msk [vmem:[#allocation2 + $0xc8] sm:$0xff] %vm354_vm1, %v11785_v2  ;;  %v9412_v15 = vunpack.c.l.bf16 %v9531_v6  ;;  %v9413_v16 = vunpack.c.h.bf16 %v9531_v6  ;;  %v9416_v17 = vunpack.c.l.bf16 %v9532_v13  ;;  %v9533_v18 = vld [vmem:[%s12082_s18 + $0x20] sm:$0xff]   ;;  %v9534_v19 = vld [vmem:[%s12082_s18 + $0x28] sm:$0xff]   ;;  %v9417_v21 = vunpack.c.h.bf16 %v9532_v13 }
  0x13   : > { %382 = vst.msk [vmem:[#allocation2 + $0xd0] sm:$0x3] %vm357_vm2, %v11785_v2  ;;  %385 = vst.msk [vmem:[#allocation2 + $0xe8] sm:$0x3] %vm357_vm2, %v11785_v2  ;;  %v9535_v20 = vld [vmem:[%s12082_s18 + $0x30] sm:$0xff]   ;;  %v9420_v22 = vunpack.c.l.bf16 %v9533_v18  ;;  %v9421_v23 = vunpack.c.h.bf16 %v9533_v18  ;;  %v9424_v24 = vunpack.c.l.bf16 %v9534_v19  ;;  %v9467_v25 = vld [vmem:[%s12087_s21] sm:$0xff]   ;;  %v9425_v27 = vunpack.c.h.bf16 %v9534_v19 }
  0x14   : > { %383 = vst.msk [vmem:[#allocation2 + $0xd8] sm:$0xff] %vm354_vm1, %v11785_v2  ;;  %384 = vst.msk [vmem:[#allocation2 + $0xe0] sm:$0xff] %vm354_vm1, %v11785_v2  ;;  %v9428_v28 = vunpack.c.l.bf16 %v9535_v20  ;;  %v9429_v29 = vunpack.c.h.bf16 %v9535_v20  ;;  %v9545_v30 = vld [vmem:[%s12087_s21 + $0x8] sm:$0xff]   ;;  %v9546_v31 = vld [vmem:[%s12087_s21 + $0x10] sm:$0xff]   ;;  %v9468_v33 = vunpack.c.l.bf16 %v9467_v25  ;;  %v9469_v34 = vunpack.c.h.bf16 %v9467_v25 }
  0x15   : > { %386 = vst.msk [vmem:[#allocation2 + $0xf0] sm:$0xff] %vm354_vm1, %v11785_v2  ;;  %387 = vst.msk [vmem:[#allocation2 + $0xf8] sm:$0xff] %vm354_vm1, %v11785_v2  ;;  %v9547_v32 = vld [vmem:[%s12087_s21 + $0x18] sm:$0xff]   ;;  %v9472_v35 = vunpack.c.l.bf16 %v9545_v30  ;;  %v9473_v36 = vunpack.c.h.bf16 %v9545_v30  ;;  %v9548_v37 = vld [vmem:[%s12087_s21 + $0x20] sm:$0xff]   ;;  %v9476_v40 = vunpack.c.l.bf16 %v9546_v31  ;;  %v9477_v41 = vunpack.c.h.bf16 %v9546_v31 }
  0x16   : > { %388 = vst.msk [vmem:[#allocation2 + $0x100] sm:$0x3] %vm357_vm2, %v11785_v2  ;;  %391 = vst.msk [vmem:[#allocation2 + $0x118] sm:$0x3] %vm357_vm2, %v11785_v2  ;;  %v9549_v38 = vld [vmem:[%s12087_s21 + $0x28] sm:$0xff]   ;;  %v9550_v39 = vld [vmem:[%s12087_s21 + $0x30] sm:$0xff]   ;;  %v9480_v42 = vunpack.c.l.bf16 %v9547_v32  ;;  %v9481_v43 = vunpack.c.h.bf16 %v9547_v32  ;;  %v9484_v47 = vunpack.c.l.bf16 %v9548_v37  ;;  %v9485_v48 = vunpack.c.h.bf16 %v9548_v37 }
  0x17   : > { %389 = vst.msk [vmem:[#allocation2 + $0x108] sm:$0xff] %vm354_vm1, %v11785_v2  ;;  %390 = vst.msk [vmem:[#allocation2 + $0x110] sm:$0xff] %vm354_vm1, %v11785_v2  ;;  %v9551_v44 = vld [vmem:[%s12087_s21 + $0x38] sm:$0xff]   ;;  %v9552_v45 = vld [vmem:[%s12087_s21 + $0x40] sm:$0xff]   ;;  %v9488_v49 = vunpack.c.l.bf16 %v9549_v38  ;;  %v9489_v50 = vunpack.c.h.bf16 %v9549_v38  ;;  %v9492_v53 = vunpack.c.l.bf16 %v9550_v39  ;;  %v9493_v54 = vunpack.c.h.bf16 %v9550_v39 }
  0x18   : > { %392 = vst.msk [vmem:[#allocation2 + $0x120] sm:$0xff] %vm354_vm1, %v11785_v2  ;;  %393 = vst.msk [vmem:[#allocation2 + $0x128] sm:$0xff] %vm354_vm1, %v11785_v2  ;;  %v9553_v46 = vld [vmem:[%s12087_s21 + $0x48] sm:$0xff]   ;;  %v9554_v51 = vld [vmem:[%s12087_s21 + $0x50] sm:$0xff]   ;;  %v9496_v55 = vunpack.c.l.bf16 %v9551_v44  ;;  %v9497_v56 = vunpack.c.h.bf16 %v9551_v44  ;;  %v9500_v59 = vunpack.c.l.bf16 %v9552_v45  ;;  %v9501_v60 = vunpack.c.h.bf16 %v9552_v45 }
  0x19   : > { %394 = vst.msk [vmem:[#allocation2 + $0x130] sm:$0x3] %vm357_vm2, %v11785_v2  ;;  %397 = vst.msk [vmem:[#allocation2 + $0x148] sm:$0x3] %vm357_vm2, %v11785_v2  ;;  %v9555_v52 = vld [vmem:[%s12087_s21 + $0x58] sm:$0xff]   ;;  %v9556_v57 = vld [vmem:[%s12087_s21 + $0x60] sm:$0xff]   ;;  %v9504_v61 = vunpack.c.l.bf16 %v9553_v46  ;;  %v9505_v62 = vunpack.c.h.bf16 %v9553_v46  ;;  %v9508_v6 = vunpack.c.l.bf16 %v9554_v51  ;;  %v9509_v7 = vunpack.c.h.bf16 %v9554_v51 }
  0x1a   : > { %395 = vst.msk [vmem:[#allocation2 + $0x138] sm:$0xff] %vm354_vm1, %v11785_v2  ;;  %396 = vst.msk [vmem:[#allocation2 + $0x140] sm:$0xff] %vm354_vm1, %v11785_v2  ;;  %v9557_v58 = vld [vmem:[%s12087_s21 + $0x68] sm:$0xff]   ;;  %v9558_v63 = vld [vmem:[%s12087_s21 + $0x70] sm:$0xff]   ;;  %v9512_v8 = vunpack.c.l.bf16 %v9555_v52  ;;  %v9517_v13 = vunpack.c.h.bf16 %v9556_v57 }
  0x1b   : > { %398 = vst.msk [vmem:[#allocation2 + $0x150] sm:$0xff] %vm354_vm1, %v11785_v2  ;;  %399 = vst.msk [vmem:[#allocation2 + $0x158] sm:$0xff] %vm354_vm1, %v11785_v2  ;;  %v9536_v0 = vld [vmem:[%s12082_s18 + $0x38] sm:$0xff]   ;;  %v9520_v14 = vunpack.c.l.bf16 %v9557_v58  ;;  %v9521_v18 = vunpack.c.h.bf16 %v9557_v58  ;;  %v9524_v19 = vunpack.c.l.bf16 %v9558_v63  ;;  %v9538_v20 = vld [vmem:[%s12082_s18 + $0x48] sm:$0xff]  }
  0x1c   : > { %400 = vst.msk [vmem:[#allocation2 + $0x160] sm:$0x3] %vm357_vm2, %v11785_v2  ;;  %403 = vst.msk [vmem:[#allocation2 + $0x178] sm:$0x3] %vm357_vm2, %v11785_v2  ;;  %v9441_v32 = vunpack.c.h.bf16 %v9538_v20  ;;  %v9542_v51 = vld [vmem:[%s12082_s18 + $0x68] sm:$0xff]  }
  0x1d   : > { %401 = vst.msk [vmem:[#allocation2 + $0x168] sm:$0xff] %vm354_vm1, %v11785_v2  ;;  %402 = vst.msk [vmem:[#allocation2 + $0x170] sm:$0xff] %vm354_vm1, %v11785_v2  ;;  %v9456_v58 = vunpack.c.l.bf16 %v9542_v51 }
  0x1e   : > { %404 = vst.msk [vmem:[#allocation2 + $0x180] sm:$0xff] %vm354_vm1, %v11785_v2  ;;  %405 = vst.msk [vmem:[#allocation2 + $0x188] sm:$0xff] %vm354_vm1, %v11785_v2 }
  0x1f   : > { %406 = vst.msk [vmem:[#allocation2 + $0x190] sm:$0x3] %vm357_vm2, %v11785_v2  ;;  %409 = vst.msk [vmem:[#allocation2 + $0x1a8] sm:$0x3] %vm357_vm2, %v11785_v2 }
  0x20   : > { %407 = vst.msk [vmem:[#allocation2 + $0x198] sm:$0xff] %vm354_vm1, %v11785_v2  ;;  %408 = vst.msk [vmem:[#allocation2 + $0x1a0] sm:$0xff] %vm354_vm1, %v11785_v2 }
  0x21   : > { %410 = vst.msk [vmem:[#allocation3] sm:$0xff] %vm354_vm1, %v11785_v2  ;;  %411 = vst.msk [vmem:[#allocation3 + $0x8] sm:$0xff] %vm354_vm1, %v11785_v2 }
  0x22   : > { %412 = vst.msk [vmem:[#allocation3 + $0x10] sm:$0x3] %vm357_vm2, %v11785_v2  ;;  %415 = vst.msk [vmem:[#allocation3 + $0x28] sm:$0x3] %vm357_vm2, %v11785_v2 }
  0x23   : > { %413 = vst.msk [vmem:[#allocation3 + $0x18] sm:$0xff] %vm354_vm1, %v11785_v2  ;;  %414 = vst.msk [vmem:[#allocation3 + $0x20] sm:$0xff] %vm354_vm1, %v11785_v2 }
  0x24   : > { %416 = vst.msk [vmem:[#allocation3 + $0x30] sm:$0xff] %vm354_vm1, %v11785_v2  ;;  %417 = vst.msk [vmem:[#allocation3 + $0x38] sm:$0xff] %vm354_vm1, %v11785_v2 }
  0x25   : > { %418 = vst.msk [vmem:[#allocation3 + $0x40] sm:$0x3] %vm357_vm2, %v11785_v2  ;;  %421 = vst.msk [vmem:[#allocation3 + $0x58] sm:$0x3] %vm357_vm2, %v11785_v2 }
  0x26   : > { %419 = vst.msk [vmem:[#allocation3 + $0x48] sm:$0xff] %vm354_vm1, %v11785_v2  ;;  %420 = vst.msk [vmem:[#allocation3 + $0x50] sm:$0xff] %vm354_vm1, %v11785_v2 }
  0x27   : > { %422 = vst.msk [vmem:[#allocation3 + $0x60] sm:$0xff] %vm354_vm1, %v11785_v2  ;;  %423 = vst.msk [vmem:[#allocation3 + $0x68] sm:$0xff] %vm354_vm1, %v11785_v2 }
  0x28   : > { %424 = vst.msk [vmem:[#allocation3 + $0x70] sm:$0x3] %vm357_vm2, %v11785_v2  ;;  %427 = vst.msk [vmem:[#allocation3 + $0x88] sm:$0x3] %vm357_vm2, %v11785_v2 }
  0x29   : > { %425 = vst.msk [vmem:[#allocation3 + $0x78] sm:$0xff] %vm354_vm1, %v11785_v2  ;;  %426 = vst.msk [vmem:[#allocation3 + $0x80] sm:$0xff] %vm354_vm1, %v11785_v2  ;;  %v1858_v46 = vld [vmem:[#allocation3 + $0xa] sm:$0xff] }
  0x2a   : > { %428 = vst.msk [vmem:[#allocation3 + $0x90] sm:$0xff] %vm354_vm1, %v11785_v2  ;;  %429 = vst.msk [vmem:[#allocation3 + $0x98] sm:$0xff] %vm354_vm1, %v11785_v2 }
  0x2b   : > { %430 = vst.msk [vmem:[#allocation3 + $0xa0] sm:$0x3] %vm357_vm2, %v11785_v2  ;;  %433 = vst.msk [vmem:[#allocation3 + $0xb8] sm:$0x3] %vm357_vm2, %v11785_v2 }
  0x2c   : > { %431 = vst.msk [vmem:[#allocation3 + $0xa8] sm:$0xff] %vm354_vm1, %v11785_v2  ;;  %432 = vst.msk [vmem:[#allocation3 + $0xb0] sm:$0xff] %vm354_vm1, %v11785_v2 }
  0x2d   : > { %434 = vst.msk [vmem:[#allocation3 + $0xc0] sm:$0xff] %vm354_vm1, %v11785_v2  ;;  %435 = vst.msk [vmem:[#allocation3 + $0xc8] sm:$0xff] %vm354_vm1, %v11785_v2 }
  0x2e   : > { %436 = vst.msk [vmem:[#allocation3 + $0xd0] sm:$0x3] %vm357_vm2, %v11785_v2  ;;  %439 = vst.msk [vmem:[#allocation3 + $0xe8] sm:$0x3] %vm357_vm2, %v11785_v2 }
  0x2f   : > { %437 = vst.msk [vmem:[#allocation3 + $0xd8] sm:$0xff] %vm354_vm1, %v11785_v2  ;;  %438 = vst.msk [vmem:[#allocation3 + $0xe0] sm:$0xff] %vm354_vm1, %v11785_v2 }
  0x30   : > { %440 = vst.msk [vmem:[#allocation3 + $0xf0] sm:$0xff] %vm354_vm1, %v11785_v2  ;;  %441 = vst.msk [vmem:[#allocation3 + $0xf8] sm:$0xff] %vm354_vm1, %v11785_v2 }
  0x31   : > { %442 = vst.msk [vmem:[#allocation3 + $0x100] sm:$0x3] %vm357_vm2, %v11785_v2  ;;  %445 = vst.msk [vmem:[#allocation3 + $0x118] sm:$0x3] %vm357_vm2, %v11785_v2 }
  0x32   : > { %443 = vst.msk [vmem:[#allocation3 + $0x108] sm:$0xff] %vm354_vm1, %v11785_v2  ;;  %444 = vst.msk [vmem:[#allocation3 + $0x110] sm:$0xff] %vm354_vm1, %v11785_v2 }
  0x33   : > { %446 = vst.msk [vmem:[#allocation3 + $0x120] sm:$0xff] %vm354_vm1, %v11785_v2  ;;  %447 = vst.msk [vmem:[#allocation3 + $0x128] sm:$0xff] %vm354_vm1, %v11785_v2 }
  0x34   : > { %448 = vst.msk [vmem:[#allocation3 + $0x130] sm:$0x3] %vm357_vm2, %v11785_v2  ;;  %451 = vst.msk [vmem:[#allocation3 + $0x148] sm:$0x3] %vm357_vm2, %v11785_v2 }
  0x35   : > { %449 = vst.msk [vmem:[#allocation3 + $0x138] sm:$0xff] %vm354_vm1, %v11785_v2  ;;  %450 = vst.msk [vmem:[#allocation3 + $0x140] sm:$0xff] %vm354_vm1, %v11785_v2 }
  0x36   : > { %452 = vst.msk [vmem:[#allocation3 + $0x150] sm:$0xff] %vm354_vm1, %v11785_v2  ;;  %453 = vst.msk [vmem:[#allocation3 + $0x158] sm:$0xff] %vm354_vm1, %v11785_v2 }
  0x37   : > { %454 = vst.msk [vmem:[#allocation3 + $0x160] sm:$0x3] %vm357_vm2, %v11785_v2  ;;  %457 = vst.msk [vmem:[#allocation3 + $0x178] sm:$0x3] %vm357_vm2, %v11785_v2 }
  0x38   : > { %455 = vst.msk [vmem:[#allocation3 + $0x168] sm:$0xff] %vm354_vm1, %v11785_v2  ;;  %456 = vst.msk [vmem:[#allocation3 + $0x170] sm:$0xff] %vm354_vm1, %v11785_v2 }
  0x39   : > { %458 = vst.msk [vmem:[#allocation3 + $0x180] sm:$0xff] %vm354_vm1, %v11785_v2  ;;  %459 = vst.msk [vmem:[#allocation3 + $0x188] sm:$0xff] %vm354_vm1, %v11785_v2 }
  0x3a   : > { %460 = vst.msk [vmem:[#allocation3 + $0x190] sm:$0x3] %vm357_vm2, %v11785_v2  ;;  %463 = vst.msk [vmem:[#allocation3 + $0x1a8] sm:$0x3] %vm357_vm2, %v11785_v2 }
  0x3b   : > { %461 = vst.msk [vmem:[#allocation3 + $0x198] sm:$0xff] %vm354_vm1, %v11785_v2  ;;  %462 = vst.msk [vmem:[#allocation3 + $0x1a0] sm:$0xff] %vm354_vm1, %v11785_v2 }
  0x3c   : > { %585 = vst.msk [vmem:[#allocation2 + $0x19] sm:$0xff] %vm354_vm1, %v9404_v9  ;;  %586 = vst.msk [vmem:[#allocation2 + $0x21] sm:$0xff] %vm354_vm1, %v9405_v10  ;;  %v9513_v9 = vunpack.c.h.bf16 %v9555_v52 }
  0x3d   : > { %587 = vst.msk [vmem:[#allocation2 + $0x31] sm:$0xff] %vm354_vm1, %v9408_v11  ;;  %588 = vst.msk [vmem:[#allocation2 + $0x39] sm:$0xff] %vm354_vm1, %v9409_v12  ;;  %v9516_v12 = vunpack.c.l.bf16 %v9556_v57  ;;  %v9544_v57 = vld [vmem:[%s12082_s18 + $0x78] sm:$0xff]  }
  0x3e   : > { %589 = vst.msk [vmem:[#allocation2 + $0x49] sm:$0xff] %vm354_vm1, %v9412_v15  ;;  %590 = vst.msk [vmem:[#allocation2 + $0x51] sm:$0xff] %vm354_vm1, %v9413_v16  ;;  %v9537_v15 = vld [vmem:[%s12082_s18 + $0x40] sm:$0xff]  }
  0x3f   : > { %591 = vst.msk [vmem:[#allocation2 + $0x61] sm:$0xff] %vm354_vm1, %v9416_v17  ;;  %592 = vst.msk [vmem:[#allocation2 + $0x69] sm:$0xff] %vm354_vm1, %v9417_v21  ;;  %v12154_v17 = vld [vmem:[%s13771_s2 + $0x3] sm:$0x1]  ;;  %v9539_v21 = vld [vmem:[%s12082_s18 + $0x50] sm:$0xff]  }
  0x40   : > { %593 = vst.msk [vmem:[#allocation2 + $0x79] sm:$0xff] %vm354_vm1, %v9420_v22  ;;  %594 = vst.msk [vmem:[#allocation2 + $0x81] sm:$0xff] %vm354_vm1, %v9421_v23  ;;  %v9525_v22 = vunpack.c.h.bf16 %v9558_v63  ;;  %v9432_v23 = vunpack.c.l.bf16 %v9536_v0  ;;  %v9465_v63 = vunpack.c.h.bf16 %v9544_v57 }
  0x41   : > { %595 = vst.msk [vmem:[#allocation2 + $0x91] sm:$0xff] %vm354_vm1, %v9424_v24  ;;  %596 = vst.msk [vmem:[#allocation2 + $0x99] sm:$0xff] %vm354_vm1, %v9425_v27  ;;  %v9433_v24 = vunpack.c.h.bf16 %v9536_v0 }
  0x42   : > { %597 = vst.msk [vmem:[#allocation2 + $0xa9] sm:$0xff] %vm354_vm1, %v9428_v28  ;;  %598 = vst.msk [vmem:[#allocation2 + $0xb1] sm:$0xff] %vm354_vm1, %v9429_v29  ;;  %v9436_v28 = vunpack.c.l.bf16 %v9537_v15  ;;  %v9437_v29 = vunpack.c.h.bf16 %v9537_v15 }
  0x43   : > { %682 = vst.msk [vmem:[#allocation3 + $0x19] sm:$0xff] %vm354_vm1, %v9468_v33  ;;  %683 = vst.msk [vmem:[#allocation3 + $0x21] sm:$0xff] %vm354_vm1, %v9469_v34  ;;  %v1827_v3 = vld [vmem:[#allocation2 + $0x1a] sm:$0xff]  ;;  %v1828_v4 = vld [vmem:[#allocation2 + $0x22] sm:$0xff]  ;;  %v9444_v33 = vunpack.c.l.bf16 %v9539_v21  ;;  %v9445_v34 = vunpack.c.h.bf16 %v9539_v21 }
  0x44   : > { %684 = vst.msk [vmem:[#allocation3 + $0x31] sm:$0xff] %vm354_vm1, %v9472_v35  ;;  %685 = vst.msk [vmem:[#allocation3 + $0x39] sm:$0xff] %vm354_vm1, %v9473_v36  ;;  %v1829_v5 = vld [vmem:[#allocation2 + $0x32] sm:$0xff]  ;;  %v1890_v10 = vpack.c.bf16 %v1828_v4, %v1827_v3  ;;  %v1830_v11 = vld [vmem:[#allocation2 + $0x3a] sm:$0xff] }
  0x45   : > { %686 = vst.msk [vmem:[#allocation3 + $0x49] sm:$0xff] %vm354_vm1, %v9476_v40  ;;  %687 = vst.msk [vmem:[#allocation3 + $0x51] sm:$0xff] %vm354_vm1, %v9477_v41  ;;  %v1891_v16 = vpack.c.bf16 %v1830_v11, %v1829_v5  ;;  %v1831_v25 = vld [vmem:[#allocation2 + $0x4a] sm:$0xff]  ;;  %v1832_v27 = vld [vmem:[#allocation2 + $0x52] sm:$0xff] }
  0x46   : > { %688 = vst.msk [vmem:[#allocation3 + $0x61] sm:$0xff] %vm354_vm1, %v9480_v42  ;;  %689 = vst.msk [vmem:[#allocation3 + $0x69] sm:$0xff] %vm354_vm1, %v9481_v43  ;;  %10158 = vmatmul.mubr.msk.bf16.vlgmr.msra.gmra.mrb[0].mxu0 %vm354_vm1, %v1890_v10  ;;  %v1833_v30 = vld [vmem:[#allocation2 + $0x62] sm:$0xff]  ;;  %v1834_v31 = vld [vmem:[#allocation2 + $0x6a] sm:$0xff]  ;;  %v1892_v35 = vpack.c.bf16 %v1832_v27, %v1831_v25 }
  0x47   : > { %690 = vst.msk [vmem:[#allocation3 + $0x79] sm:$0xff] %vm354_vm1, %v9484_v47  ;;  %691 = vst.msk [vmem:[#allocation3 + $0x81] sm:$0xff] %vm354_vm1, %v9485_v48  ;;  %10190 = vmatpush3.bf16.msra.mxu0 %v12103_v26  ;;  %10161 = vmatprep.mubr.msk.bf16.mxu0 %vm354_vm1, %v1891_v16  ;;  %v9440_v26 = vunpack.c.l.bf16 %v9538_v20  ;;  %v1893_v36 = vpack.c.bf16 %v1834_v31, %v1833_v30  ;;  %v1835_v37 = vld [vmem:[#allocation2 + $0x7a] sm:$0xff]  ;;  %v1836_v38 = vld [vmem:[#allocation2 + $0x82] sm:$0xff] }
  0x48   : > { %692 = vst.msk [vmem:[#allocation3 + $0x91] sm:$0xff] %vm354_vm1, %v9488_v49  ;;  %693 = vst.msk [vmem:[#allocation3 + $0x99] sm:$0xff] %vm354_vm1, %v9489_v50  ;;  %11746 = vmatprep.subr.msk.bf16.mxu0 %vm860_vm0, %v12154_v17  ;;  %v1837_v39 = vld [vmem:[#allocation2 + $0x92] sm:$0xff]  ;;  %v1838_v40 = vld [vmem:[#allocation2 + $0x9a] sm:$0xff]  ;;  %v1894_v41 = vpack.c.bf16 %v1836_v38, %v1835_v37 }
  0x49   : > { %694 = vst.msk [vmem:[#allocation3 + $0xa9] sm:$0xff] %vm354_vm1, %v9492_v53  ;;  %695 = vst.msk [vmem:[#allocation3 + $0xb1] sm:$0xff] %vm354_vm1, %v9493_v54  ;;  %v1895_v42 = vpack.c.bf16 %v1838_v40, %v1837_v39  ;;  %v1857_v43 = vld [vmem:[#allocation3 + $0x2] sm:$0xff]  ;;  %v1839_v44 = vld [vmem:[#allocation2 + $0xaa] sm:$0xff] }
  0x4a   : > { %696 = vst.msk [vmem:[#allocation3 + $0xc1] sm:$0xff] %vm354_vm1, %v9496_v55  ;;  %697 = vst.msk [vmem:[#allocation3 + $0xc9] sm:$0xff] %vm354_vm1, %v9497_v56  ;;  %v1840_v45 = vld [vmem:[#allocation2 + $0xb2] sm:$0xff]  ;;  %v2151_v48 = vpack.c.bf16 %v1858_v46, %v1857_v43  ;;  %v9541_v50 = vld [vmem:[%s12082_s18 + $0x60] sm:$0xff]  }
  0x4b   : > { %698 = vst.msk [vmem:[#allocation3 + $0xd9] sm:$0xff] %vm354_vm1, %v9500_v59  ;;  %699 = vst.msk [vmem:[#allocation3 + $0xe1] sm:$0xff] %vm354_vm1, %v9501_v60  ;;  %v1896_v47 = vpack.c.bf16 %v1840_v45, %v1839_v44  ;;  %v9540_v49 = vld [vmem:[%s12082_s18 + $0x58] sm:$0xff]   ;;  %v9452_v54 = vunpack.c.l.bf16 %v9541_v50  ;;  %v9453_v55 = vunpack.c.h.bf16 %v9541_v50  ;;  %v9543_v56 = vld [vmem:[%s12082_s18 + $0x70] sm:$0xff]   ;;  %v9457_v59 = vunpack.c.h.bf16 %v9542_v51 }
  0x4c   : > { %700 = vst.msk [vmem:[#allocation3 + $0xf1] sm:$0xff] %vm354_vm1, %v9504_v61  ;;  %701 = vst.msk [vmem:[#allocation3 + $0xf9] sm:$0xff] %vm354_vm1, %v9505_v62  ;;  %v9448_v52 = vunpack.c.l.bf16 %v9540_v49  ;;  %v9449_v53 = vunpack.c.h.bf16 %v9540_v49  ;;  %v9460_v60 = vunpack.c.l.bf16 %v9543_v56  ;;  %v9461_v61 = vunpack.c.h.bf16 %v9543_v56  ;;  %v1859_v0 = vld [vmem:[#allocation3 + $0x1a] sm:$0xff]  ;;  %v1860_v3 = vld [vmem:[#allocation3 + $0x22] sm:$0xff] }
  0x4d   : > { %702 = vst.msk [vmem:[#allocation3 + $0x109] sm:$0xff] %vm354_vm1, %v9508_v6  ;;  %703 = vst.msk [vmem:[#allocation3 + $0x111] sm:$0xff] %vm354_vm1, %v9509_v7  ;;  %v9464_v62 = vunpack.c.l.bf16 %v9544_v57  ;;  %v1861_v4 = vld [vmem:[#allocation3 + $0x32] sm:$0xff]  ;;  %v1862_v5 = vld [vmem:[#allocation3 + $0x3a] sm:$0xff]  ;;  %v2152_v6 = vpack.c.bf16 %v1860_v3, %v1859_v0 }
  0x4e   : > { %704 = vst.msk [vmem:[#allocation3 + $0x121] sm:$0xff] %vm354_vm1, %v9512_v8  ;;  %705 = vst.msk [vmem:[#allocation3 + $0x129] sm:$0xff] %vm354_vm1, %v9513_v9  ;;  %10162 = vmatmul.mubr.msk.bf16.gmra.mrb[4].mxu0 %vm354_vm1, %v1892_v35  ;;  %v2153_v7 = vpack.c.bf16 %v1862_v5, %v1861_v4  ;;  %v2544_v8 = vsel %vm860_vm0, %v12154_v17, 0  ;;  %v12207_v9 = vld [vmem:[%s13772_s3 + $0x3] sm:$0x1]  ;;  %v1863_v10 = vld [vmem:[#allocation3 + $0x4a] sm:$0xff] }
  0x4f   : > { %706 = vst.msk [vmem:[#allocation3 + $0x139] sm:$0xff] %vm354_vm1, %v9516_v12  ;;  %707 = vst.msk [vmem:[#allocation3 + $0x141] sm:$0xff] %vm354_vm1, %v9517_v13  ;;  %10165 = vmatprep.mubr.msk.bf16.mxu0 %vm354_vm1, %v1893_v36  ;;  %v1864_v11 = vld [vmem:[#allocation3 + $0x52] sm:$0xff]  ;;  %v1865_v12 = vld [vmem:[#allocation3 + $0x62] sm:$0xff] }
  0x50   : > { %708 = vst.msk [vmem:[#allocation3 + $0x151] sm:$0xff] %vm354_vm1, %v9520_v14  ;;  %709 = vst.msk [vmem:[#allocation3 + $0x159] sm:$0xff] %vm354_vm1, %v9521_v18  ;;  %v1866_v13 = vld [vmem:[#allocation3 + $0x6a] sm:$0xff]  ;;  %v2154_v14 = vpack.c.bf16 %v1864_v11, %v1863_v10  ;;  %v1867_v16 = vld [vmem:[#allocation3 + $0x7a] sm:$0xff] }
  0x51   : > { %710 = vst.msk [vmem:[#allocation3 + $0x169] sm:$0xff] %vm354_vm1, %v9524_v19  ;;  %711 = vst.msk [vmem:[#allocation3 + $0x171] sm:$0xff] %vm354_vm1, %v9525_v22  ;;  %v2155_v15 = vpack.c.bf16 %v1866_v13, %v1865_v12  ;;  %v1868_v17 = vld [vmem:[#allocation3 + $0x82] sm:$0xff]  ;;  %v1869_v18 = vld [vmem:[#allocation3 + $0x92] sm:$0xff] }
  0x52   : > { %599 = vst.msk [vmem:[#allocation2 + $0xc1] sm:$0xff] %vm354_vm1, %v9432_v23  ;;  %600 = vst.msk [vmem:[#allocation2 + $0xc9] sm:$0xff] %vm354_vm1, %v9433_v24  ;;  %v1870_v19 = vld [vmem:[#allocation3 + $0x9a] sm:$0xff]  ;;  %v2156_v20 = vpack.c.bf16 %v1868_v17, %v1867_v16  ;;  %v1871_v22 = vld [vmem:[#allocation3 + $0xaa] sm:$0xff] }
  0x53   : > { %601 = vst.msk [vmem:[#allocation2 + $0xd9] sm:$0xff] %vm354_vm1, %v9436_v28  ;;  %602 = vst.msk [vmem:[#allocation2 + $0xe1] sm:$0xff] %vm354_vm1, %v9437_v29  ;;  %v2157_v21 = vpack.c.bf16 %v1870_v19, %v1869_v18  ;;  %v1872_v23 = vld [vmem:[#allocation3 + $0xb2] sm:$0xff]  ;;  %v1873_v24 = vld [vmem:[#allocation3 + $0xc2] sm:$0xff] }
  0x54   : > { %603 = vst.msk [vmem:[#allocation2 + $0xf1] sm:$0xff] %vm354_vm1, %v9440_v26  ;;  %604 = vst.msk [vmem:[#allocation2 + $0xf9] sm:$0xff] %vm354_vm1, %v9441_v32  ;;  %v1874_v25 = vld [vmem:[#allocation3 + $0xca] sm:$0xff]  ;;  %v2158_v27 = vpack.c.bf16 %v1872_v23, %v1871_v22  ;;  %v1875_v29 = vld [vmem:[#allocation3 + $0xda] sm:$0xff] }
  0x55   : > { %605 = vst.msk [vmem:[#allocation2 + $0x109] sm:$0xff] %vm354_vm1, %v9444_v33  ;;  %606 = vst.msk [vmem:[#allocation2 + $0x111] sm:$0xff] %vm354_vm1, %v9445_v34  ;;  %v2159_v28 = vpack.c.bf16 %v1874_v25, %v1873_v24  ;;  %v1876_v30 = vld [vmem:[#allocation3 + $0xe2] sm:$0xff]  ;;  %v1877_v31 = vld [vmem:[#allocation3 + $0xf2] sm:$0xff] }
  0x56   : > { %10166 = vmatmul.mubr.msk.bf16.gmra.mrb[8].mxu0 %vm354_vm1, %v1894_v41  ;;  %607 = vst.msk [vmem:[#allocation2 + $0x121] sm:$0xff] %vm354_vm1, %v9448_v52  ;;  %608 = vst.msk [vmem:[#allocation2 + $0x129] sm:$0xff] %vm354_vm1, %v9449_v53  ;;  %v1878_v26 = vld [vmem:[#allocation3 + $0xfa] sm:$0xff]  ;;  %v2160_v32 = vpack.c.bf16 %v1876_v30, %v1875_v29  ;;  %v1879_v34 = vld [vmem:[#allocation3 + $0x10a] sm:$0xff] }
  0x57   : > { %10169 = vmatprep.mubr.msk.bf16.mxu0 %vm354_vm1, %v1895_v42  ;;  %609 = vst.msk [vmem:[#allocation2 + $0x139] sm:$0xff] %vm354_vm1, %v9452_v54  ;;  %610 = vst.msk [vmem:[#allocation2 + $0x141] sm:$0xff] %vm354_vm1, %v9453_v55  ;;  %v2161_v33 = vpack.c.bf16 %v1878_v26, %v1877_v31  ;;  %v1880_v35 = vld [vmem:[#allocation3 + $0x112] sm:$0xff]  ;;  %v1881_v36 = vld [vmem:[#allocation3 + $0x122] sm:$0xff] }
  0x58   : > { %611 = vst.msk [vmem:[#allocation2 + $0x151] sm:$0xff] %vm354_vm1, %v9456_v58  ;;  %612 = vst.msk [vmem:[#allocation2 + $0x159] sm:$0xff] %vm354_vm1, %v9457_v59  ;;  %v1882_v37 = vld [vmem:[#allocation3 + $0x12a] sm:$0xff]  ;;  %v2162_v38 = vpack.c.bf16 %v1880_v35, %v1879_v34  ;;  %v1883_v40 = vld [vmem:[#allocation3 + $0x13a] sm:$0xff] }
  0x59   : > { %613 = vst.msk [vmem:[#allocation2 + $0x169] sm:$0xff] %vm354_vm1, %v9460_v60  ;;  %614 = vst.msk [vmem:[#allocation2 + $0x171] sm:$0xff] %vm354_vm1, %v9461_v61  ;;  %v2163_v39 = vpack.c.bf16 %v1882_v37, %v1881_v36  ;;  %v1884_v41 = vld [vmem:[#allocation3 + $0x142] sm:$0xff]  ;;  %v1885_v42 = vld [vmem:[#allocation3 + $0x152] sm:$0xff]  ;;  %v2806_v61 = vsel %vm860_vm0, %v12207_v9, 0 }
  0x5a   : > { %615 = vst.msk [vmem:[#allocation2 + $0x181] sm:$0xff] %vm354_vm1, %v9464_v62  ;;  %616 = vst.msk [vmem:[#allocation2 + $0x189] sm:$0xff] %vm354_vm1, %v9465_v63  ;;  %v1886_v43 = vld [vmem:[#allocation3 + $0x15a] sm:$0xff]  ;;  %v9559_v44 = vld [vmem:[%s12087_s21 + $0x78] sm:$0xff]   ;;  %v2164_v45 = vpack.c.bf16 %v1884_v41, %v1883_v40 }
  0x5b   : > { %v9528_v46 = vunpack.c.l.bf16 %v9559_v44  ;;  %v1887_v49 = vld [vmem:[#allocation3 + $0x16a] sm:$0xff]  ;;  %v1888_v50 = vld [vmem:[#allocation3 + $0x172] sm:$0xff]  ;;  %v2415_v55 = vld [vmem:[#allocation2 + $0x30] sm:$0xff]  ;;  %472 = vst.msk [vmem:[#allocation4 + $0x30] sm:$0xff] %vm464_vm4, %v11785_v2 }
  0x5c   : > { %v2413_v51 = vld [vmem:[#allocation2 + $0x18] sm:$0xff]  ;;  %v2414_v52 = vld [vmem:[#allocation2 + $0x20] sm:$0xff]  ;;  %v2166_v53 = vpack.c.bf16 %v1888_v50, %v1887_v49  ;;  %v2417_v57 = vld [vmem:[#allocation2 + $0x48] sm:$0xff]  ;;  %473 = vst.msk [vmem:[#allocation4 + $0x38] sm:$0xff] %vm464_vm4, %v11785_v2 }
  0x5d   : > { %712 = vst.msk [vmem:[#allocation3 + $0x181] sm:$0xff] %vm354_vm1, %v9528_v46  ;;  %v12228_v54 = vpack.c.bf16 %v2414_v52, %v2413_v51  ;;  %v2416_v56 = vld [vmem:[#allocation2 + $0x38] sm:$0xff]  ;;  %v2418_v58 = vld [vmem:[#allocation2 + $0x50] sm:$0xff]  ;;  %v12242_v62 = vld [vmem:[%s13771_s2 + $0x4] sm:$0x1] }
  0x5e   : > { %10170 = vmatmul.mubr.msk.bf16.gmra.mrb[12].mxu0 %vm354_vm1, %v1896_v47  ;;  %v9529_v47 = vunpack.c.h.bf16 %v9559_v44  ;;  %v12233_v59 = vpack.c.bf16 %v2416_v56, %v2415_v55  ;;  %v12235_v60 = vpack.c.bf16 %v2418_v58, %v2417_v57  ;;  %v2419_v63 = vld [vmem:[#allocation2 + $0x60] sm:$0xff]  ;;  %v2420_v0 = vld [vmem:[#allocation2 + $0x68] sm:$0xff]  ;;  %v2421_v3 = vld [vmem:[#allocation2 + $0x78] sm:$0xff]  ;;  %v3132_v49 = vsel %vm860_vm0, %v12242_v62, 0  ;;  %474 = vst.msk [vmem:[#allocation4 + $0x40] sm:$0x3] %vm467_vm5, %v11785_v2 }
  0x5f   : > { %10191 = vmatprep.mubr.msk.bf16.mxu0 %vm354_vm1, %v2151_v48  ;;  %v2165_v48 = vpack.c.bf16 %v1886_v43, %v1885_v42  ;;  %v2422_v4 = vld [vmem:[#allocation2 + $0x80] sm:$0xff]  ;;  %v12250_v5 = vpack.c.bf16 %v2420_v0, %v2419_v63  ;;  %v2426_v10 = vld [vmem:[#allocation2 + $0xb0] sm:$0xff]  ;;  %v2448_v44 = vld [vmem:[#allocation3 + $0x38] sm:$0xff]  ;;  %465 = vst.msk [vmem:[#allocation4] sm:$0xff] %vm464_vm4, %v11785_v2 }
  0x60   : > { %713 = vst.msk [vmem:[#allocation3 + $0x189] sm:$0xff] %vm354_vm1, %v9529_v47  ;;  %v2427_v13 = vld [vmem:[#allocation2 + $0xc0] sm:$0xff]  ;;  %v2431_v19 = vld [vmem:[#allocation2 + $0xf0] sm:$0xff]  ;;  %v2452_v52 = vld [vmem:[#allocation3 + $0x68] sm:$0xff] }
  0x61   : > { %v2430_v16 = vld [vmem:[#allocation2 + $0xe0] sm:$0xff]  ;;  %v2434_v22 = vld [vmem:[#allocation2 + $0x110] sm:$0xff]  ;;  %466 = vst.msk [vmem:[#allocation4 + $0x8] sm:$0xff] %vm464_vm4, %v11785_v2  ;;  %469 = vst.msk [vmem:[#allocation4 + $0x18] sm:$0xff] %vm464_vm4, %v11785_v2 }
  0x62   : > { %v2435_v25 = vld [vmem:[#allocation2 + $0x120] sm:$0xff]  ;;  %v2439_v26 = vld [vmem:[#allocation2 + $0x150] sm:$0xff]  ;;  %468 = vst.msk [vmem:[#allocation4 + $0x10] sm:$0x3] %vm467_vm5, %v11785_v2  ;;  %471 = vst.msk [vmem:[#allocation4 + $0x28] sm:$0x3] %vm467_vm5, %v11785_v2 }
  0x63   : > { %v2438_v29 = vld [vmem:[#allocation2 + $0x140] sm:$0xff]  ;;  %v2442_v34 = vld [vmem:[#allocation2 + $0x170] sm:$0xff]  ;;  %470 = vst.msk [vmem:[#allocation4 + $0x20] sm:$0xff] %vm464_vm4, %v11785_v2  ;;  %475 = vst.msk [vmem:[#allocation4 + $0x48] sm:$0xff] %vm464_vm4, %v11785_v2 }
  0x64   : > { %v2443_v37 = vld [vmem:[#allocation2 + $0x180] sm:$0xff]  ;;  %v2446_v40 = vld [vmem:[#allocation3 + $0x20] sm:$0xff]  ;;  %476 = vst.msk [vmem:[#allocation4 + $0x50] sm:$0xff] %vm464_vm4, %v11785_v2  ;;  %478 = vst.msk [vmem:[#allocation4 + $0x60] sm:$0xff] %vm464_vm4, %v11785_v2 }
  0x65   : > { %v2447_v43 = vld [vmem:[#allocation3 + $0x30] sm:$0xff]  ;;  %v2451_v51 = vld [vmem:[#allocation3 + $0x60] sm:$0xff]  ;;  %477 = vst.msk [vmem:[#allocation4 + $0x58] sm:$0x3] %vm467_vm5, %v11785_v2  ;;  %480 = vst.msk [vmem:[#allocation4 + $0x70] sm:$0x3] %vm467_vm5, %v11785_v2 }
  0x66   : > { %10192 = vmatmul.mubr.msk.bf16.vlgmr.msra.gmra.mrb[0].mxu0 %vm354_vm1, %v2152_v6  ;;  %v12252_v6 = vpack.c.bf16 %v2422_v4, %v2421_v3  ;;  %v2450_v46 = vld [vmem:[#allocation3 + $0x50] sm:$0xff]  ;;  %v12303_v47 = vpack.c.bf16 %v2448_v44, %v2447_v43  ;;  %v2454_v55 = vld [vmem:[#allocation3 + $0x80] sm:$0xff]  ;;  %v12320_v56 = vpack.c.bf16 %v2452_v52, %v2451_v51  ;;  %v747_v52 = vld [vmem:[#allocation3 + $0x8] sm:$0xff]  ;;  %479 = vst.msk [vmem:[#allocation4 + $0x68] sm:$0xff] %vm464_vm4, %v11785_v2 }
  0x67   : > { %10224 = vmatpush3.bf16.msra.mxu0 %v2544_v8  ;;  %10195 = vmatprep.mubr.msk.bf16.mxu0 %vm354_vm1, %v2153_v7  ;;  %v2423_v7 = vld [vmem:[#allocation2 + $0x90] sm:$0xff]  ;;  %v2424_v8 = vld [vmem:[#allocation2 + $0x98] sm:$0xff]  ;;  %v12312_v50 = vld [vmem:[%s13772_s3 + $0x4] sm:$0x1]  ;;  %481 = vst.msk [vmem:[#allocation4 + $0x78] sm:$0xff] %vm464_vm4, %v11785_v2 }
  0x68   : > { %11747 = vmatprep.subr.msk.bf16.mxu0 %vm860_vm0, %v12207_v9  ;;  %v2425_v9 = vld [vmem:[#allocation2 + $0xa8] sm:$0xff]  ;;  %v12258_v11 = vpack.c.bf16 %v2424_v8, %v2423_v7  ;;  %v2455_v58 = vld [vmem:[#allocation3 + $0x90] sm:$0xff]  ;;  %v2459_v4 = vld [vmem:[#allocation3 + $0xc0] sm:$0xff]  ;;  %482 = vst.msk [vmem:[#allocation4 + $0x80] sm:$0xff] %vm464_vm4, %v11785_v2 }
  0x69   : > { %v12260_v12 = vpack.c.bf16 %v2426_v10, %v2425_v9  ;;  %v2458_v63 = vld [vmem:[#allocation3 + $0xb0] sm:$0xff]  ;;  %v2460_v7 = vld [vmem:[#allocation3 + $0xc8] sm:$0xff]  ;;  %v2461_v8 = vld [vmem:[#allocation3 + $0xd8] sm:$0xff]  ;;  %483 = vst.msk [vmem:[#allocation4 + $0x88] sm:$0x3] %vm467_vm5, %v11785_v2 }
  0x6a   : > { %v2462_v9 = vld [vmem:[#allocation3 + $0xe0] sm:$0xff]  ;;  %v12336_v10 = vpack.c.bf16 %v2460_v7, %v2459_v4  ;;  %v3001_v43 = vld [vmem:[#allocation2 + $0x19] sm:$0xff]  ;;  %v3002_v44 = vld [vmem:[#allocation2 + $0x21] sm:$0xff]  ;;  %484 = vst.msk [vmem:[#allocation4 + $0x90] sm:$0xff] %vm464_vm4, %v11785_v2 }
  0x6b   : > { %v746_v51 = vld [vmem:[#allocation3] sm:$0xff]  ;;  %485 = vst.msk [vmem:[#allocation4 + $0x98] sm:$0xff] %vm464_vm4, %v11785_v2  ;;  %487 = vst.msk [vmem:[#allocation4 + $0xa8] sm:$0xff] %vm464_vm4, %v11785_v2 }
  0x6c   : > { %486 = vst.msk [vmem:[#allocation4 + $0xa0] sm:$0x3] %vm467_vm5, %v11785_v2  ;;  %489 = vst.msk [vmem:[#allocation4 + $0xb8] sm:$0x3] %vm467_vm5, %v11785_v2 }
  0x6d   : > { %488 = vst.msk [vmem:[#allocation4 + $0xb0] sm:$0xff] %vm464_vm4, %v11785_v2  ;;  %490 = vst.msk [vmem:[#allocation4 + $0xc0] sm:$0xff] %vm464_vm4, %v11785_v2 }
  0x6e   : > { %10196 = vmatmul.mubr.msk.bf16.gmra.mrb[4].mxu0 %vm354_vm1, %v2154_v14  ;;  %v2428_v14 = vld [vmem:[#allocation2 + $0xc8] sm:$0xff]  ;;  %491 = vst.msk [vmem:[#allocation4 + $0xc8] sm:$0xff] %vm464_vm4, %v11785_v2  ;;  %493 = vst.msk [vmem:[#allocation4 + $0xd8] sm:$0xff] %vm464_vm4, %v11785_v2 }
  0x6f   : > { %10199 = vmatprep.mubr.msk.bf16.mxu0 %vm354_vm1, %v2155_v15  ;;  %v2429_v15 = vld [vmem:[#allocation2 + $0xd8] sm:$0xff]  ;;  %v12266_v17 = vpack.c.bf16 %v2428_v14, %v2427_v13  ;;  %v12338_v13 = vpack.c.bf16 %v2462_v9, %v2461_v8  ;;  %v2463_v14 = vld [vmem:[#allocation3 + $0xf0] sm:$0xff]  ;;  %v3394_v8 = vsel %vm860_vm0, %v12312_v50, 0  ;;  %492 = vst.msk [vmem:[#allocation4 + $0xd0] sm:$0x3] %vm467_vm5, %v11785_v2 }
  0x70   : > { %v12268_v18 = vpack.c.bf16 %v2430_v16, %v2429_v15  ;;  %v2464_v15 = vld [vmem:[#allocation3 + $0xf8] sm:$0xff]  ;;  %v2465_v16 = vld [vmem:[#allocation3 + $0x108] sm:$0xff]  ;;  %v12392_v9 = vld [vmem:[%s13771_s2 + $0x5] sm:$0x1]  ;;  %494 = vst.msk [vmem:[#allocation4 + $0xe0] sm:$0xff] %vm464_vm4, %v11785_v2 }
  0x71   : > { %495 = vst.msk [vmem:[#allocation4 + $0xe8] sm:$0x3] %vm467_vm5, %v11785_v2  ;;  %498 = vst.msk [vmem:[#allocation4 + $0x100] sm:$0x3] %vm467_vm5, %v11785_v2 }
  0x72   : > { %496 = vst.msk [vmem:[#allocation4 + $0xf0] sm:$0xff] %vm464_vm4, %v11785_v2  ;;  %497 = vst.msk [vmem:[#allocation4 + $0xf8] sm:$0xff] %vm464_vm4, %v11785_v2 }
  0x73   : > { %499 = vst.msk [vmem:[#allocation4 + $0x108] sm:$0xff] %vm464_vm4, %v11785_v2  ;;  %500 = vst.msk [vmem:[#allocation4 + $0x110] sm:$0xff] %vm464_vm4, %v11785_v2 }
  0x74   : > { %501 = vst.msk [vmem:[#allocation4 + $0x118] sm:$0x3] %vm467_vm5, %v11785_v2  ;;  %504 = vst.msk [vmem:[#allocation4 + $0x130] sm:$0x3] %vm467_vm5, %v11785_v2 }
  0x75   : > { %502 = vst.msk [vmem:[#allocation4 + $0x120] sm:$0xff] %vm464_vm4, %v11785_v2  ;;  %503 = vst.msk [vmem:[#allocation4 + $0x128] sm:$0xff] %vm464_vm4, %v11785_v2 }
  0x76   : > { %10200 = vmatmul.mubr.msk.bf16.gmra.mrb[8].mxu0 %vm354_vm1, %v2156_v20  ;;  %v2432_v20 = vld [vmem:[#allocation2 + $0xf8] sm:$0xff]  ;;  %505 = vst.msk [vmem:[#allocation4 + $0x138] sm:$0xff] %vm464_vm4, %v11785_v2  ;;  %506 = vst.msk [vmem:[#allocation4 + $0x140] sm:$0xff] %vm464_vm4, %v11785_v2 }
  0x77   : > { %10203 = vmatprep.mubr.msk.bf16.mxu0 %vm354_vm1, %v2157_v21  ;;  %v2433_v21 = vld [vmem:[#allocation2 + $0x108] sm:$0xff]  ;;  %v12274_v23 = vpack.c.bf16 %v2432_v20, %v2431_v19  ;;  %v2466_v19 = vld [vmem:[#allocation3 + $0x110] sm:$0xff]  ;;  %v12344_v20 = vpack.c.bf16 %v2464_v15, %v2463_v14  ;;  %507 = vst.msk [vmem:[#allocation4 + $0x148] sm:$0x3] %vm467_vm5, %v11785_v2  ;;  %510 = vst.msk [vmem:[#allocation4 + $0x160] sm:$0x3] %vm467_vm5, %v11785_v2 }
  0x78   : > { %v12276_v24 = vpack.c.bf16 %v2434_v22, %v2433_v21  ;;  %v12346_v21 = vpack.c.bf16 %v2466_v19, %v2465_v16  ;;  %v2467_v22 = vld [vmem:[#allocation3 + $0x120] sm:$0xff]  ;;  %v3007_v14 = vld [vmem:[#allocation2 + $0x61] sm:$0xff]  ;;  %v3009_v15 = vld [vmem:[#allocation2 + $0x79] sm:$0xff]  ;;  %508 = vst.msk [vmem:[#allocation4 + $0x150] sm:$0xff] %vm464_vm4, %v11785_v2 }
  0x79   : > { %v3010_v16 = vld [vmem:[#allocation2 + $0x81] sm:$0xff]  ;;  %v3011_v19 = vld [vmem:[#allocation2 + $0x91] sm:$0xff]  ;;  %509 = vst.msk [vmem:[#allocation4 + $0x158] sm:$0xff] %vm464_vm4, %v11785_v2  ;;  %511 = vst.msk [vmem:[#allocation4 + $0x168] sm:$0xff] %vm464_vm4, %v11785_v2 }
  0x7a   : > { %512 = vst.msk [vmem:[#allocation4 + $0x170] sm:$0xff] %vm464_vm4, %v11785_v2  ;;  %514 = vst.msk [vmem:[#allocation4 + $0x180] sm:$0xff] %vm464_vm4, %v11785_v2 }
  0x7b   : > { %513 = vst.msk [vmem:[#allocation4 + $0x178] sm:$0x3] %vm467_vm5, %v11785_v2  ;;  %516 = vst.msk [vmem:[#allocation4 + $0x190] sm:$0x3] %vm467_vm5, %v11785_v2 }
  0x7c   : > { %515 = vst.msk [vmem:[#allocation4 + $0x188] sm:$0xff] %vm464_vm4, %v11785_v2  ;;  %517 = vst.msk [vmem:[#allocation4 + $0x198] sm:$0xff] %vm464_vm4, %v11785_v2 }
  0x7d   : > { %518 = vst.msk [vmem:[#allocation4 + $0x1a0] sm:$0xff] %vm464_vm4, %v11785_v2 }
  0x7e   : > { %10204 = vmatmul.mubr.msk.bf16.gmra.mrb[12].mxu0 %vm354_vm1, %v2158_v27  ;;  %v2436_v27 = vld [vmem:[#allocation2 + $0x128] sm:$0xff]  ;;  %519 = vst.msk [vmem:[#allocation4 + $0x1a8] sm:$0x3] %vm467_vm5, %v11785_v2 }
  0x7f   : > { %10207 = vmatprep.mubr.msk.bf16.mxu0 %vm354_vm1, %v2159_v28  ;;  %v2437_v28 = vld [vmem:[#allocation2 + $0x138] sm:$0xff]  ;;  %v12282_v30 = vpack.c.bf16 %v2436_v27, %v2435_v25  ;;  %v2469_v27 = vld [vmem:[#allocation3 + $0x138] sm:$0xff] }
  0x80   : > { %v12284_v31 = vpack.c.bf16 %v2438_v29, %v2437_v28  ;;  %v2468_v25 = vld [vmem:[#allocation3 + $0x128] sm:$0xff]  ;;  %v2470_v28 = vld [vmem:[#allocation3 + $0x140] sm:$0xff] }
  0x81   : > { %v12352_v29 = vpack.c.bf16 %v2468_v25, %v2467_v22  ;;  %v3012_v22 = vld [vmem:[#allocation2 + $0x99] sm:$0xff]  ;;  %v3013_v25 = vld [vmem:[#allocation2 + $0xa9] sm:$0xff] }
  0x86   : > { %10208 = vmatmul.mubr.msk.bf16.gmra.mrb[16].mxu0 %vm354_vm1, %v2160_v32  ;;  %v2440_v32 = vld [vmem:[#allocation2 + $0x158] sm:$0xff] }
  0x87   : > { %10211 = vmatprep.mubr.msk.bf16.mxu0 %vm354_vm1, %v2161_v33  ;;  %v2441_v33 = vld [vmem:[#allocation2 + $0x168] sm:$0xff]  ;;  %v12290_v35 = vpack.c.bf16 %v2440_v32, %v2439_v26  ;;  %v12354_v26 = vpack.c.bf16 %v2470_v28, %v2469_v27  ;;  %v2471_v32 = vld [vmem:[#allocation3 + $0x150] sm:$0xff]  ;;  %v3014_v27 = vld [vmem:[#allocation2 + $0xb1] sm:$0xff]  ;;  %v12412_v28 = vpack.c.bf16 %v3012_v22, %v3011_v19 }
  0x88   : > { %v12292_v36 = vpack.c.bf16 %v2442_v34, %v2441_v33  ;;  %v2472_v33 = vld [vmem:[#allocation3 + $0x158] sm:$0xff]  ;;  %v2473_v34 = vld [vmem:[#allocation3 + $0x168] sm:$0xff] }
  0x89   : > { %v3036_v19 = vld [vmem:[#allocation3 + $0x39] sm:$0xff] }
  0x8e   : > { %10212 = vmatmul.mubr.msk.bf16.gmra.mrb[20].mxu0 %vm354_vm1, %v2162_v38  ;;  %v2444_v38 = vld [vmem:[#allocation2 + $0x188] sm:$0xff] }
  0x8f   : > { %10215 = vmatprep.mubr.msk.bf16.mxu0 %vm354_vm1, %v2163_v39  ;;  %v2445_v39 = vld [vmem:[#allocation3 + $0x18] sm:$0xff]  ;;  %v2492_v41 = vpack.c.bf16 %v2444_v38, %v2443_v37  ;;  %v2474_v37 = vld [vmem:[#allocation3 + $0x170] sm:$0xff]  ;;  %v12360_v38 = vpack.c.bf16 %v2472_v33, %v2471_v32  ;;  %v12414_v32 = vpack.c.bf16 %v3014_v27, %v3013_v25 }
  0x90   : > { %v12298_v42 = vpack.c.bf16 %v2446_v40, %v2445_v39  ;;  %v12362_v39 = vpack.c.bf16 %v2474_v37, %v2473_v34  ;;  %v2475_v40 = vld [vmem:[#allocation3 + $0x180] sm:$0xff]  ;;  %v3017_v33 = vld [vmem:[#allocation2 + $0xd9] sm:$0xff]  ;;  %v3018_v34 = vld [vmem:[#allocation2 + $0xe1] sm:$0xff] }
  0x91   : > { %v3037_v27 = vld [vmem:[#allocation3 + $0x49] sm:$0xff] }
  0x96   : > { %10216 = vmatmul.mubr.msk.bf16.gmra.mrb[24].mxu0 %vm354_vm1, %v2164_v45  ;;  %v2449_v45 = vld [vmem:[#allocation3 + $0x48] sm:$0xff] }
  0x97   : > { %10219 = vmatprep.mubr.msk.bf16.mxu0 %vm354_vm1, %v2165_v48  ;;  %v12305_v48 = vpack.c.bf16 %v2450_v46, %v2449_v45  ;;  %v12368_v46 = vpack.c.bf16 %v3002_v44, %v3001_v43  ;;  %v3022_v43 = vld [vmem:[#allocation2 + $0x111] sm:$0xff] }
  0x9e   : > { %10220 = vmatmul.mubr.msk.bf16.gmra.mrb[28].mxu0 %vm354_vm1, %v2166_v53  ;;  %v2453_v53 = vld [vmem:[#allocation3 + $0x78] sm:$0xff] }
  0x9f   : > { %10225 = vmatprep.mubr.msk.bf16.mxu0 %vm354_vm1, %v12228_v54  ;;  %v12322_v57 = vpack.c.bf16 %v2454_v55, %v2453_v53  ;;  %v3003_v53 = vld [vmem:[#allocation2 + $0x31] sm:$0xff]  ;;  %v3004_v55 = vld [vmem:[#allocation2 + $0x39] sm:$0xff] }
  0xa0   : > { %v12379_v4 = vpack.c.bf16 %v3004_v55, %v3003_v53  ;;  %v3029_v55 = vld [vmem:[#allocation2 + $0x169] sm:$0xff] }
  0xa6   : > { %10226 = vmatmul.mubr.msk.bf16.vlgmr.msra.gmra.mrb[0].mxu0 %vm354_vm1, %v12233_v59 }
  0xa7   : > { %10258 = vmatpush3.bf16.msra.mxu0 %v2806_v61  ;;  %10229 = vmatprep.mubr.msk.bf16.mxu0 %vm354_vm1, %v12235_v60  ;;  %v2456_v61 = vld [vmem:[#allocation3 + $0x98] sm:$0xff] }
  0xa8   : > { %11748 = vmatprep.subr.msk.bf16.mxu0 %vm860_vm0, %v12242_v62  ;;  %v2457_v62 = vld [vmem:[#allocation3 + $0xa8] sm:$0xff]  ;;  %v12328_v0 = vpack.c.bf16 %v2456_v61, %v2455_v58  ;;  %v795_v61 = vpack.c.bf16 %v747_v52, %v746_v51  ;;  %v3026_v51 = vld [vmem:[#allocation2 + $0x141] sm:$0xff] }
  0xa9   : > { %v12330_v3 = vpack.c.bf16 %v2458_v63, %v2457_v62  ;;  %v3005_v62 = vld [vmem:[#allocation2 + $0x49] sm:$0xff]  ;;  %v3006_v63 = vld [vmem:[#allocation2 + $0x51] sm:$0xff] }
  0xaa   : > { %10021 = vmatprep.mubr.msk.bf16.mxu1 %vm354_vm1, %v795_v61  ;;  %v12381_v7 = vpack.c.bf16 %v3006_v63, %v3005_v62  ;;  %v3033_v63 = vld [vmem:[#allocation3 + $0x19] sm:$0xff] }
  0xae   : > { %10230 = vmatmul.mubr.msk.bf16.gmra.mrb[4].mxu0 %vm354_vm1, %v12250_v5 }
  0xaf   : > { %10233 = vmatprep.mubr.msk.bf16.mxu0 %vm354_vm1, %v12252_v6 }
  0xb6   : > { %10234 = vmatmul.mubr.msk.bf16.gmra.mrb[8].mxu0 %vm354_vm1, %v12258_v11 }
  0xb7   : > { %10237 = vmatprep.mubr.msk.bf16.mxu0 %vm354_vm1, %v12260_v12 }
  0xbe   : > { %10238 = vmatmul.mubr.msk.bf16.gmra.mrb[12].mxu0 %vm354_vm1, %v12266_v17 }
  0xbf   : > { %10241 = vmatprep.mubr.msk.bf16.mxu0 %vm354_vm1, %v12268_v18 }
  0xc6   : > { %10242 = vmatmul.mubr.msk.bf16.gmra.mrb[16].mxu0 %vm354_vm1, %v12274_v23 }
  0xc7   : > { %10245 = vmatprep.mubr.msk.bf16.mxu0 %vm354_vm1, %v12276_v24 }
  0xce   : > { %10246 = vmatmul.mubr.msk.bf16.gmra.mrb[20].mxu0 %vm354_vm1, %v12282_v30 }
  0xcf   : > { %10249 = vmatprep.mubr.msk.bf16.mxu0 %vm354_vm1, %v12284_v31 }
  0xd6   : > { %10250 = vmatmul.mubr.msk.bf16.gmra.mrb[24].mxu0 %vm354_vm1, %v12290_v35 }
  0xd7   : > { %10253 = vmatprep.mubr.msk.bf16.mxu0 %vm354_vm1, %v12292_v36 }
  0xde   : > { %10254 = vmatmul.mubr.msk.bf16.gmra.mrb[28].mxu0 %vm354_vm1, %v2492_v41  ;;  %v2476_v41 = vld [vmem:[#allocation3 + $0x188] sm:$0xff] }
  0xdf   : > { %10259 = vmatprep.mubr.msk.bf16.mxu0 %vm354_vm1, %v12298_v42  ;;  %v2754_v45 = vpack.c.bf16 %v2476_v41, %v2475_v40  ;;  %v12426_v40 = vpack.c.bf16 %v3018_v34, %v3017_v33  ;;  %v3021_v41 = vld [vmem:[#allocation2 + $0x109] sm:$0xff]  ;;  %v3720_v33 = vsel %vm860_vm0, %v12392_v9, 0  ;;  %v12498_v34 = vld [vmem:[%s13772_s3 + $0x5] sm:$0x1] }
  0xe6   : > { %10260 = vmatmul.mubr.msk.bf16.vlgmr.msra.gmra.mrb[0].mxu0 %vm354_vm1, %v12303_v47 }
  0xe7   : > { %10292 = vmatpush3.bf16.msra.mxu0 %v3132_v49  ;;  %10263 = vmatprep.mubr.msk.bf16.mxu0 %vm354_vm1, %v12305_v48  ;;  %v811_v49 = vld [vmem:[%s13772_s3] sm:$0x1] }
  0xe8   : > { %11749 = vmatprep.subr.msk.bf16.mxu0 %vm860_vm0, %v12312_v50  ;;  %11739 = vmatprep.subr.msk.bf16.mxu1 %vm860_vm0, %v811_v49  ;;  %v862_v58 = vsel %vm860_vm0, %v811_v49, 0  ;;  %v12402_v50 = vpack.c.bf16 %v3010_v16, %v3009_v15  ;;  %v3025_v49 = vld [vmem:[#allocation2 + $0x139] sm:$0xff]  ;;  %v715_v15 = vld [vmem:[#allocation2 + $0x8] sm:$0xff] }
  0xe9   : > { %10020 = vmatpush3.bf16.msra.mxu1 %v862_v58  ;;  %v12450_v53 = vpack.c.bf16 %v3026_v51, %v3025_v49  ;;  %v3030_v58 = vld [vmem:[#allocation2 + $0x171] sm:$0xff]  ;;  %v3035_v16 = vld [vmem:[#allocation3 + $0x31] sm:$0xff] }
  0xea   : > { %v12462_v62 = vpack.c.bf16 %v3030_v58, %v3029_v55  ;;  %v3046_v49 = vld [vmem:[#allocation3 + $0xb1] sm:$0xff]  ;;  %v3050_v55 = vld [vmem:[#allocation3 + $0xe1] sm:$0xff] }
  0xec   : > { %10022 = vmatmul.mubr.msk.bf16.vlgmr.msra.gmra.mrb[0].mxu1 %vm354_vm1, %v12298_v42  ;;  %v3008_v42 = vld [vmem:[#allocation2 + $0x69] sm:$0xff] }
  0xed   : > { %10025 = vmatprep.mubr.msk.bf16.mxu1 %vm354_vm1, %v12303_v47  ;;  %v12400_v47 = vpack.c.bf16 %v3008_v42, %v3007_v14 }
  0xee   : > { %10264 = vmatmul.mubr.msk.bf16.gmra.mrb[4].mxu0 %vm354_vm1, %v12320_v56 }
  0xef   : > { %10267 = vmatprep.mubr.msk.bf16.mxu0 %vm354_vm1, %v12322_v57 }
  0xf4   : > { %10026 = vmatmul.mubr.msk.bf16.gmra.mrb[4].mxu1 %vm354_vm1, %v12305_v48  ;;  %v3015_v48 = vld [vmem:[#allocation2 + $0xc1] sm:$0xff] }
  0xf5   : > { %10029 = vmatprep.mubr.msk.bf16.mxu1 %vm354_vm1, %v12320_v56  ;;  %v3016_v56 = vld [vmem:[#allocation2 + $0xc9] sm:$0xff] }
  0xf6   : > { %10268 = vmatmul.mubr.msk.bf16.gmra.mrb[8].mxu0 %vm354_vm1, %v12328_v0  ;;  %v12424_v37 = vpack.c.bf16 %v3016_v56, %v3015_v48  ;;  %v12485_v48 = vpack.c.bf16 %v3036_v19, %v3035_v16  ;;  %v3061_v19 = vld [vmem:[#allocation3 + $0x169] sm:$0xff] }
  0xf7   : > { %10271 = vmatprep.mubr.msk.bf16.mxu0 %vm354_vm1, %v12330_v3 }
  0xfc   : > { %10030 = vmatmul.mubr.msk.bf16.gmra.mrb[8].mxu1 %vm354_vm1, %v12322_v57  ;;  %v3019_v57 = vld [vmem:[#allocation2 + $0xf1] sm:$0xff] }
  0xfd   : > { %10033 = vmatprep.mubr.msk.bf16.mxu1 %vm354_vm1, %v12328_v0  ;;  %v3020_v0 = vld [vmem:[#allocation2 + $0xf9] sm:$0xff] }
  0xfe   : > { %10272 = vmatmul.mubr.msk.bf16.gmra.mrb[12].mxu0 %vm354_vm1, %v12336_v10  ;;  %v12436_v44 = vpack.c.bf16 %v3020_v0, %v3019_v57  ;;  %v3039_v57 = vld [vmem:[#allocation3 + $0x61] sm:$0xff]  ;;  %v3041_v0 = vld [vmem:[#allocation3 + $0x79] sm:$0xff] }
  0xff   : > { %10275 = vmatprep.mubr.msk.bf16.mxu0 %vm354_vm1, %v12338_v13 }
 0x104   : > { %10034 = vmatmul.mubr.msk.bf16.gmra.mrb[12].mxu1 %vm354_vm1, %v12330_v3  ;;  %v3023_v3 = vld [vmem:[#allocation2 + $0x121] sm:$0xff] }
 0x105   : > { %10037 = vmatprep.mubr.msk.bf16.mxu1 %vm354_vm1, %v12336_v10  ;;  %v3024_v10 = vld [vmem:[#allocation2 + $0x129] sm:$0xff] }
 0x106   : > { %10276 = vmatmul.mubr.msk.bf16.gmra.mrb[16].mxu0 %vm354_vm1, %v12344_v20  ;;  %v12448_v52 = vpack.c.bf16 %v3024_v10, %v3023_v3  ;;  %v3044_v3 = vld [vmem:[#allocation3 + $0x99] sm:$0xff]  ;;  %v3045_v10 = vld [vmem:[#allocation3 + $0xa9] sm:$0xff] }
 0x107   : > { %10279 = vmatprep.mubr.msk.bf16.mxu0 %vm354_vm1, %v12346_v21 }
 0x10c   : > { %10038 = vmatmul.mubr.msk.bf16.gmra.mrb[16].mxu1 %vm354_vm1, %v12338_v13  ;;  %v3027_v13 = vld [vmem:[#allocation2 + $0x151] sm:$0xff] }
 0x10d   : > { %10041 = vmatprep.mubr.msk.bf16.mxu1 %vm354_vm1, %v12344_v20  ;;  %v3028_v20 = vld [vmem:[#allocation2 + $0x159] sm:$0xff] }
 0x10e   : > { %10280 = vmatmul.mubr.msk.bf16.gmra.mrb[20].mxu0 %vm354_vm1, %v12352_v29  ;;  %v12460_v61 = vpack.c.bf16 %v3028_v20, %v3027_v13  ;;  %v12520_v13 = vpack.c.bf16 %v3046_v49, %v3045_v10  ;;  %v3049_v20 = vld [vmem:[#allocation3 + $0xd9] sm:$0xff] }
 0x10f   : > { %10283 = vmatprep.mubr.msk.bf16.mxu0 %vm354_vm1, %v12354_v26  ;;  %v3593_v49 = vld [vmem:[#allocation2 + $0x4a] sm:$0xff] }
 0x114   : > { %10042 = vmatmul.mubr.msk.bf16.gmra.mrb[20].mxu1 %vm354_vm1, %v12346_v21  ;;  %v3031_v21 = vld [vmem:[#allocation2 + $0x181] sm:$0xff] }
 0x115   : > { %10045 = vmatprep.mubr.msk.bf16.mxu1 %vm354_vm1, %v12352_v29  ;;  %v3032_v29 = vld [vmem:[#allocation2 + $0x189] sm:$0xff] }
 0x116   : > { %10284 = vmatmul.mubr.msk.bf16.gmra.mrb[24].mxu0 %vm354_vm1, %v12360_v38  ;;  %v3080_v14 = vpack.c.bf16 %v3032_v29, %v3031_v21  ;;  %v3335_v21 = vpack.c.bf16 %v3050_v55, %v3049_v20  ;;  %v3053_v29 = vld [vmem:[#allocation3 + $0x109] sm:$0xff]  ;;  %v3982_v20 = vsel %vm860_vm0, %v12498_v34, 0  ;;  %v12573_v55 = vld [vmem:[%s13771_s2 + $0x6] sm:$0x1] }
 0x117   : > { %10287 = vmatprep.mubr.msk.bf16.mxu0 %vm354_vm1, %v12362_v39 }
 0x11c   : > { %10046 = vmatmul.mubr.msk.bf16.gmra.mrb[24].mxu1 %vm354_vm1, %v12354_v26  ;;  %v794_v26 = vld [vmem:[%s13771_s2] sm:$0x1] }
 0x11d   : > { %10049 = vmatprep.mubr.msk.bf16.mxu1 %vm354_vm1, %v12360_v38  ;;  %v714_v38 = vld [vmem:[#allocation2] sm:$0xff]  ;;  %11740 = vmatprep.subr.msk.bf16.mxu1 %vm860_vm0, %v794_v26  ;;  %v1074_v22 = vsel %vm860_vm0, %v794_v26, 0  ;;  %v3057_v26 = vld [vmem:[#allocation3 + $0x139] sm:$0xff] }
 0x11e   : > { %10288 = vmatmul.mubr.msk.bf16.gmra.mrb[28].mxu0 %vm354_vm1, %v2754_v45  ;;  %v12438_v45 = vpack.c.bf16 %v3022_v43, %v3021_v41  ;;  %v778_v25 = vpack.c.bf16 %v715_v15, %v714_v38  ;;  %10054 = vmatpush3.bf16.msra.mxu1 %v1074_v22  ;;  %v3042_v41 = vld [vmem:[#allocation3 + $0x81] sm:$0xff]  ;;  %v3043_v43 = vld [vmem:[#allocation3 + $0x91] sm:$0xff] }
 0x11f   : > { %10293 = vmatprep.mubr.msk.bf16.mxu0 %vm354_vm1, %v12368_v46  ;;  %v12518_v51 = vpack.c.bf16 %v3044_v3, %v3043_v43  ;;  %v3058_v38 = vld [vmem:[#allocation3 + $0x141] sm:$0xff]  ;;  %v3062_v22 = vld [vmem:[#allocation3 + $0x171] sm:$0xff] }
 0x120   : > { %v3339_v16 = vpack.c.bf16 %v3058_v38, %v3057_v26  ;;  %v3592_v43 = vld [vmem:[#allocation2 + $0x3a] sm:$0xff]  ;;  %v3606_v26 = vld [vmem:[#allocation2 + $0xe2] sm:$0xff] }
 0x124   : > { %10050 = vmatmul.mubr.msk.bf16.gmra.mrb[28].mxu1 %vm354_vm1, %v12362_v39  ;;  %v3038_v39 = vld [vmem:[#allocation3 + $0x51] sm:$0xff] }
 0x125   : > { %10055 = vmatprep.mubr.msk.bf16.mxu1 %vm354_vm1, %v778_v25  ;;  %v12487_v56 = vpack.c.bf16 %v3038_v39, %v3037_v27  ;;  %v3341_v27 = vpack.c.bf16 %v3062_v22, %v3061_v19  ;;  %v3589_v39 = vld [vmem:[#allocation2 + $0x1a] sm:$0xff] }
 0x126   : > { %10294 = vmatmul.mubr.msk.bf16.vlgmr.msra.gmra.mrb[0].mxu0 %vm354_vm1, %v12379_v4  ;;  %v3613_v22 = vld [vmem:[#allocation2 + $0x13a] sm:$0xff] }
 0x127   : > { %10326 = vmatpush3.bf16.msra.mxu0 %v3394_v8  ;;  %10297 = vmatprep.mubr.msk.bf16.mxu0 %vm354_vm1, %v12381_v7  ;;  %v3034_v8 = vld [vmem:[#allocation3 + $0x21] sm:$0xff] }
 0x128   : > { %11750 = vmatprep.subr.msk.bf16.mxu0 %vm860_vm0, %v12392_v9  ;;  %v12472_v42 = vpack.c.bf16 %v3034_v8, %v3033_v63  ;;  %v12508_v9 = vpack.c.bf16 %v3042_v41, %v3041_v0  ;;  %v3054_v63 = vld [vmem:[#allocation3 + $0x111] sm:$0xff]  ;;  %v1238_v0 = vld [vmem:[#allocation2 + $0x9] sm:$0xff]  ;;  %v3591_v41 = vld [vmem:[#allocation2 + $0x32] sm:$0xff] }
 0x12c   : > { %10056 = vmatmul.mubr.msk.bf16.vlgmr.msra.gmra.mrb[0].mxu1 %vm354_vm1, %v12228_v54  ;;  %v3040_v54 = vld [vmem:[#allocation3 + $0x69] sm:$0xff] }
 0x12d   : > { %10059 = vmatprep.mubr.msk.bf16.mxu1 %vm354_vm1, %v12233_v59  ;;  %v12506_v59 = vpack.c.bf16 %v3040_v54, %v3039_v57 }
 0x12e   : > { %10298 = vmatmul.mubr.msk.bf16.gmra.mrb[4].mxu0 %vm354_vm1, %v12400_v47 }
 0x12f   : > { %10301 = vmatprep.mubr.msk.bf16.mxu0 %vm354_vm1, %v12402_v50 }
 0x134   : > { %10060 = vmatmul.mubr.msk.bf16.gmra.mrb[4].mxu1 %vm354_vm1, %v12235_v60  ;;  %v3047_v60 = vld [vmem:[#allocation3 + $0xc1] sm:$0xff] }
 0x135   : > { %10063 = vmatprep.mubr.msk.bf16.mxu1 %vm354_vm1, %v12250_v5  ;;  %v3048_v5 = vld [vmem:[#allocation3 + $0xc9] sm:$0xff] }
 0x136   : > { %10302 = vmatmul.mubr.msk.bf16.gmra.mrb[8].mxu0 %vm354_vm1, %v12412_v28  ;;  %v3334_v58 = vpack.c.bf16 %v3048_v5, %v3047_v60  ;;  %v3594_v60 = vld [vmem:[#allocation2 + $0x52] sm:$0xff] }
 0x137   : > { %10305 = vmatprep.mubr.msk.bf16.mxu0 %vm354_vm1, %v12414_v32  ;;  %v3655_v5 = vpack.c.bf16 %v3594_v60, %v3593_v49  ;;  %v3625_v60 = vld [vmem:[#allocation3 + $0x4a] sm:$0xff] }
 0x13c   : > { %10064 = vmatmul.mubr.msk.bf16.gmra.mrb[8].mxu1 %vm354_vm1, %v12252_v6  ;;  %v3051_v6 = vld [vmem:[#allocation3 + $0xf1] sm:$0xff] }
 0x13d   : > { %10067 = vmatprep.mubr.msk.bf16.mxu1 %vm354_vm1, %v12258_v11  ;;  %v3052_v11 = vld [vmem:[#allocation3 + $0xf9] sm:$0xff] }
 0x13e   : > { %10306 = vmatmul.mubr.msk.bf16.gmra.mrb[12].mxu0 %vm354_vm1, %v12424_v37  ;;  %v3336_v8 = vpack.c.bf16 %v3052_v11, %v3051_v6  ;;  %v3597_v6 = vld [vmem:[#allocation2 + $0x7a] sm:$0xff] }
 0x13f   : > { %10309 = vmatprep.mubr.msk.bf16.mxu0 %vm354_vm1, %v12426_v40 }
 0x144   : > { %10068 = vmatmul.mubr.msk.bf16.gmra.mrb[12].mxu1 %vm354_vm1, %v12260_v12  ;;  %v3055_v12 = vld [vmem:[#allocation3 + $0x121] sm:$0xff] }
 0x145   : > { %10071 = vmatprep.mubr.msk.bf16.mxu1 %vm354_vm1, %v12266_v17  ;;  %v3056_v17 = vld [vmem:[#allocation3 + $0x129] sm:$0xff] }
 0x146   : > { %10310 = vmatmul.mubr.msk.bf16.gmra.mrb[16].mxu0 %vm354_vm1, %v12436_v44  ;;  %v3338_v15 = vpack.c.bf16 %v3056_v17, %v3055_v12  ;;  %v3605_v17 = vld [vmem:[#allocation2 + $0xda] sm:$0xff] }
 0x147   : > { %10313 = vmatprep.mubr.msk.bf16.mxu0 %vm354_vm1, %v12438_v45 }
 0x14c   : > { %10072 = vmatmul.mubr.msk.bf16.gmra.mrb[16].mxu1 %vm354_vm1, %v12268_v18  ;;  %v3059_v18 = vld [vmem:[#allocation3 + $0x151] sm:$0xff] }
 0x14d   : > { %10075 = vmatprep.mubr.msk.bf16.mxu1 %vm354_vm1, %v12274_v23  ;;  %v3060_v23 = vld [vmem:[#allocation3 + $0x159] sm:$0xff] }
 0x14e   : > { %10314 = vmatmul.mubr.msk.bf16.gmra.mrb[20].mxu0 %vm354_vm1, %v12448_v52  ;;  %v3340_v25 = vpack.c.bf16 %v3060_v23, %v3059_v18  ;;  %v3610_v18 = vld [vmem:[#allocation2 + $0x112] sm:$0xff] }
 0x14f   : > { %10317 = vmatprep.mubr.msk.bf16.mxu0 %vm354_vm1, %v12450_v53 }
 0x154   : > { %10076 = vmatmul.mubr.msk.bf16.gmra.mrb[20].mxu1 %vm354_vm1, %v12276_v24  ;;  %v3063_v24 = vld [vmem:[#allocation3 + $0x181] sm:$0xff] }
 0x155   : > { %10079 = vmatprep.mubr.msk.bf16.mxu1 %vm354_vm1, %v12282_v30  ;;  %v3064_v30 = vld [vmem:[#allocation3 + $0x189] sm:$0xff] }
 0x156   : > { %10318 = vmatmul.mubr.msk.bf16.gmra.mrb[24].mxu0 %vm354_vm1, %v12460_v61  ;;  %v3342_v57 = vpack.c.bf16 %v3064_v30, %v3063_v24  ;;  %v3617_v30 = vld [vmem:[#allocation2 + $0x16a] sm:$0xff] }
 0x157   : > { %10321 = vmatprep.mubr.msk.bf16.mxu0 %vm354_vm1, %v12462_v62 }
 0x15c   : > { %10080 = vmatmul.mubr.msk.bf16.gmra.mrb[24].mxu1 %vm354_vm1, %v12284_v31  ;;  %v8969_v31 = vld [vmem:[%s13771_s2 + $0x1] sm:$0x1] }
 0x15d   : > { %10083 = vmatprep.mubr.msk.bf16.mxu1 %vm354_vm1, %v12290_v35  ;;  %v1237_v35 = vld [vmem:[#allocation2 + $0x1] sm:$0xff]  ;;  %11741 = vmatprep.subr.msk.bf16.mxu1 %vm860_vm0, %v8969_v31  ;;  %v1368_v3 = vsel %vm860_vm0, %v8969_v31, 0  ;;  %v3622_v31 = vld [vmem:[#allocation3 + $0x22] sm:$0xff] }
 0x15e   : > { %10322 = vmatmul.mubr.msk.bf16.gmra.mrb[28].mxu0 %vm354_vm1, %v3080_v14  ;;  %v3337_v14 = vpack.c.bf16 %v3054_v63, %v3053_v29  ;;  %v1301_v10 = vpack.c.bf16 %v1238_v0, %v1237_v35  ;;  %10088 = vmatpush3.bf16.msra.mxu1 %v1368_v3  ;;  %v3600_v29 = vld [vmem:[#allocation2 + $0x9a] sm:$0xff]  ;;  %v3601_v63 = vld [vmem:[#allocation2 + $0xaa] sm:$0xff] }
 0x15f   : > { %10327 = vmatprep.mubr.msk.bf16.mxu0 %vm354_vm1, %v12472_v42  ;;  %v3624_v3 = vld [vmem:[#allocation3 + $0x3a] sm:$0xff] }
 0x164   : > { %10084 = vmatmul.mubr.msk.bf16.gmra.mrb[28].mxu1 %vm354_vm1, %v12292_v36  ;;  %v3654_v36 = vpack.c.bf16 %v3592_v43, %v3591_v41  ;;  %v1270_v41 = vld [vmem:[#allocation3 + $0x9] sm:$0xff]  ;;  %v3623_v43 = vld [vmem:[#allocation3 + $0x32] sm:$0xff] }
 0x165   : > { %10089 = vmatprep.mubr.msk.bf16.mxu1 %vm354_vm1, %v1301_v10 }
 0x166   : > { %10328 = vmatmul.mubr.msk.bf16.vlgmr.msra.gmra.mrb[0].mxu0 %vm354_vm1, %v12485_v48 }
 0x167   : > { %10360 = vmatpush3.bf16.msra.mxu0 %v3720_v33  ;;  %10331 = vmatprep.mubr.msk.bf16.mxu0 %vm354_vm1, %v12487_v56  ;;  %v3590_v33 = vld [vmem:[#allocation2 + $0x22] sm:$0xff] }
 0x168   : > { %11751 = vmatprep.subr.msk.bf16.mxu0 %vm860_vm0, %v12498_v34  ;;  %v3653_v54 = vpack.c.bf16 %v3590_v33, %v3589_v39  ;;  %v3618_v39 = vld [vmem:[#allocation2 + $0x172] sm:$0xff] }
 0x16c   : > { %10090 = vmatmul.mubr.msk.bf16.vlgmr.msra.gmra.mrb[0].mxu1 %vm354_vm1, %v12368_v46  ;;  %v3598_v46 = vld [vmem:[#allocation2 + $0x82] sm:$0xff] }
 0x16d   : > { %10093 = vmatprep.mubr.msk.bf16.mxu1 %vm354_vm1, %v12379_v4  ;;  %v3657_v11 = vpack.c.bf16 %v3598_v46, %v3597_v6  ;;  %v3599_v4 = vld [vmem:[#allocation2 + $0x92] sm:$0xff]  ;;  %v3629_v46 = vld [vmem:[#allocation3 + $0x7a] sm:$0xff] }
 0x16e   : > { %10332 = vmatmul.mubr.msk.bf16.gmra.mrb[4].mxu0 %vm354_vm1, %v12506_v59  ;;  %v3627_v6 = vld [vmem:[#allocation3 + $0x62] sm:$0xff] }
 0x16f   : > { %10335 = vmatprep.mubr.msk.bf16.mxu0 %vm354_vm1, %v12508_v9 }
 0x174   : > { %10094 = vmatmul.mubr.msk.bf16.gmra.mrb[4].mxu1 %vm354_vm1, %v12381_v7  ;;  %v3603_v7 = vld [vmem:[#allocation2 + $0xc2] sm:$0xff] }
 0x175   : > { %10097 = vmatprep.mubr.msk.bf16.mxu1 %vm354_vm1, %v12400_v47  ;;  %v3604_v47 = vld [vmem:[#allocation2 + $0xca] sm:$0xff] }
 0x176   : > { %10336 = vmatmul.mubr.msk.bf16.gmra.mrb[8].mxu0 %vm354_vm1, %v12518_v51  ;;  %v12591_v38 = vpack.c.bf16 %v3604_v47, %v3603_v7 }
 0x177   : > { %10339 = vmatprep.mubr.msk.bf16.mxu0 %vm354_vm1, %v12520_v13 }
 0x17c   : > { %10098 = vmatmul.mubr.msk.bf16.gmra.mrb[8].mxu1 %vm354_vm1, %v12402_v50  ;;  %v3607_v50 = vld [vmem:[#allocation2 + $0xf2] sm:$0xff] }
 0x17d   : > { %10101 = vmatprep.mubr.msk.bf16.mxu1 %vm354_vm1, %v12412_v28  ;;  %v3608_v28 = vld [vmem:[#allocation2 + $0xfa] sm:$0xff] }
 0x17e   : > { %10340 = vmatmul.mubr.msk.bf16.gmra.mrb[12].mxu0 %vm354_vm1, %v3334_v58  ;;  %v3595_v58 = vld [vmem:[#allocation2 + $0x62] sm:$0xff]  ;;  %v12603_v23 = vpack.c.bf16 %v3608_v28, %v3607_v50  ;;  %v3640_v50 = vld [vmem:[#allocation3 + $0xfa] sm:$0xff] }
 0x17f   : > { %10343 = vmatprep.mubr.msk.bf16.mxu0 %vm354_vm1, %v3335_v21  ;;  %v3596_v21 = vld [vmem:[#allocation2 + $0x6a] sm:$0xff] }
 0x180   : > { %v3656_v34 = vpack.c.bf16 %v3596_v21, %v3595_v58  ;;  %v4310_v58 = vsel %vm860_vm0, %v12573_v55, 0  ;;  %v12663_v21 = vld [vmem:[%s13772_s3 + $0x6] sm:$0x1] }
 0x184   : > { %10102 = vmatmul.mubr.msk.bf16.gmra.mrb[12].mxu1 %vm354_vm1, %v12414_v32  ;;  %v3611_v32 = vld [vmem:[#allocation2 + $0x122] sm:$0xff] }
 0x185   : > { %10105 = vmatprep.mubr.msk.bf16.mxu1 %vm354_vm1, %v12424_v37  ;;  %v3612_v37 = vld [vmem:[#allocation2 + $0x12a] sm:$0xff] }
 0x186   : > { %10344 = vmatmul.mubr.msk.bf16.gmra.mrb[16].mxu0 %vm354_vm1, %v3336_v8  ;;  %v3602_v8 = vld [vmem:[#allocation2 + $0xb2] sm:$0xff] }
 0x187   : > { %10347 = vmatprep.mubr.msk.bf16.mxu0 %vm354_vm1, %v3337_v14  ;;  %v3658_v14 = vpack.c.bf16 %v3600_v29, %v3599_v4  ;;  %v3659_v12 = vpack.c.bf16 %v3602_v8, %v3601_v63  ;;  %v3633_v4 = vld [vmem:[#allocation3 + $0xaa] sm:$0xff]  ;;  %v3634_v29 = vld [vmem:[#allocation3 + $0xb2] sm:$0xff] }
 0x188   : > { %v3921_v8 = vpack.c.bf16 %v3634_v29, %v3633_v4  ;;  %v4179_v4 = vld [vmem:[#allocation2 + $0x38] sm:$0xff] }
 0x18c   : > { %10106 = vmatmul.mubr.msk.bf16.gmra.mrb[16].mxu1 %vm354_vm1, %v12426_v40  ;;  %v3615_v40 = vld [vmem:[#allocation2 + $0x152] sm:$0xff] }
 0x18d   : > { %10109 = vmatprep.mubr.msk.bf16.mxu1 %vm354_vm1, %v12436_v44  ;;  %v3616_v44 = vld [vmem:[#allocation2 + $0x15a] sm:$0xff] }
 0x18e   : > { %10348 = vmatmul.mubr.msk.bf16.gmra.mrb[20].mxu0 %vm354_vm1, %v3338_v15  ;;  %v12593_v15 = vpack.c.bf16 %v3606_v26, %v3605_v17  ;;  %v12627_v33 = vpack.c.bf16 %v3616_v44, %v3615_v40  ;;  %v1285_v17 = vld [vmem:[#allocation3 + $0xc1] sm:$0xff]  ;;  %v1287_v26 = vld [vmem:[#allocation3 + $0xd9] sm:$0xff]  ;;  %v1291_v44 = vld [vmem:[#allocation3 + $0x109] sm:$0xff] }
 0x18f   : > { %10351 = vmatprep.mubr.msk.bf16.mxu0 %vm354_vm1, %v3339_v16  ;;  %v3609_v16 = vld [vmem:[#allocation2 + $0x10a] sm:$0xff] }
 0x190   : > { %v12605_v19 = vpack.c.bf16 %v3610_v18, %v3609_v16  ;;  %v1288_v16 = vld [vmem:[#allocation3 + $0xe1] sm:$0xff]  ;;  %v3641_v18 = vld [vmem:[#allocation3 + $0x10a] sm:$0xff]  ;;  %v1290_v40 = vld [vmem:[#allocation3 + $0xf9] sm:$0xff] }
 0x194   : > { %10110 = vmatmul.mubr.msk.bf16.gmra.mrb[20].mxu1 %vm354_vm1, %v12438_v45  ;;  %v3619_v45 = vld [vmem:[#allocation2 + $0x182] sm:$0xff] }
 0x195   : > { %10113 = vmatprep.mubr.msk.bf16.mxu1 %vm354_vm1, %v12448_v52  ;;  %v3620_v52 = vld [vmem:[#allocation2 + $0x18a] sm:$0xff] }
 0x196   : > { %10352 = vmatmul.mubr.msk.bf16.gmra.mrb[24].mxu0 %vm354_vm1, %v3340_v25  ;;  %v3614_v25 = vld [vmem:[#allocation2 + $0x142] sm:$0xff]  ;;  %v3668_v35 = vpack.c.bf16 %v3620_v52, %v3619_v45 }
 0x197   : > { %10355 = vmatprep.mubr.msk.bf16.mxu0 %vm354_vm1, %v3341_v27  ;;  %v12615_v27 = vpack.c.bf16 %v3612_v37, %v3611_v32  ;;  %v12617_v24 = vpack.c.bf16 %v3614_v25, %v3613_v22  ;;  %v3642_v32 = vld [vmem:[#allocation3 + $0x112] sm:$0xff]  ;;  %v12687_v37 = vpack.c.bf16 %v1288_v16, %v1287_v26  ;;  %v4189_v16 = vld [vmem:[#allocation2 + $0xb0] sm:$0xff] }
 0x198   : > { %v3925_v22 = vpack.c.bf16 %v3642_v32, %v3641_v18  ;;  %v1289_v25 = vld [vmem:[#allocation3 + $0xf1] sm:$0xff] }
 0x199   : > { %v12695_v45 = vpack.c.bf16 %v1290_v40, %v1289_v25  ;;  %v1292_v52 = vld [vmem:[#allocation3 + $0x111] sm:$0xff]  ;;  %v4194_v25 = vld [vmem:[#allocation2 + $0xf0] sm:$0xff]  ;;  %v4195_v40 = vld [vmem:[#allocation2 + $0xf8] sm:$0xff] }
 0x19a   : > { %v4185_v26 = vld [vmem:[#allocation2 + $0x80] sm:$0xff]  ;;  %v4191_v32 = vld [vmem:[#allocation2 + $0xc8] sm:$0xff] }
 0x19b   : > { %v4190_v18 = vld [vmem:[#allocation2 + $0xc0] sm:$0xff] }
 0x19c   : > { %10114 = vmatmul.mubr.msk.bf16.gmra.mrb[24].mxu1 %vm354_vm1, %v12450_v53  ;;  %v8986_v53 = vld [vmem:[%s13772_s3 + $0x1] sm:$0x1] }
 0x19d   : > { %10117 = vmatprep.mubr.msk.bf16.mxu1 %vm354_vm1, %v12460_v61  ;;  %v1269_v61 = vld [vmem:[#allocation3 + $0x1] sm:$0xff]  ;;  %11742 = vmatprep.subr.msk.bf16.mxu1 %vm860_vm0, %v8986_v53  ;;  %v1630_v10 = vsel %vm860_vm0, %v8986_v53, 0 }
 0x19e   : > { %10356 = vmatmul.mubr.msk.bf16.gmra.mrb[28].mxu0 %vm354_vm1, %v3342_v57  ;;  %v12629_v57 = vpack.c.bf16 %v3618_v39, %v3617_v30  ;;  %v1563_v49 = vpack.c.bf16 %v1270_v41, %v1269_v61  ;;  %10122 = vmatpush3.bf16.msra.mxu1 %v1630_v10  ;;  %v3643_v30 = vld [vmem:[#allocation3 + $0x122] sm:$0xff]  ;;  %v3644_v39 = vld [vmem:[#allocation3 + $0x12a] sm:$0xff]  ;;  %v3648_v10 = vld [vmem:[#allocation3 + $0x15a] sm:$0xff] }
 0x19f   : > { %10361 = vmatprep.mubr.msk.bf16.mxu0 %vm354_vm1, %v3653_v54  ;;  %v3621_v54 = vld [vmem:[#allocation3 + $0x1a] sm:$0xff]  ;;  %v1294_v41 = vld [vmem:[#allocation3 + $0x129] sm:$0xff] }
 0x1a0   : > { %v3915_v0 = vpack.c.bf16 %v3622_v31, %v3621_v54  ;;  %v3645_v54 = vld [vmem:[#allocation3 + $0x13a] sm:$0xff]  ;;  %v3646_v31 = vld [vmem:[#allocation3 + $0x142] sm:$0xff] }
 0x1a1   : > { %v3927_v53 = vpack.c.bf16 %v3646_v31, %v3645_v54  ;;  %v1293_v61 = vld [vmem:[#allocation3 + $0x121] sm:$0xff] }
 0x1a4   : > { %10118 = vmatmul.mubr.msk.bf16.gmra.mrb[28].mxu1 %vm354_vm1, %v12462_v62  ;;  %v11776_v62 = vld [vmem:[%s13771_s2 + $0x2] sm:$0x1] }
 0x1a5   : > { %10123 = vmatprep.mubr.msk.bf16.mxu1 %vm354_vm1, %v1563_v49  ;;  %11744 = vmatprep.subr.msk.bf16.mxu1 %vm860_vm0, %v11776_v62  ;;  %v12705_v49 = vpack.c.bf16 %v1294_v41, %v1293_v61  ;;  %v3650_v62 = vld [vmem:[#allocation3 + $0x172] sm:$0xff]  ;;  %v4202_v61 = vld [vmem:[#allocation2 + $0x150] sm:$0xff]  ;;  %v4203_v41 = vld [vmem:[#allocation2 + $0x158] sm:$0xff] }
 0x1a6   : > { %10362 = vmatmul.mubr.msk.bf16.vlgmr.msra.gmra.mrb[0].mxu0 %vm354_vm1, %v3654_v36  ;;  %v3626_v36 = vld [vmem:[#allocation3 + $0x52] sm:$0xff] }
 0x1a7   : > { %10394 = vmatpush3.bf16.msra.mxu0 %v3982_v20  ;;  %10365 = vmatprep.mubr.msk.bf16.mxu0 %vm354_vm1, %v3655_v5  ;;  %v3916_v5 = vpack.c.bf16 %v3624_v3, %v3623_v43  ;;  %v3917_v20 = vpack.c.bf16 %v3626_v36, %v3625_v60  ;;  %v1295_v43 = vld [vmem:[#allocation3 + $0x139] sm:$0xff]  ;;  %v1296_v60 = vld [vmem:[#allocation3 + $0x141] sm:$0xff]  ;;  %v3649_v36 = vld [vmem:[#allocation3 + $0x16a] sm:$0xff] }
 0x1a8   : > { %11752 = vmatprep.subr.msk.bf16.mxu0 %vm860_vm0, %v12573_v55  ;;  %v3647_v3 = vld [vmem:[#allocation3 + $0x152] sm:$0xff] }
 0x1ac   : > { %10124 = vmatmul.mubr.msk.bf16.vlgmr.msra.gmra.mrb[0].mxu1 %vm354_vm1, %v12472_v42  ;;  %v3628_v42 = vld [vmem:[#allocation3 + $0x6a] sm:$0xff] }
 0x1ad   : > { %10127 = vmatprep.mubr.msk.bf16.mxu1 %vm354_vm1, %v12485_v48  ;;  %10938 = vmatpush3.bf16.msra.mxu1 %v11849_v1  ;;  %v3918_v48 = vpack.c.bf16 %v3628_v42, %v3627_v6  ;;  %v3631_v1 = vld [vmem:[#allocation3 + $0x92] sm:$0xff] }
 0x1ae   : > { %10366 = vmatmul.mubr.msk.bf16.gmra.mrb[4].mxu0 %vm354_vm1, %v3656_v34  ;;  %v3630_v34 = vld [vmem:[#allocation3 + $0x82] sm:$0xff]  ;;  %v1297_v6 = vld [vmem:[#allocation3 + $0x151] sm:$0xff]  ;;  %v1298_v42 = vld [vmem:[#allocation3 + $0x159] sm:$0xff] }
 0x1af   : > { %10369 = vmatprep.mubr.msk.bf16.mxu0 %vm354_vm1, %v3657_v11  ;;  %v3919_v55 = vpack.c.bf16 %v3630_v34, %v3629_v46  ;;  %v3632_v11 = vld [vmem:[#allocation3 + $0x9a] sm:$0xff]  ;;  %v1299_v46 = vld [vmem:[#allocation3 + $0x169] sm:$0xff] }
 0x1b0   : > { %v3920_v63 = vpack.c.bf16 %v3632_v11, %v3631_v1  ;;  %v3651_v34 = vld [vmem:[#allocation3 + $0x182] sm:$0xff]  ;;  %v1300_v1 = vld [vmem:[#allocation3 + $0x171] sm:$0xff] }
 0x1b1   : > { %v4178_v11 = vld [vmem:[#allocation2 + $0x30] sm:$0xff]  ;;  %v12717_v29 = vpack.c.bf16 %v1300_v1, %v1299_v46  ;;  %v4212_v46 = vld [vmem:[#allocation3 + $0x38] sm:$0xff]  ;;  %v4213_v1 = vld [vmem:[#allocation3 + $0x48] sm:$0xff] }
 0x1b4   : > { %10128 = vmatmul.mubr.msk.bf16.gmra.mrb[4].mxu1 %vm354_vm1, %v12487_v56  ;;  %v3635_v56 = vld [vmem:[#allocation3 + $0xc2] sm:$0xff] }
 0x1b5   : > { %10131 = vmatprep.mubr.msk.bf16.mxu1 %vm354_vm1, %v12506_v59  ;;  %v3636_v59 = vld [vmem:[#allocation3 + $0xca] sm:$0xff] }
 0x1b6   : > { %10370 = vmatmul.mubr.msk.bf16.gmra.mrb[8].mxu0 %vm354_vm1, %v3658_v14  ;;  %v3637_v14 = vld [vmem:[#allocation3 + $0xda] sm:$0xff]  ;;  %v3922_v7 = vpack.c.bf16 %v3636_v59, %v3635_v56 }
 0x1b7   : > { %10373 = vmatprep.mubr.msk.bf16.mxu0 %vm354_vm1, %v3659_v12  ;;  %v3638_v12 = vld [vmem:[#allocation3 + $0xe2] sm:$0xff]  ;;  %v4180_v56 = vld [vmem:[#allocation2 + $0x48] sm:$0xff] }
 0x1b8   : > { %v3923_v47 = vpack.c.bf16 %v3638_v12, %v3637_v14  ;;  %v4181_v59 = vld [vmem:[#allocation2 + $0x50] sm:$0xff]  ;;  %v4182_v14 = vld [vmem:[#allocation2 + $0x60] sm:$0xff]  ;;  %v4183_v12 = vld [vmem:[#allocation2 + $0x68] sm:$0xff] }
 0x1bc   : > { %10132 = vmatmul.mubr.msk.bf16.gmra.mrb[8].mxu1 %vm354_vm1, %v12508_v9  ;;  %v1286_v9 = vld [vmem:[#allocation3 + $0xc9] sm:$0xff] }
 0x1bd   : > { %10135 = vmatprep.mubr.msk.bf16.mxu1 %vm354_vm1, %v12518_v51  ;;  %v3639_v51 = vld [vmem:[#allocation3 + $0xf2] sm:$0xff]  ;;  %v12685_v28 = vpack.c.bf16 %v1286_v9, %v1285_v17  ;;  %v4572_v17 = vsel %vm860_vm0, %v12663_v21, 0  ;;  %v4184_v9 = vld [vmem:[#allocation2 + $0x78] sm:$0xff] }
 0x1be   : > { %10374 = vmatmul.mubr.msk.bf16.gmra.mrb[12].mxu0 %vm354_vm1, %v12591_v38 }
 0x1bf   : > { %10377 = vmatprep.mubr.msk.bf16.mxu0 %vm354_vm1, %v12593_v15 }
 0x1c4   : > { %10136 = vmatmul.mubr.msk.bf16.gmra.mrb[12].mxu1 %vm354_vm1, %v12520_v13  ;;  %v3924_v13 = vpack.c.bf16 %v3640_v50, %v3639_v51  ;;  %v4186_v51 = vld [vmem:[#allocation2 + $0x90] sm:$0xff] }
 0x1c5   : > { %10139 = vmatprep.mubr.msk.bf16.mxu1 %vm354_vm1, %v12685_v28 }
 0x1c6   : > { %10378 = vmatmul.mubr.msk.bf16.gmra.mrb[16].mxu0 %vm354_vm1, %v12603_v23 }
 0x1c7   : > { %10381 = vmatprep.mubr.msk.bf16.mxu0 %vm354_vm1, %v12605_v19 }
 0x1cc   : > { %10140 = vmatmul.mubr.msk.bf16.gmra.mrb[16].mxu1 %vm354_vm1, %v12687_v37 }
 0x1cd   : > { %10143 = vmatprep.mubr.msk.bf16.mxu1 %vm354_vm1, %v12695_v45 }
 0x1ce   : > { %10382 = vmatmul.mubr.msk.bf16.gmra.mrb[20].mxu0 %vm354_vm1, %v12615_v27 }
 0x1cf   : > { %10385 = vmatprep.mubr.msk.bf16.mxu0 %vm354_vm1, %v12617_v24 }
 0x1d6   : > { %10386 = vmatmul.mubr.msk.bf16.gmra.mrb[24].mxu0 %vm354_vm1, %v12627_v33 }
 0x1d7   : > { %10389 = vmatprep.mubr.msk.bf16.mxu0 %vm354_vm1, %v12629_v57 }
 0x1de   : > { %10390 = vmatmul.mubr.msk.bf16.gmra.mrb[28].mxu0 %vm354_vm1, %v3668_v35  ;;  %v12697_v35 = vpack.c.bf16 %v1292_v52, %v1291_v44  ;;  %v4199_v52 = vld [vmem:[#allocation2 + $0x128] sm:$0xff] }
 0x1df   : > { %10395 = vmatprep.mubr.msk.bf16.mxu0 %vm354_vm1, %v3915_v0  ;;  %v3926_v0 = vpack.c.bf16 %v3644_v39, %v3643_v30  ;;  %v4251_v30 = vpack.c.bf16 %v4195_v40, %v4194_v25  ;;  %v4197_v39 = vld [vmem:[#allocation2 + $0x110] sm:$0xff]  ;;  %v4230_v25 = vld [vmem:[#allocation3 + $0x110] sm:$0xff] }
 0x1e0   : > { %10144 = vmatmul.mubr.msk.bf16.gmra.mrb[20].mxu1 %vm354_vm1, %v12697_v35  ;;  %v4231_v40 = vld [vmem:[#allocation3 + $0x120] sm:$0xff] }
 0x1e1   : > { %10147 = vmatprep.mubr.msk.bf16.mxu1 %vm354_vm1, %v12705_v49 }
 0x1e6   : > { %10396 = vmatmul.mubr.msk.bf16.vlgmr.msra.gmra.mrb[0].mxu0 %vm354_vm1, %v3916_v5  ;;  %v12707_v5 = vpack.c.bf16 %v1296_v60, %v1295_v43  ;;  %v4206_v60 = vld [vmem:[#allocation2 + $0x180] sm:$0xff] }
 0x1e7   : > { %10428 = vmatpush3.bf16.msra.mxu0 %v4310_v58  ;;  %10399 = vmatprep.mubr.msk.bf16.mxu0 %vm354_vm1, %v3917_v20  ;;  %v3928_v20 = vpack.c.bf16 %v3648_v10, %v3647_v3  ;;  %v3929_v58 = vpack.c.bf16 %v3650_v62, %v3649_v36  ;;  %v4204_v3 = vld [vmem:[#allocation2 + $0x168] sm:$0xff]  ;;  %v4205_v10 = vld [vmem:[#allocation2 + $0x170] sm:$0xff] }
 0x1e8   : > { %11753 = vmatprep.subr.msk.bf16.mxu0 %vm860_vm0, %v12663_v21  ;;  %10148 = vmatmul.mubr.msk.bf16.gmra.mrb[24].mxu1 %vm354_vm1, %v12707_v5  ;;  %v4246_v21 = vpack.c.bf16 %v4185_v26, %v4184_v9  ;;  %v4207_v36 = vld [vmem:[#allocation2 + $0x188] sm:$0xff]  ;;  %v4256_v62 = vpack.c.bf16 %v4205_v10, %v4204_v3 }
 0x1e9   : > { %v4241_v10 = vld [vmem:[#allocation3 + $0x198] sm:$0xff] }
 0x1ee   : > { %10400 = vmatmul.mubr.msk.bf16.gmra.mrb[4].mxu0 %vm354_vm1, %v3918_v48  ;;  %v3652_v48 = vld [vmem:[#allocation3 + $0x18a] sm:$0xff] }
 0x1ef   : > { %10403 = vmatprep.mubr.msk.bf16.mxu0 %vm354_vm1, %v3919_v55  ;;  %v12715_v55 = vpack.c.bf16 %v1298_v42, %v1297_v6  ;;  %v4209_v6 = vld [vmem:[#allocation2 + $0x1a0] sm:$0xff] }
 0x1f0   : > { %v4211_v42 = vld [vmem:[#allocation3 + $0x30] sm:$0xff] }
 0x1f1   : > { %10151 = vmatprep.mubr.msk.bf16.mxu1 %vm354_vm1, %v12715_v55 }
 0x1f2   : > { %10152 = vmatmul.mubr.msk.bf16.gmra.mrb[28].mxu1 %vm354_vm1, %v12717_v29 }
 0x1f3   : > { %10173 = vmatprep.mubr.msk.bf16.mxu1 %vm354_vm1, %v12591_v38  ;;  %v12736_v38 = vld [vmem:[%s13771_s2 + $0x7] sm:$0x1] }
 0x1f6   : > { %10404 = vmatmul.mubr.msk.bf16.gmra.mrb[8].mxu0 %vm354_vm1, %v3920_v63  ;;  %v3930_v63 = vpack.c.bf16 %v3652_v48, %v3651_v34  ;;  %v4505_v48 = vpack.c.bf16 %v4212_v46, %v4211_v42  ;;  %v4770_v42 = vld [vmem:[#allocation2 + $0x51] sm:$0xff]  ;;  %v4771_v46 = vld [vmem:[#allocation2 + $0x61] sm:$0xff] }
 0x1f7   : > { %10407 = vmatprep.mubr.msk.bf16.mxu0 %vm354_vm1, %v3921_v8  ;;  %v4243_v8 = vpack.c.bf16 %v4179_v4, %v4178_v11  ;;  %v4214_v11 = vld [vmem:[#allocation3 + $0x50] sm:$0xff]  ;;  %v4215_v4 = vld [vmem:[#allocation3 + $0x60] sm:$0xff] }
 0x1fa   : > { %10174 = vmatmul.mubr.msk.bf16.vlgmr.msra.gmra.mrb[16].mxu1 %vm354_vm1, %v12593_v15  ;;  %v4187_v15 = vld [vmem:[#allocation2 + $0x98] sm:$0xff] }
 0x1fb   : > { %10177 = vmatprep.mubr.msk.bf16.mxu1 %vm354_vm1, %v12603_v23  ;;  %v4247_v50 = vpack.c.bf16 %v4187_v15, %v4186_v51  ;;  %v4188_v23 = vld [vmem:[#allocation2 + $0xa8] sm:$0xff]  ;;  %v4222_v51 = vld [vmem:[#allocation3 + $0xb0] sm:$0xff]  ;;  %v4223_v15 = vld [vmem:[#allocation3 + $0xc0] sm:$0xff] }
 0x1fe   : > { %10408 = vmatmul.mubr.msk.bf16.gmra.mrb[12].mxu0 %vm354_vm1, %v3922_v7  ;;  %v4244_v7 = vpack.c.bf16 %v4181_v59, %v4180_v56  ;;  %v4898_v59 = vsel %vm860_vm0, %v12736_v38, 0 }
 0x1ff   : > { %10411 = vmatprep.mubr.msk.bf16.mxu0 %vm354_vm1, %v3923_v47  ;;  %v4245_v47 = vpack.c.bf16 %v4183_v12, %v4182_v14  ;;  %v12771_v14 = vld [vmem:[%s13772_s3 + $0x7] sm:$0x1]  ;;  %v4217_v12 = vld [vmem:[#allocation3 + $0x78] sm:$0xff] }
 0x202   : > { %10178 = vmatmul.mubr.msk.bf16.gmra.mrb[20].mxu1 %vm354_vm1, %v12605_v19  ;;  %v4192_v19 = vld [vmem:[#allocation2 + $0xd8] sm:$0xff] }
 0x203   : > { %10181 = vmatprep.mubr.msk.bf16.mxu1 %vm354_vm1, %v12615_v27  ;;  %v4193_v27 = vld [vmem:[#allocation2 + $0xe0] sm:$0xff] }
 0x204   : > { %v4250_v44 = vpack.c.bf16 %v4193_v27, %v4192_v19  ;;  %v4229_v27 = vld [vmem:[#allocation3 + $0x108] sm:$0xff] }
 0x206   : > { %10412 = vmatmul.mubr.msk.bf16.gmra.mrb[16].mxu0 %vm354_vm1, %v3924_v13  ;;  %v4248_v13 = vpack.c.bf16 %v4189_v16, %v4188_v23  ;;  %v4225_v16 = vld [vmem:[#allocation3 + $0xd8] sm:$0xff] }
 0x207   : > { %10415 = vmatprep.mubr.msk.bf16.mxu0 %vm354_vm1, %v3925_v22  ;;  %v4249_v22 = vpack.c.bf16 %v4191_v32, %v4190_v18  ;;  %v4226_v18 = vld [vmem:[#allocation3 + $0xe0] sm:$0xff]  ;;  %v4227_v32 = vld [vmem:[#allocation3 + $0xf0] sm:$0xff] }
 0x20a   : > { %10182 = vmatmul.mubr.msk.bf16.gmra.mrb[24].mxu1 %vm354_vm1, %v12617_v24  ;;  %v4196_v24 = vld [vmem:[#allocation2 + $0x108] sm:$0xff] }
 0x20b   : > { %10185 = vmatprep.mubr.msk.bf16.mxu1 %vm354_vm1, %v12627_v33  ;;  %v4198_v33 = vld [vmem:[#allocation2 + $0x120] sm:$0xff]  ;;  %v4252_v54 = vpack.c.bf16 %v4197_v39, %v4196_v24  ;;  %v4233_v39 = vld [vmem:[#allocation3 + $0x138] sm:$0xff] }
 0x20c   : > { %v4253_v31 = vpack.c.bf16 %v4199_v52, %v4198_v33  ;;  %v4234_v33 = vld [vmem:[#allocation3 + $0x140] sm:$0xff]  ;;  %v4235_v52 = vld [vmem:[#allocation3 + $0x150] sm:$0xff] }
 0x20e   : > { %10416 = vmatmul.mubr.msk.bf16.gmra.mrb[20].mxu0 %vm354_vm1, %v3926_v0  ;;  %v4200_v0 = vld [vmem:[#allocation2 + $0x138] sm:$0xff] }
 0x20f   : > { %10419 = vmatprep.mubr.msk.bf16.mxu0 %vm354_vm1, %v3927_v53  ;;  %v4201_v53 = vld [vmem:[#allocation2 + $0x140] sm:$0xff] }
 0x210   : > { %v4254_v43 = vpack.c.bf16 %v4201_v53, %v4200_v0  ;;  %v4237_v53 = vld [vmem:[#allocation3 + $0x168] sm:$0xff] }
 0x212   : > { %10186 = vmatmul.mubr.msk.bf16.gmra.mrb[28].mxu1 %vm354_vm1, %v12629_v57  ;;  %v4255_v57 = vpack.c.bf16 %v4203_v41, %v4202_v61  ;;  %v4238_v61 = vld [vmem:[#allocation3 + $0x170] sm:$0xff]  ;;  %v4239_v41 = vld [vmem:[#allocation3 + $0x180] sm:$0xff] }
 0x216   : > { %10420 = vmatmul.mubr.msk.bf16.gmra.mrb[24].mxu0 %vm354_vm1, %v3928_v20  ;;  %v4257_v20 = vpack.c.bf16 %v4207_v36, %v4206_v60  ;;  %v4242_v60 = vld [vmem:[#allocation3 + $0x1a0] sm:$0xff] }
 0x217   : > { %10423 = vmatprep.mubr.msk.bf16.mxu0 %vm354_vm1, %v3929_v58  ;;  %v4208_v58 = vld [vmem:[#allocation2 + $0x198] sm:$0xff] }
 0x218   : > { %v4258_v34 = vpack.c.bf16 %v4209_v6, %v4208_v58  ;;  %v4767_v36 = vld [vmem:[#allocation2 + $0x31] sm:$0xff]  ;;  %v4769_v6 = vld [vmem:[#allocation2 + $0x49] sm:$0xff] }
 0x21e   : > { %10424 = vmatmul.mubr.msk.bf16.gmra.mrb[28].mxu0 %vm354_vm1, %v3930_v63  ;;  %v4216_v63 = vld [vmem:[#allocation3 + $0x68] sm:$0xff] }
 0x21f   : > { %10429 = vmatprep.mubr.msk.bf16.mxu0 %vm354_vm1, %v4243_v8  ;;  %v4506_v8 = vpack.c.bf16 %v4214_v11, %v4213_v1  ;;  %v4507_v56 = vpack.c.bf16 %v4216_v63, %v4215_v4  ;;  %v5160_v11 = vsel %vm860_vm0, %v12771_v14, 0  ;;  %v12796_v4 = vld [vmem:[%s13771_s2 + $0x8] sm:$0x1]  ;;  %v4773_v63 = vld [vmem:[#allocation2 + $0x79] sm:$0xff] }
 0x226   : > { %10430 = vmatmul.mubr.msk.bf16.vlgmr.msra.gmra.mrb[0].mxu0 %vm354_vm1, %v4244_v7  ;;  %v4218_v7 = vld [vmem:[#allocation3 + $0x80] sm:$0xff] }
 0x227   : > { %10462 = vmatpush3.bf16.msra.mxu0 %v4572_v17  ;;  %10433 = vmatprep.mubr.msk.bf16.mxu0 %vm354_vm1, %v4245_v47  ;;  %v4219_v47 = vld [vmem:[#allocation3 + $0x90] sm:$0xff]  ;;  %v4220_v17 = vld [vmem:[#allocation3 + $0x98] sm:$0xff]  ;;  %v4508_v9 = vpack.c.bf16 %v4218_v7, %v4217_v12 }
 0x228   : > { %11754 = vmatprep.subr.msk.bf16.mxu0 %vm860_vm0, %v12736_v38  ;;  %v4509_v26 = vpack.c.bf16 %v4220_v17, %v4219_v47  ;;  %v4221_v38 = vld [vmem:[#allocation3 + $0xa8] sm:$0xff]  ;;  %v4779_v17 = vld [vmem:[#allocation2 + $0xc1] sm:$0xff] }
 0x229   : > { %v4778_v47 = vld [vmem:[#allocation2 + $0xb1] sm:$0xff] }
 0x22e   : > { %10434 = vmatmul.mubr.msk.bf16.gmra.mrb[4].mxu0 %vm354_vm1, %v4246_v21  ;;  %v4224_v21 = vld [vmem:[#allocation3 + $0xc8] sm:$0xff] }
 0x22f   : > { %10437 = vmatprep.mubr.msk.bf16.mxu0 %vm354_vm1, %v4247_v50  ;;  %v4510_v50 = vpack.c.bf16 %v4222_v51, %v4221_v38  ;;  %v4511_v23 = vpack.c.bf16 %v4224_v21, %v4223_v15  ;;  %v4781_v51 = vld [vmem:[#allocation2 + $0xd9] sm:$0xff]  ;;  %v4782_v15 = vld [vmem:[#allocation2 + $0xe1] sm:$0xff]  ;;  %v4783_v21 = vld [vmem:[#allocation2 + $0xf1] sm:$0xff] }
 0x236   : > { %10438 = vmatmul.mubr.msk.bf16.gmra.mrb[8].mxu0 %vm354_vm1, %v4248_v13  ;;  %v4228_v13 = vld [vmem:[#allocation3 + $0xf8] sm:$0xff] }
 0x237   : > { %10441 = vmatprep.mubr.msk.bf16.mxu0 %vm354_vm1, %v4249_v22  ;;  %v4512_v22 = vpack.c.bf16 %v4226_v18, %v4225_v16  ;;  %v4513_v19 = vpack.c.bf16 %v4228_v13, %v4227_v32  ;;  %v4785_v18 = vld [vmem:[#allocation2 + $0x109] sm:$0xff]  ;;  %v4786_v32 = vld [vmem:[#allocation2 + $0x111] sm:$0xff]  ;;  %v4787_v13 = vld [vmem:[#allocation2 + $0x121] sm:$0xff] }
 0x23e   : > { %10442 = vmatmul.mubr.msk.bf16.gmra.mrb[12].mxu0 %vm354_vm1, %v4250_v44  ;;  %v4232_v44 = vld [vmem:[#allocation3 + $0x128] sm:$0xff] }
 0x23f   : > { %10445 = vmatprep.mubr.msk.bf16.mxu0 %vm354_vm1, %v4251_v30  ;;  %v4514_v30 = vpack.c.bf16 %v4230_v25, %v4229_v27  ;;  %v4515_v24 = vpack.c.bf16 %v4232_v44, %v4231_v40  ;;  %v4789_v25 = vld [vmem:[#allocation2 + $0x139] sm:$0xff]  ;;  %v4790_v40 = vld [vmem:[#allocation2 + $0x141] sm:$0xff]  ;;  %v4791_v44 = vld [vmem:[#allocation2 + $0x151] sm:$0xff] }
 0x246   : > { %10446 = vmatmul.mubr.msk.bf16.gmra.mrb[16].mxu0 %vm354_vm1, %v4252_v54  ;;  %v4236_v54 = vld [vmem:[#allocation3 + $0x158] sm:$0xff] }
 0x247   : > { %10449 = vmatprep.mubr.msk.bf16.mxu0 %vm354_vm1, %v4253_v31  ;;  %v4516_v31 = vpack.c.bf16 %v4234_v33, %v4233_v39  ;;  %v4517_v0 = vpack.c.bf16 %v4236_v54, %v4235_v52  ;;  %v4793_v33 = vld [vmem:[#allocation2 + $0x169] sm:$0xff]  ;;  %v4794_v52 = vld [vmem:[#allocation2 + $0x171] sm:$0xff] }
 0x24e   : > { %10450 = vmatmul.mubr.msk.bf16.gmra.mrb[20].mxu0 %vm354_vm1, %v4254_v43  ;;  %v4240_v43 = vld [vmem:[#allocation3 + $0x188] sm:$0xff] }
 0x24f   : > { %10453 = vmatprep.mubr.msk.bf16.mxu0 %vm354_vm1, %v4255_v57  ;;  %v4518_v57 = vpack.c.bf16 %v4238_v61, %v4237_v53  ;;  %v4519_v3 = vpack.c.bf16 %v4240_v43, %v4239_v41  ;;  %v4844_v53 = vpack.c.bf16 %v4794_v52, %v4793_v33  ;;  %v4797_v43 = vld [vmem:[#allocation2 + $0x199] sm:$0xff]  ;;  %v4827_v33 = vld [vmem:[#allocation3 + $0x181] sm:$0xff] }
 0x250   : > { %v4828_v52 = vld [vmem:[#allocation3 + $0x189] sm:$0xff] }
 0x256   : > { %10454 = vmatmul.mubr.msk.bf16.gmra.mrb[24].mxu0 %vm354_vm1, %v4256_v62  ;;  %v4768_v62 = vld [vmem:[#allocation2 + $0x39] sm:$0xff] }
 0x257   : > { %10457 = vmatprep.mubr.msk.bf16.mxu0 %vm354_vm1, %v4257_v20  ;;  %v4520_v20 = vpack.c.bf16 %v4242_v60, %v4241_v10  ;;  %v4831_v58 = vpack.c.bf16 %v4768_v62, %v4767_v36  ;;  %v4799_v10 = vld [vmem:[#allocation3 + $0x31] sm:$0xff]  ;;  %v4800_v60 = vld [vmem:[#allocation3 + $0x39] sm:$0xff] }
 0x25e   : > { %10458 = vmatmul.mubr.msk.bf16.gmra.mrb[28].mxu0 %vm354_vm1, %v4258_v34  ;;  %v4772_v34 = vld [vmem:[#allocation2 + $0x69] sm:$0xff] }
 0x25f   : > { %10463 = vmatprep.mubr.msk.bf16.mxu0 %vm354_vm1, %v4505_v48  ;;  %v4832_v48 = vpack.c.bf16 %v4770_v42, %v4769_v6  ;;  %v4833_v1 = vpack.c.bf16 %v4772_v34, %v4771_v46  ;;  %v4801_v42 = vld [vmem:[#allocation3 + $0x49] sm:$0xff]  ;;  %v4802_v46 = vld [vmem:[#allocation3 + $0x51] sm:$0xff] }
 0x266   : > { %10464 = vmatmul.mubr.msk.bf16.vlgmr.msra.gmra.mrb[0].mxu0 %vm354_vm1, %v4506_v8  ;;  %v4774_v8 = vld [vmem:[#allocation2 + $0x81] sm:$0xff] }
 0x267   : > { %10496 = vmatpush3.bf16.msra.mxu0 %v4898_v59  ;;  %10467 = vmatprep.mubr.msk.bf16.mxu0 %vm354_vm1, %v4507_v56  ;;  %v4775_v56 = vld [vmem:[#allocation2 + $0x91] sm:$0xff]  ;;  %v4776_v59 = vld [vmem:[#allocation2 + $0x99] sm:$0xff]  ;;  %v4834_v12 = vpack.c.bf16 %v4774_v8, %v4773_v63  ;;  %v5094_v8 = vpack.c.bf16 %v4802_v46, %v4801_v42 }
 0x268   : > { %11755 = vmatprep.subr.msk.bf16.mxu0 %vm860_vm0, %v12771_v14  ;;  %v4835_v7 = vpack.c.bf16 %v4776_v59, %v4775_v56  ;;  %v4777_v14 = vld [vmem:[#allocation2 + $0xa9] sm:$0xff]  ;;  %v5486_v59 = vsel %vm860_vm0, %v12796_v4, 0 }
 0x269   : > { %v5360_v42 = vld [vmem:[#allocation2 + $0x6a] sm:$0xff] }
 0x26e   : > { %10468 = vmatmul.mubr.msk.bf16.gmra.mrb[4].mxu0 %vm354_vm1, %v4508_v9  ;;  %v4780_v9 = vld [vmem:[#allocation2 + $0xc9] sm:$0xff] }
 0x26f   : > { %10471 = vmatprep.mubr.msk.bf16.mxu0 %vm354_vm1, %v4509_v26  ;;  %v4836_v26 = vpack.c.bf16 %v4778_v47, %v4777_v14  ;;  %v4837_v38 = vpack.c.bf16 %v4780_v9, %v4779_v17  ;;  %v4805_v14 = vld [vmem:[#allocation3 + $0x79] sm:$0xff]  ;;  %v4806_v47 = vld [vmem:[#allocation3 + $0x81] sm:$0xff]  ;;  %v4807_v9 = vld [vmem:[#allocation3 + $0x91] sm:$0xff] }
 0x276   : > { %10472 = vmatmul.mubr.msk.bf16.gmra.mrb[8].mxu0 %vm354_vm1, %v4510_v50  ;;  %v4784_v50 = vld [vmem:[#allocation2 + $0xf9] sm:$0xff] }
 0x277   : > { %10475 = vmatprep.mubr.msk.bf16.mxu0 %vm354_vm1, %v4511_v23  ;;  %v4838_v23 = vpack.c.bf16 %v4782_v15, %v4781_v51  ;;  %v4839_v16 = vpack.c.bf16 %v4784_v50, %v4783_v21  ;;  %v5096_v51 = vpack.c.bf16 %v4806_v47, %v4805_v14  ;;  %v4809_v50 = vld [vmem:[#allocation3 + $0xa9] sm:$0xff] }
 0x278   : > { %v5364_v14 = vld [vmem:[#allocation2 + $0x9a] sm:$0xff] }
 0x27e   : > { %10476 = vmatmul.mubr.msk.bf16.gmra.mrb[12].mxu0 %vm354_vm1, %v4512_v22  ;;  %v4788_v22 = vld [vmem:[#allocation2 + $0x129] sm:$0xff] }
 0x27f   : > { %10479 = vmatprep.mubr.msk.bf16.mxu0 %vm354_vm1, %v4513_v19  ;;  %v4840_v19 = vpack.c.bf16 %v4786_v32, %v4785_v18  ;;  %v4841_v27 = vpack.c.bf16 %v4788_v22, %v4787_v13  ;;  %v12812_v54 = vpop.f32.mrb[0].mxu1 }
 0x280   : > { %v12815_v41 = vpop.f32.mrb[1].mxu1 }
 0x286   : > { %10480 = vmatmul.mubr.msk.bf16.gmra.mrb[16].mxu0 %vm354_vm1, %v4514_v30  ;;  %v4792_v30 = vld [vmem:[#allocation2 + $0x159] sm:$0xff] }
 0x287   : > { %10483 = vmatprep.mubr.msk.bf16.mxu0 %vm354_vm1, %v4515_v24  ;;  %v4842_v24 = vpack.c.bf16 %v4790_v40, %v4789_v25  ;;  %v4843_v39 = vpack.c.bf16 %v4792_v30, %v4791_v44 }
 0x28e   : > { %10484 = vmatmul.mubr.msk.bf16.gmra.mrb[20].mxu0 %vm354_vm1, %v4516_v31  ;;  %v4795_v31 = vld [vmem:[#allocation2 + $0x181] sm:$0xff] }
 0x28f   : > { %10487 = vmatprep.mubr.msk.bf16.mxu0 %vm354_vm1, %v4517_v0  ;;  %v4796_v0 = vld [vmem:[#allocation2 + $0x189] sm:$0xff] }
 0x290   : > { %v4845_v61 = vpack.c.bf16 %v4796_v0, %v4795_v31  ;;  %v5107_v0 = vpack.c.bf16 %v4828_v52, %v4827_v33  ;;  %v5370_v33 = vld [vmem:[#allocation2 + $0xe2] sm:$0xff]  ;;  %v5371_v52 = vld [vmem:[#allocation2 + $0xf2] sm:$0xff] }
 0x296   : > { %10488 = vmatmul.mubr.msk.bf16.gmra.mrb[24].mxu0 %vm354_vm1, %v4518_v57  ;;  %v4798_v57 = vld [vmem:[#allocation2 + $0x1a1] sm:$0xff] }
 0x297   : > { %10491 = vmatprep.mubr.msk.bf16.mxu0 %vm354_vm1, %v4519_v3  ;;  %v12818_v3 = vpop.f32.mrb[2].mxu1 }
 0x298   : > { %v12820_v36 = vpop.f32.mrb[3].mxu1 }
 0x299   : > { %v12822_v62 = vpop.f32.mrb[4].mxu1 }
 0x29a   : > { %v12825_v6 = vpop.f32.mrb[5].mxu1 }
 0x29b   : > { %v12828_v34 = vpop.f32.mrb[6].mxu1 }
 0x29e   : > { %10492 = vmatmul.mubr.msk.bf16.gmra.mrb[28].mxu0 %vm354_vm1, %v4520_v20  ;;  %v4846_v20 = vpack.c.bf16 %v4798_v57, %v4797_v43  ;;  %v5356_v43 = vld [vmem:[#allocation2 + $0x3a] sm:$0xff] }
 0x29f   : > { %10497 = vmatprep.mubr.msk.bf16.mxu0 %vm354_vm1, %v4831_v58  ;;  %v5093_v58 = vpack.c.bf16 %v4800_v60, %v4799_v10  ;;  %v9243_v10 = vld [vmem:[%s13775_s6 + $0x4] sm:$0xf]  ;;  %v5357_v60 = vld [vmem:[#allocation2 + $0x4a] sm:$0xff] }
 0x2a0   : > { %11758 = vmatprep.subr.msk.bf16.mxu1 %vm6281_vm3, %v9243_v10 }
 0x2a6   : > { %10498 = vmatmul.mubr.msk.bf16.vlgmr.msra.gmra.mrb[0].mxu0 %vm354_vm1, %v4832_v48  ;;  %v4803_v48 = vld [vmem:[#allocation3 + $0x61] sm:$0xff] }
 0x2a7   : > { %10530 = vmatpush3.bf16.msra.mxu0 %v5160_v11  ;;  %10501 = vmatprep.mubr.msk.bf16.mxu0 %vm354_vm1, %v4833_v1  ;;  %v4804_v1 = vld [vmem:[#allocation3 + $0x69] sm:$0xff]  ;;  %v12830_v11 = vpop.f32.mrb[7].mxu1 }
 0x2a8   : > { %11756 = vmatprep.subr.msk.bf16.mxu0 %vm860_vm0, %v12796_v4  ;;  %v12832_v63 = vpop.f32.mrb[8].mxu1  ;;  %v5095_v56 = vpack.c.bf16 %v4804_v1, %v4803_v48 }
 0x2ae   : > { %10502 = vmatmul.mubr.msk.bf16.gmra.mrb[4].mxu0 %vm354_vm1, %v4834_v12  ;;  %v12839_v12 = vld [vmem:[%s13772_s3 + $0x8] sm:$0x1] }
 0x2af   : > { %10505 = vmatprep.mubr.msk.bf16.mxu0 %vm354_vm1, %v4835_v7  ;;  %v12842_v7 = vpop.f32.mrb[9].mxu1  ;;  %v5748_v1 = vsel %vm860_vm0, %v12839_v12, 0 }
 0x2b0   : > { %v12845_v17 = vpop.f32.mrb[10].mxu1 }
 0x2b1   : > { %v12849_v4 = vpop.f32.mrb[11].mxu1 }
 0x2b6   : > { %10506 = vmatmul.mubr.msk.bf16.gmra.mrb[8].mxu0 %vm354_vm1, %v4836_v26  ;;  %v4808_v26 = vld [vmem:[#allocation3 + $0x99] sm:$0xff] }
 0x2b7   : > { %10509 = vmatprep.mubr.msk.bf16.mxu0 %vm354_vm1, %v4837_v38  ;;  %v12851_v38 = vpop.f32.mrb[12].mxu1  ;;  %v5097_v15 = vpack.c.bf16 %v4808_v26, %v4807_v9  ;;  %v5365_v26 = vld [vmem:[#allocation2 + $0xaa] sm:$0xff] }
 0x2b8   : > { %v12854_v21 = vpop.f32.mrb[13].mxu1 }
 0x2be   : > { %10510 = vmatmul.mubr.msk.bf16.gmra.mrb[12].mxu0 %vm354_vm1, %v4838_v23  ;;  %v4810_v23 = vld [vmem:[#allocation3 + $0xb1] sm:$0xff] }
 0x2bf   : > { %10513 = vmatprep.mubr.msk.bf16.mxu0 %vm354_vm1, %v4839_v16  ;;  %v12857_v16 = vpop.f32.mrb[14].mxu1  ;;  %v5098_v32 = vpack.c.bf16 %v4810_v23, %v4809_v50  ;;  %v5368_v50 = vld [vmem:[#allocation2 + $0xca] sm:$0xff] }
 0x2c0   : > { %v12859_v18 = vpop.f32.mrb[15].mxu1 }
 0x2c6   : > { %10514 = vmatmul.mubr.msk.bf16.gmra.mrb[16].mxu0 %vm354_vm1, %v4840_v19 }
 0x2c7   : > { %10517 = vmatprep.mubr.msk.bf16.mxu0 %vm354_vm1, %v4841_v27 }
 0x2cd   : > { %v12862_v13 = vpop.f32.mrb[16].mxu1 }
 0x2ce   : > { %10518 = vmatmul.mubr.msk.bf16.gmra.mrb[20].mxu0 %vm354_vm1, %v4842_v24  ;;  %v12866_v22 = vpop.f32.mrb[17].mxu1 }
 0x2cf   : > { %10521 = vmatprep.mubr.msk.bf16.mxu0 %vm354_vm1, %v4843_v39  ;;  %v12868_v19 = vpop.f32.mrb[18].mxu1 }
 0x2d0   : > { %v12870_v27 = vpop.f32.mrb[19].mxu1 }
 0x2d5   : > { %v12874_v25 = vpop.f32.mrb[20].mxu1 }
 0x2d6   : > { %10522 = vmatmul.mubr.msk.bf16.gmra.mrb[24].mxu0 %vm354_vm1, %v4844_v53  ;;  %v12878_v40 = vpop.f32.mrb[21].mxu1  ;;  %v4830_v53 = vld [vmem:[#allocation3 + $0x1a1] sm:$0xff] }
 0x2d7   : > { %10525 = vmatprep.mubr.msk.bf16.mxu0 %vm354_vm1, %v4845_v61  ;;  %v12880_v44 = vpop.f32.mrb[22].mxu1  ;;  %v5355_v61 = vld [vmem:[#allocation2 + $0x32] sm:$0xff] }
 0x2d8   : > { %v12882_v30 = vpop.f32.mrb[23].mxu1 }
 0x2de   : > { %10526 = vmatmul.mubr.msk.bf16.gmra.mrb[28].mxu0 %vm354_vm1, %v4846_v20  ;;  %v5358_v20 = vld [vmem:[#allocation2 + $0x52] sm:$0xff] }
 0x2df   : > { %10531 = vmatprep.mubr.msk.bf16.mxu0 %vm354_vm1, %v5093_v58  ;;  %v5359_v58 = vld [vmem:[#allocation2 + $0x62] sm:$0xff]  ;;  %v5420_v46 = vpack.c.bf16 %v5358_v20, %v5357_v60  ;;  %v5377_v20 = vld [vmem:[#allocation2 + $0x13a] sm:$0xff] }
 0x2e0   : > { %v5421_v48 = vpack.c.bf16 %v5360_v42, %v5359_v58  ;;  %v5379_v58 = vld [vmem:[#allocation2 + $0x152] sm:$0xff]  ;;  %v5380_v42 = vld [vmem:[#allocation2 + $0x15a] sm:$0xff] }
 0x2e6   : > { %10532 = vmatmul.mubr.msk.bf16.vlgmr.msra.gmra.mrb[0].mxu0 %vm354_vm1, %v5094_v8  ;;  %v5361_v8 = vld [vmem:[#allocation2 + $0x7a] sm:$0xff] }
 0x2e7   : > { %10564 = vmatpush3.bf16.msra.mxu0 %v5486_v59  ;;  %10535 = vmatprep.mubr.msk.bf16.mxu0 %vm354_vm1, %v5095_v56  ;;  %v5362_v56 = vld [vmem:[#allocation2 + $0x82] sm:$0xff]  ;;  %v5363_v59 = vld [vmem:[#allocation2 + $0x92] sm:$0xff] }
 0x2e8   : > { %11757 = vmatprep.subr.msk.bf16.mxu0 %vm860_vm0, %v12839_v12  ;;  %v5422_v47 = vpack.c.bf16 %v5362_v56, %v5361_v8  ;;  %v5423_v9 = vpack.c.bf16 %v5364_v14, %v5363_v59  ;;  %v5382_v8 = vld [vmem:[#allocation2 + $0x172] sm:$0xff]  ;;  %v5383_v56 = vld [vmem:[#allocation2 + $0x182] sm:$0xff]  ;;  %v5384_v59 = vld [vmem:[#allocation2 + $0x18a] sm:$0xff] }
 0x2ee   : > { %10536 = vmatmul.mubr.msk.bf16.gmra.mrb[4].mxu0 %vm354_vm1, %v5096_v51  ;;  %v5366_v51 = vld [vmem:[#allocation2 + $0xb2] sm:$0xff] }
 0x2ef   : > { %10539 = vmatprep.mubr.msk.bf16.mxu0 %vm354_vm1, %v5097_v15  ;;  %v5367_v15 = vld [vmem:[#allocation2 + $0xc2] sm:$0xff]  ;;  %v5424_v12 = vpack.c.bf16 %v5366_v51, %v5365_v26 }
 0x2f0   : > { %v5425_v23 = vpack.c.bf16 %v5368_v50, %v5367_v15  ;;  %v5386_v26 = vld [vmem:[#allocation2 + $0x1a2] sm:$0xff]  ;;  %v5388_v15 = vld [vmem:[#allocation3 + $0x3a] sm:$0xff] }
 0x2f1   : > { %v5387_v51 = vld [vmem:[#allocation3 + $0x32] sm:$0xff] }
 0x2f6   : > { %10540 = vmatmul.mubr.msk.bf16.gmra.mrb[8].mxu0 %vm354_vm1, %v5098_v32  ;;  %v5369_v32 = vld [vmem:[#allocation2 + $0xda] sm:$0xff] }
 0x2f7   : > { %10543 = vmatprep.mubr.msk.bf16.mxu0 %vm354_vm1, %v12685_v28  ;;  %v12886_v28 = vpop.f32.mrb[24].mxu1 }
 0x2fe   : > { %10544 = vmatmul.mubr.msk.bf16.gmra.mrb[12].mxu0 %vm354_vm1, %v12687_v37  ;;  %v12890_v37 = vpop.f32.mrb[25].mxu1 }
 0x2ff   : > { %10547 = vmatprep.mubr.msk.bf16.mxu0 %vm354_vm1, %v12695_v45  ;;  %v12892_v24 = vpop.f32.mrb[26].mxu1 }
 0x300   : > { %v12894_v39 = vpop.f32.mrb[27].mxu1 }
 0x301   : > { %v12898_v45 = vpop.f32.mrb[28].mxu1 }
 0x306   : > { %10548 = vmatmul.mubr.msk.bf16.gmra.mrb[16].mxu0 %vm354_vm1, %v12697_v35  ;;  %v12902_v35 = vpop.f32.mrb[29].mxu1 }
 0x307   : > { %10551 = vmatprep.mubr.msk.bf16.mxu0 %vm354_vm1, %v12705_v49  ;;  %v12904_v31 = vpop.f32.mrb[30].mxu1 }
 0x308   : > { %v12906_v49 = vpop.f32.mrb[31].mxu1 }
 0x30e   : > { %10552 = vmatmul.mubr.msk.bf16.gmra.mrb[20].mxu0 %vm354_vm1, %v12707_v5  ;;  %v4829_v5 = vld [vmem:[#allocation3 + $0x199] sm:$0xff] }
 0x30f   : > { %10555 = vmatprep.mubr.msk.bf16.mxu0 %vm354_vm1, %v12715_v55  ;;  %v5108_v57 = vpack.c.bf16 %v4830_v53, %v4829_v5  ;;  %v5419_v55 = vpack.c.bf16 %v5356_v43, %v5355_v61  ;;  %v5426_v5 = vpack.c.bf16 %v5370_v33, %v5369_v32  ;;  %v5373_v61 = vld [vmem:[#allocation2 + $0x10a] sm:$0xff]  ;;  %v5374_v43 = vld [vmem:[#allocation2 + $0x112] sm:$0xff]  ;;  %v5390_v32 = vld [vmem:[#allocation3 + $0x52] sm:$0xff] }
 0x310   : > { %v5391_v33 = vld [vmem:[#allocation3 + $0x62] sm:$0xff] }
 0x316   : > { %10556 = vmatmul.mubr.msk.bf16.gmra.mrb[24].mxu0 %vm354_vm1, %v12717_v29  ;;  %v6283_v29 = vsel %vm6281_vm3, %v9243_v10, 0  ;;  %v5428_v10 = vpack.c.bf16 %v5374_v43, %v5373_v61  ;;  %v5394_v61 = vld [vmem:[#allocation3 + $0x82] sm:$0xff]  ;;  %v5395_v43 = vld [vmem:[#allocation3 + $0x92] sm:$0xff] }
 0x317   : > { %10559 = vmatprep.mubr.msk.bf16.mxu0 %vm354_vm1, %v5107_v0  ;;  %10632 = vmatpush3.bf16.msra.mxu1 %v6283_v29  ;;  %v5372_v0 = vld [vmem:[#allocation2 + $0xfa] sm:$0xff]  ;;  %v5378_v29 = vld [vmem:[#allocation2 + $0x142] sm:$0xff] }
 0x318   : > { %v5427_v53 = vpack.c.bf16 %v5372_v0, %v5371_v52  ;;  %v5392_v52 = vld [vmem:[#allocation3 + $0x6a] sm:$0xff] }
 0x31e   : > { %10560 = vmatmul.mubr.msk.bf16.gmra.mrb[28].mxu0 %vm354_vm1, %v5108_v57  ;;  %v5375_v57 = vld [vmem:[#allocation2 + $0x122] sm:$0xff] }
 0x31f   : > { %10565 = vmatprep.mubr.msk.bf16.mxu0 %vm354_vm1, %v5419_v55  ;;  %v5376_v55 = vld [vmem:[#allocation2 + $0x12a] sm:$0xff] }
 0x320   : > { %v5429_v60 = vpack.c.bf16 %v5376_v55, %v5375_v57  ;;  %v5396_v57 = vld [vmem:[#allocation3 + $0x9a] sm:$0xff] }
 0x326   : > { %10566 = vmatmul.mubr.msk.bf16.vlgmr.msra.gmra.mrb[0].mxu0 %vm354_vm1, %v5420_v46  ;;  %v5430_v46 = vpack.c.bf16 %v5378_v29, %v5377_v20  ;;  %v5398_v20 = vld [vmem:[#allocation3 + $0xb2] sm:$0xff]  ;;  %v5399_v29 = vld [vmem:[#allocation3 + $0xc2] sm:$0xff] }
 0x327   : > { %10598 = vmatpush3.bf16.msra.mxu0 %v5748_v1  ;;  %10569 = vmatprep.mubr.msk.bf16.mxu0 %vm354_vm1, %v5421_v48  ;;  %v5431_v48 = vpack.c.bf16 %v5380_v42, %v5379_v58  ;;  %v5381_v1 = vld [vmem:[#allocation2 + $0x16a] sm:$0xff]  ;;  %v5400_v58 = vld [vmem:[#allocation3 + $0xca] sm:$0xff] }
 0x328   : > { %v5432_v14 = vpack.c.bf16 %v5382_v8, %v5381_v1  ;;  %v5402_v1 = vld [vmem:[#allocation3 + $0xe2] sm:$0xff]  ;;  %v5403_v8 = vld [vmem:[#allocation3 + $0xf2] sm:$0xff] }
 0x32e   : > { %10570 = vmatmul.mubr.msk.bf16.gmra.mrb[4].mxu0 %vm354_vm1, %v5422_v47  ;;  %v5433_v47 = vpack.c.bf16 %v5384_v59, %v5383_v56  ;;  %v5404_v56 = vld [vmem:[#allocation3 + $0xfa] sm:$0xff] }
 0x32f   : > { %10573 = vmatprep.mubr.msk.bf16.mxu0 %vm354_vm1, %v5423_v9  ;;  %v5385_v9 = vld [vmem:[#allocation2 + $0x19a] sm:$0xff] }
 0x330   : > { %v5434_v50 = vpack.c.bf16 %v5386_v26, %v5385_v9  ;;  %v5406_v9 = vld [vmem:[#allocation3 + $0x112] sm:$0xff]  ;;  %v5407_v26 = vld [vmem:[#allocation3 + $0x122] sm:$0xff] }
 0x336   : > { %10574 = vmatmul.mubr.msk.bf16.gmra.mrb[8].mxu0 %vm354_vm1, %v5424_v12  ;;  %v5681_v12 = vpack.c.bf16 %v5388_v15, %v5387_v51  ;;  %v5408_v51 = vld [vmem:[#allocation3 + $0x12a] sm:$0xff] }
 0x337   : > { %10577 = vmatprep.mubr.msk.bf16.mxu0 %vm354_vm1, %v5425_v23  ;;  %v5389_v23 = vld [vmem:[#allocation3 + $0x4a] sm:$0xff] }
 0x338   : > { %v5682_v0 = vpack.c.bf16 %v5390_v32, %v5389_v23  ;;  %v5410_v23 = vld [vmem:[#allocation3 + $0x142] sm:$0xff]  ;;  %v5411_v32 = vld [vmem:[#allocation3 + $0x152] sm:$0xff] }
 0x33e   : > { %10578 = vmatmul.mubr.msk.bf16.gmra.mrb[12].mxu0 %vm354_vm1, %v5426_v5  ;;  %v5683_v5 = vpack.c.bf16 %v5392_v52, %v5391_v33  ;;  %v5412_v33 = vld [vmem:[#allocation3 + $0x15a] sm:$0xff] }
 0x33f   : > { %10581 = vmatprep.mubr.msk.bf16.mxu0 %vm354_vm1, %v5427_v53  ;;  %v5393_v53 = vld [vmem:[#allocation3 + $0x7a] sm:$0xff] }
 0x340   : > { %v5684_v55 = vpack.c.bf16 %v5394_v61, %v5393_v53  ;;  %v5414_v53 = vld [vmem:[#allocation3 + $0x172] sm:$0xff]  ;;  %v5415_v61 = vld [vmem:[#allocation3 + $0x182] sm:$0xff] }
 0x346   : > { %10582 = vmatmul.mubr.msk.bf16.gmra.mrb[16].mxu0 %vm354_vm1, %v5428_v10  ;;  %v5685_v10 = vpack.c.bf16 %v5396_v57, %v5395_v43  ;;  %v5416_v43 = vld [vmem:[#allocation3 + $0x18a] sm:$0xff] }
 0x347   : > { %10585 = vmatprep.mubr.msk.bf16.mxu0 %vm354_vm1, %v5429_v60  ;;  %v5397_v60 = vld [vmem:[#allocation3 + $0xaa] sm:$0xff] }
 0x348   : > { %v5686_v42 = vpack.c.bf16 %v5398_v20, %v5397_v60  ;;  %v5418_v60 = vld [vmem:[#allocation3 + $0x1a2] sm:$0xff] }
 0x34e   : > { %10586 = vmatmul.mubr.msk.bf16.gmra.mrb[20].mxu0 %vm354_vm1, %v5430_v46  ;;  %v5687_v46 = vpack.c.bf16 %v5400_v58, %v5399_v29  ;;  %v6183_v29 = vld [vmem:[#allocation4 + $0x1] sm:$0xff]  ;;  %v6184_v58 = vld [vmem:[#allocation4 + $0x9] sm:$0xff] }
 0x34f   : > { %10589 = vmatprep.mubr.msk.bf16.mxu0 %vm354_vm1, %v5431_v48  ;;  %v5401_v48 = vld [vmem:[#allocation3 + $0xda] sm:$0xff] }
 0x350   : > { %v5688_v59 = vpack.c.bf16 %v5402_v1, %v5401_v48  ;;  %v13070_v1 = vld [vmem:[%s13773_s4] ss:$0 sm:$0xff] }
 0x356   : > { %10590 = vmatmul.mubr.msk.bf16.gmra.mrb[24].mxu0 %vm354_vm1, %v5432_v14  ;;  %v5689_v14 = vpack.c.bf16 %v5404_v56, %v5403_v8  ;;  %v13076_v56 = vld [vmem:[%s13774_s5] ss:$0 sm:$0xff] }
 0x357   : > { %10593 = vmatprep.mubr.msk.bf16.mxu0 %vm354_vm1, %v5433_v47  ;;  %v5405_v47 = vld [vmem:[#allocation3 + $0x10a] sm:$0xff] }
 0x358   : > { %v5690_v15 = vpack.c.bf16 %v5406_v9, %v5405_v47 }
 0x35e   : > { %10594 = vmatmul.mubr.msk.bf16.gmra.mrb[28].mxu0 %vm354_vm1, %v5434_v50  ;;  %v5691_v50 = vpack.c.bf16 %v5408_v51, %v5407_v26 }
 0x35f   : > { %10599 = vmatprep.mubr.msk.bf16.mxu0 %vm354_vm1, %v5681_v12  ;;  %v5409_v12 = vld [vmem:[#allocation3 + $0x13a] sm:$0xff] }
 0x360   : > { %v5692_v52 = vpack.c.bf16 %v5410_v23, %v5409_v12 }
 0x366   : > { %10600 = vmatmul.mubr.msk.bf16.vlgmr.msra.gmra.mrb[0].mxu0 %vm354_vm1, %v5682_v0  ;;  %v5693_v0 = vpack.c.bf16 %v5412_v33, %v5411_v32 }
 0x367   : > { %10603 = vmatprep.mubr.msk.bf16.mxu0 %vm354_vm1, %v5683_v5  ;;  %v5413_v5 = vld [vmem:[#allocation3 + $0x16a] sm:$0xff] }
 0x368   : > { %v5694_v57 = vpack.c.bf16 %v5414_v53, %v5413_v5 }
 0x36e   : > { %10604 = vmatmul.mubr.msk.bf16.gmra.mrb[4].mxu0 %vm354_vm1, %v5684_v55  ;;  %v5695_v55 = vpack.c.bf16 %v5416_v43, %v5415_v61 }
 0x36f   : > { %10607 = vmatprep.mubr.msk.bf16.mxu0 %vm354_vm1, %v5685_v10  ;;  %v5417_v10 = vld [vmem:[#allocation3 + $0x19a] sm:$0xff] }
 0x370   : > { %v5696_v20 = vpack.c.bf16 %v5418_v60, %v5417_v10 }
 0x376   : > { %10608 = vmatmul.mubr.msk.bf16.gmra.mrb[8].mxu0 %vm354_vm1, %v5686_v42  ;;  %v6215_v42 = vpack.c.bf16 %v6184_v58, %v6183_v29 }
 0x377   : > { %10611 = vmatprep.mubr.msk.bf16.mxu0 %vm354_vm1, %v5687_v46  ;;  %v13063_v46 = vld [vmem:[%s13775_s6] sm:$0xf] }
 0x378   : > { %10633 = vmatprep.mubr.msk.bf16.mxu1 %vm464_vm4, %v6215_v42  ;;  %11759 = vmatprep.subr.msk.bf16.mxu1 %vm6281_vm3, %v13063_v46 }
 0x37e   : > { %10612 = vmatmul.mubr.msk.bf16.gmra.mrb[12].mxu0 %vm354_vm1, %v5688_v59 }
 0x37f   : > { %10615 = vmatprep.mubr.msk.bf16.mxu0 %vm354_vm1, %v5689_v14 }
 0x386   : > { %10616 = vmatmul.mubr.msk.bf16.gmra.mrb[16].mxu0 %vm354_vm1, %v5690_v15 }
 0x387   : > { %10619 = vmatprep.mubr.msk.bf16.mxu0 %vm354_vm1, %v5691_v50 }
 0x38e   : > { %10620 = vmatmul.mubr.msk.bf16.gmra.mrb[20].mxu0 %vm354_vm1, %v5692_v52 }
 0x38f   : > { %10623 = vmatprep.mubr.msk.bf16.mxu0 %vm354_vm1, %v5693_v0 }
 0x396   : > { %10624 = vmatmul.mubr.msk.bf16.gmra.mrb[24].mxu0 %vm354_vm1, %v5694_v57 }
 0x397   : > { %10627 = vmatprep.mubr.msk.bf16.mxu0 %vm354_vm1, %v5695_v55 }
 0x39e   : > { %10628 = vmatmul.mubr.msk.bf16.gmra.mrb[28].mxu0 %vm354_vm1, %v5696_v20 }
 0x439   : > { %v10601_v48 = vpop.f32.mrb[0].mxu0 }
 0x43a   : > { %v10939_v2 = vadd.f32 %v10601_v48, %v12812_v54  ;;  %v5784_v8 = vpop.f32.mrb[1].mxu0 }
 0x43b   : > { %v10940_v59 = vadd.f32 %v5784_v8, %v12815_v41  ;;  %v10602_v14 = vpop.f32.mrb[2].mxu0 }
 0x43c   : > { %v5952_v47 = vmul.f32 %v10939_v2, %v13070_v1  ;;  %v10941_v9 = vadd.f32 %v10602_v14, %v12818_v3  ;;  %v5787_v26 = vpop.f32.mrb[3].mxu0 }
 0x43d   : > { %v5950_v51 = vmul.f32 %v10940_v59, %v13070_v1  ;;  %v10942_v15 = vadd.f32 %v5787_v26, %v12820_v36 }
 0x43e   : > { %v5991_v54 = vadd.f32 %v13076_v56, %v5952_v47  ;;  %v5953_v50 = vmul.f32 %v10941_v9, %v13070_v1 }
 0x43f   : > { %v5989_v12 = vadd.f32 %v13076_v56, %v5950_v51  ;;  %v5951_v23 = vmul.f32 %v10942_v15, %v13070_v1 }
 0x440   : > { %v5992_v41 = vadd.f32 %v13076_v56, %v5953_v50  ;;  %v6023_v52 = vmax.f32 %v5991_v54, 0.0 }
 0x441   : > { %v5990_v32 = vadd.f32 %v13076_v56, %v5951_v23  ;;  %v10605_v33 = vpop.f32.mrb[4].mxu0  ;;  %v6021_v53 = vmax.f32 %v5989_v12, 0.0 }
 0x442   : > { %v6024_v3 = vmax.f32 %v5992_v41, 0.0  ;;  %v10943_v0 = vadd.f32 %v10605_v33, %v12822_v62  ;;  %v5800_v5 = vpop.f32.mrb[5].mxu0 }
 0x443   : > { %v6022_v36 = vmax.f32 %v5990_v32, 0.0  ;;  %v10944_v61 = vadd.f32 %v5800_v5, %v12825_v6  ;;  %v10606_v43 = vpop.f32.mrb[6].mxu0 }
 0x444   : > { %v6054_v57 = vpack.c.bf16 %v6024_v3, %v6023_v52  ;;  %v5956_v55 = vmul.f32 %v10943_v0, %v13070_v1  ;;  %v10945_v10 = vadd.f32 %v10606_v43, %v12828_v34  ;;  %v5803_v60 = vpop.f32.mrb[7].mxu0 }
 0x445   : > { %v6053_v20 = vpack.c.bf16 %v6022_v36, %v6021_v53  ;;  %v5954_v29 = vmul.f32 %v10944_v61, %v13070_v1  ;;  %v10946_v58 = vadd.f32 %v5803_v60, %v12830_v11 }
 0x446   : > { %v6071_v42 = vunpack.c.l.bf16 %v6054_v57  ;;  %v6072_v48 = vunpack.c.h.bf16 %v6054_v57  ;;  %v5995_v62 = vadd.f32 %v13076_v56, %v5956_v55  ;;  %v5957_v2 = vmul.f32 %v10945_v10, %v13070_v1 }
 0x447   : > { %v6069_v8 = vunpack.c.l.bf16 %v6053_v20  ;;  %v6070_v6 = vunpack.c.h.bf16 %v6053_v20  ;;  %v5993_v59 = vadd.f32 %v13076_v56, %v5954_v29  ;;  %v5955_v14 = vmul.f32 %v10946_v58, %v13070_v1 }
 0x448   : > { %6104 = vst.msk [vmem:[#allocation4 + $0x31] sm:$0xff] %vm464_vm4, %v6071_v42  ;;  %6105 = vst.msk [vmem:[#allocation4 + $0x39] sm:$0xff] %vm464_vm4, %v6072_v48  ;;  %v5996_v34 = vadd.f32 %v13076_v56, %v5957_v2  ;;  %v6027_v9 = vmax.f32 %v5995_v62, 0.0  ;;  %v6495_v48 = vsel %vm6281_vm3, %v13063_v46, 0 }
 0x449   : > { %6102 = vst.msk [vmem:[#allocation4 + $0x19] sm:$0xff] %vm464_vm4, %v6069_v8  ;;  %6103 = vst.msk [vmem:[#allocation4 + $0x21] sm:$0xff] %vm464_vm4, %v6070_v6  ;;  %v5994_v11 = vadd.f32 %v13076_v56, %v5955_v14  ;;  %v10609_v47 = vpop.f32.mrb[8].mxu0  ;;  %v6025_v54 = vmax.f32 %v5993_v59, 0.0  ;;  %v13131_v14 = vld [vmem:[%s13775_s6 + $0x8] sm:$0xf] }
 0x44a   : > { %v6028_v26 = vmax.f32 %v5996_v34, 0.0  ;;  %v10947_v51 = vadd.f32 %v10609_v47, %v12832_v63  ;;  %v5816_v15 = vpop.f32.mrb[9].mxu0 }
 0x44b   : > { %v6026_v50 = vmax.f32 %v5994_v11, 0.0  ;;  %v10948_v12 = vadd.f32 %v5816_v15, %v12842_v7  ;;  %v10610_v23 = vpop.f32.mrb[10].mxu0 }
 0x44c   : > { %v6056_v41 = vpack.c.bf16 %v6028_v26, %v6027_v9  ;;  %v5960_v32 = vmul.f32 %v10947_v51, %v13070_v1  ;;  %v10949_v33 = vadd.f32 %v10610_v23, %v12845_v17  ;;  %v5819_v52 = vpop.f32.mrb[11].mxu0 }
 0x44d   : > { %v6055_v3 = vpack.c.bf16 %v6026_v50, %v6025_v54  ;;  %v5958_v0 = vmul.f32 %v10948_v12, %v13070_v1  ;;  %v10950_v5 = vadd.f32 %v5819_v52, %v12849_v4 }
 0x44e   : > { %v6075_v53 = vunpack.c.l.bf16 %v6056_v41  ;;  %v6076_v36 = vunpack.c.h.bf16 %v6056_v41  ;;  %v5999_v63 = vadd.f32 %v13076_v56, %v5960_v32  ;;  %v5961_v61 = vmul.f32 %v10949_v33, %v13070_v1 }
 0x44f   : > { %v6073_v43 = vunpack.c.l.bf16 %v6055_v3  ;;  %v6074_v7 = vunpack.c.h.bf16 %v6055_v3  ;;  %v5997_v57 = vadd.f32 %v13076_v56, %v5958_v0  ;;  %v5959_v55 = vmul.f32 %v10950_v5, %v13070_v1  ;;  %v6187_v10 = vld [vmem:[#allocation4 + $0x31] sm:$0xff]  ;;  %v6188_v17 = vld [vmem:[#allocation4 + $0x39] sm:$0xff] }
 0x450   : > { %6108 = vst.msk [vmem:[#allocation4 + $0x61] sm:$0xff] %vm464_vm4, %v6075_v53  ;;  %6109 = vst.msk [vmem:[#allocation4 + $0x69] sm:$0xff] %vm464_vm4, %v6076_v36  ;;  %v6000_v4 = vadd.f32 %v13076_v56, %v5961_v61  ;;  %v6185_v60 = vld [vmem:[#allocation4 + $0x19] sm:$0xff]  ;;  %v6186_v20 = vld [vmem:[#allocation4 + $0x21] sm:$0xff]  ;;  %v6031_v62 = vmax.f32 %v5999_v63, 0.0  ;;  %v13126_v59 = vpack.c.bf16 %v6188_v17, %v6187_v10 }
 0x451   : > { %6106 = vst.msk [vmem:[#allocation4 + $0x49] sm:$0xff] %vm464_vm4, %v6073_v43  ;;  %6107 = vst.msk [vmem:[#allocation4 + $0x51] sm:$0xff] %vm464_vm4, %v6074_v7  ;;  %v5998_v29 = vadd.f32 %v13076_v56, %v5959_v55  ;;  %v10613_v58 = vpop.f32.mrb[12].mxu0  ;;  %v13121_v42 = vpack.c.bf16 %v6186_v20, %v6185_v60  ;;  %v6029_v34 = vmax.f32 %v5997_v57, 0.0 }
 0x452   : > { %v6032_v2 = vmax.f32 %v6000_v4, 0.0  ;;  %v10951_v8 = vadd.f32 %v10613_v58, %v12851_v38  ;;  %v5832_v6 = vpop.f32.mrb[13].mxu0 }
 0x453   : > { %v6030_v11 = vmax.f32 %v5998_v29, 0.0  ;;  %v10952_v47 = vadd.f32 %v5832_v6, %v12854_v21  ;;  %v10614_v9 = vpop.f32.mrb[14].mxu0  ;;  %10634 = vmatmul.mubr.msk.bf16.vlgmr.msra.gmra.mrb[32].mxu1 %vm464_vm4, %v13121_v42 }
 0x454   : > { %v6058_v46 = vpack.c.bf16 %v6032_v2, %v6031_v62  ;;  %v5964_v26 = vmul.f32 %v10951_v8, %v13070_v1  ;;  %v10953_v38 = vadd.f32 %v10614_v9, %v12857_v16  ;;  %10666 = vmatpush3.bf16.msra.mxu1 %v6495_v48  ;;  %v5835_v51 = vpop.f32.mrb[15].mxu0  ;;  %10637 = vmatprep.mubr.msk.bf16.mxu1 %vm464_vm4, %v13126_v59 }
 0x455   : > { %v6057_v15 = vpack.c.bf16 %v6030_v11, %v6029_v34  ;;  %v5962_v54 = vmul.f32 %v10952_v47, %v13070_v1  ;;  %v10954_v50 = vadd.f32 %v5835_v51, %v12859_v18  ;;  %11760 = vmatprep.subr.msk.bf16.mxu1 %vm6281_vm3, %v13131_v14 }
 0x456   : > { %v6079_v21 = vunpack.c.l.bf16 %v6058_v46  ;;  %v6080_v12 = vunpack.c.h.bf16 %v6058_v46  ;;  %v6003_v23 = vadd.f32 %v13076_v56, %v5964_v26  ;;  %v5965_v41 = vmul.f32 %v10953_v38, %v13070_v1 }
 0x457   : > { %v6077_v16 = vunpack.c.l.bf16 %v6057_v15  ;;  %v6078_v32 = vunpack.c.h.bf16 %v6057_v15  ;;  %v6001_v33 = vadd.f32 %v13076_v56, %v5962_v54  ;;  %v5963_v52 = vmul.f32 %v10954_v50, %v13070_v1  ;;  %v6191_v3 = vld [vmem:[#allocation4 + $0x61] sm:$0xff]  ;;  %v6192_v0 = vld [vmem:[#allocation4 + $0x69] sm:$0xff] }
 0x458   : > { %6112 = vst.msk [vmem:[#allocation4 + $0x91] sm:$0xff] %vm464_vm4, %v6079_v21  ;;  %6113 = vst.msk [vmem:[#allocation4 + $0x99] sm:$0xff] %vm464_vm4, %v6080_v12  ;;  %v6004_v18 = vadd.f32 %v13076_v56, %v5965_v41  ;;  %v6189_v5 = vld [vmem:[#allocation4 + $0x49] sm:$0xff]  ;;  %v6190_v53 = vld [vmem:[#allocation4 + $0x51] sm:$0xff]  ;;  %v6035_v43 = vmax.f32 %v6003_v23, 0.0  ;;  %v13157_v10 = vpack.c.bf16 %v6192_v0, %v6191_v3 }
 0x459   : > { %6110 = vst.msk [vmem:[#allocation4 + $0x79] sm:$0xff] %vm464_vm4, %v6077_v16  ;;  %6111 = vst.msk [vmem:[#allocation4 + $0x81] sm:$0xff] %vm464_vm4, %v6078_v32  ;;  %v6002_v36 = vadd.f32 %v13076_v56, %v5963_v52  ;;  %v10617_v63 = vpop.f32.mrb[16].mxu0  ;;  %v13154_v61 = vpack.c.bf16 %v6190_v53, %v6189_v5  ;;  %v6033_v17 = vmax.f32 %v6001_v33, 0.0 }
 0x45a   : > { %v6036_v7 = vmax.f32 %v6004_v18, 0.0  ;;  %v10955_v57 = vadd.f32 %v10617_v63, %v12862_v13  ;;  %v5848_v55 = vpop.f32.mrb[17].mxu0 }
 0x45b   : > { %v6034_v4 = vmax.f32 %v6002_v36, 0.0  ;;  %v10956_v60 = vadd.f32 %v5848_v55, %v12866_v22  ;;  %v10618_v20 = vpop.f32.mrb[18].mxu0  ;;  %10638 = vmatmul.mubr.msk.bf16.gmra.mrb[36].mxu1 %vm464_vm4, %v13154_v61 }
 0x45c   : > { %v6060_v29 = vpack.c.bf16 %v6036_v7, %v6035_v43  ;;  %v5968_v58 = vmul.f32 %v10955_v57, %v13070_v1  ;;  %v10957_v48 = vadd.f32 %v10618_v20, %v12868_v19  ;;  %v5851_v62 = vpop.f32.mrb[19].mxu0  ;;  %10641 = vmatprep.mubr.msk.bf16.mxu1 %vm464_vm4, %v13157_v10 }
 0x45d   : > { %v6059_v13 = vpack.c.bf16 %v6034_v4, %v6033_v17  ;;  %v5966_v2 = vmul.f32 %v10956_v60, %v13070_v1  ;;  %v10958_v8 = vadd.f32 %v5851_v62, %v12870_v27 }
 0x45e   : > { %v6083_v6 = vunpack.c.l.bf16 %v6060_v29  ;;  %v6084_v22 = vunpack.c.h.bf16 %v6060_v29  ;;  %v6007_v34 = vadd.f32 %v13076_v56, %v5968_v58  ;;  %v5969_v11 = vmul.f32 %v10957_v48, %v13070_v1 }
 0x45f   : > { %v6081_v47 = vunpack.c.l.bf16 %v6059_v13  ;;  %v6082_v9 = vunpack.c.h.bf16 %v6059_v13  ;;  %v6005_v46 = vadd.f32 %v13076_v56, %v5966_v2  ;;  %v5967_v19 = vmul.f32 %v10958_v8, %v13070_v1  ;;  %v6195_v26 = vld [vmem:[#allocation4 + $0x91] sm:$0xff]  ;;  %v6196_v38 = vld [vmem:[#allocation4 + $0x99] sm:$0xff] }
 0x460   : > { %6116 = vst.msk [vmem:[#allocation4 + $0xc1] sm:$0xff] %vm464_vm4, %v6083_v6  ;;  %6117 = vst.msk [vmem:[#allocation4 + $0xc9] sm:$0xff] %vm464_vm4, %v6084_v22  ;;  %v6008_v27 = vadd.f32 %v13076_v56, %v5969_v11  ;;  %v6193_v51 = vld [vmem:[#allocation4 + $0x79] sm:$0xff]  ;;  %v6194_v15 = vld [vmem:[#allocation4 + $0x81] sm:$0xff]  ;;  %v6039_v12 = vmax.f32 %v6007_v34, 0.0  ;;  %v13181_v32 = vpack.c.bf16 %v6196_v38, %v6195_v26 }
 0x461   : > { %6114 = vst.msk [vmem:[#allocation4 + $0xa9] sm:$0xff] %vm464_vm4, %v6081_v47  ;;  %6115 = vst.msk [vmem:[#allocation4 + $0xb1] sm:$0xff] %vm464_vm4, %v6082_v9  ;;  %v6006_v54 = vadd.f32 %v13076_v56, %v5967_v19  ;;  %v10621_v50 = vpop.f32.mrb[20].mxu0  ;;  %v13178_v21 = vpack.c.bf16 %v6194_v15, %v6193_v51  ;;  %v6037_v33 = vmax.f32 %v6005_v46, 0.0 }
 0x462   : > { %v6040_v23 = vmax.f32 %v6008_v27, 0.0  ;;  %v10959_v41 = vadd.f32 %v10621_v50, %v12874_v25  ;;  %v5864_v16 = vpop.f32.mrb[21].mxu0 }
 0x463   : > { %v6038_v52 = vmax.f32 %v6006_v54, 0.0  ;;  %v10960_v3 = vadd.f32 %v5864_v16, %v12878_v40  ;;  %v10622_v0 = vpop.f32.mrb[22].mxu0  ;;  %10642 = vmatmul.mubr.msk.bf16.gmra.mrb[40].mxu1 %vm464_vm4, %v13178_v21 }
 0x464   : > { %v6062_v18 = vpack.c.bf16 %v6040_v23, %v6039_v12  ;;  %v5972_v5 = vmul.f32 %v10959_v41, %v13070_v1  ;;  %v10961_v53 = vadd.f32 %v10622_v0, %v12880_v44  ;;  %v5867_v36 = vpop.f32.mrb[23].mxu0  ;;  %10645 = vmatprep.mubr.msk.bf16.mxu1 %vm464_vm4, %v13181_v32 }
 0x465   : > { %v6061_v25 = vpack.c.bf16 %v6038_v52, %v6037_v33  ;;  %v5970_v63 = vmul.f32 %v10960_v3, %v13070_v1  ;;  %v10962_v43 = vadd.f32 %v5867_v36, %v12882_v30 }
 0x466   : > { %v6087_v7 = vunpack.c.l.bf16 %v6062_v18  ;;  %v6088_v40 = vunpack.c.h.bf16 %v6062_v18  ;;  %v6011_v57 = vadd.f32 %v13076_v56, %v5972_v5  ;;  %v5973_v55 = vmul.f32 %v10961_v53, %v13070_v1 }
 0x467   : > { %v6085_v17 = vunpack.c.l.bf16 %v6061_v25  ;;  %v6086_v4 = vunpack.c.h.bf16 %v6061_v25  ;;  %v6009_v60 = vadd.f32 %v13076_v56, %v5970_v63  ;;  %v5971_v44 = vmul.f32 %v10962_v43, %v13070_v1  ;;  %v6199_v20 = vld [vmem:[#allocation4 + $0xc1] sm:$0xff]  ;;  %v6200_v29 = vld [vmem:[#allocation4 + $0xc9] sm:$0xff] }
 0x468   : > { %6120 = vst.msk [vmem:[#allocation4 + $0xf1] sm:$0xff] %vm464_vm4, %v6087_v7  ;;  %6121 = vst.msk [vmem:[#allocation4 + $0xf9] sm:$0xff] %vm464_vm4, %v6088_v40  ;;  %v6012_v30 = vadd.f32 %v13076_v56, %v5973_v55  ;;  %v6197_v58 = vld [vmem:[#allocation4 + $0xa9] sm:$0xff]  ;;  %v6198_v48 = vld [vmem:[#allocation4 + $0xb1] sm:$0xff]  ;;  %v6043_v8 = vmax.f32 %v6011_v57, 0.0  ;;  %v13205_v11 = vpack.c.bf16 %v6200_v29, %v6199_v20 }
 0x469   : > { %6118 = vst.msk [vmem:[#allocation4 + $0xd9] sm:$0xff] %vm464_vm4, %v6085_v17  ;;  %6119 = vst.msk [vmem:[#allocation4 + $0xe1] sm:$0xff] %vm464_vm4, %v6086_v4  ;;  %v6010_v62 = vadd.f32 %v13076_v56, %v5971_v44  ;;  %v10625_v13 = vpop.f32.mrb[24].mxu0  ;;  %v13202_v2 = vpack.c.bf16 %v6198_v48, %v6197_v58  ;;  %v6041_v47 = vmax.f32 %v6009_v60, 0.0 }
 0x46a   : > { %v6044_v6 = vmax.f32 %v6012_v30, 0.0  ;;  %v10963_v22 = vadd.f32 %v10625_v13, %v12886_v28  ;;  %v5880_v34 = vpop.f32.mrb[25].mxu0 }
 0x46b   : > { %v6042_v9 = vmax.f32 %v6010_v62, 0.0  ;;  %v10964_v46 = vadd.f32 %v5880_v34, %v12890_v37  ;;  %v10626_v19 = vpop.f32.mrb[26].mxu0  ;;  %10646 = vmatmul.mubr.msk.bf16.gmra.mrb[44].mxu1 %vm464_vm4, %v13202_v2 }
 0x46c   : > { %v6064_v26 = vpack.c.bf16 %v6044_v6, %v6043_v8  ;;  %v5976_v38 = vmul.f32 %v10963_v22, %v13070_v1  ;;  %v10965_v27 = vadd.f32 %v10626_v19, %v12892_v24  ;;  %v5883_v51 = vpop.f32.mrb[27].mxu0  ;;  %10649 = vmatprep.mubr.msk.bf16.mxu1 %vm464_vm4, %v13205_v11 }
 0x46d   : > { %v6063_v28 = vpack.c.bf16 %v6042_v9, %v6041_v47  ;;  %v5974_v15 = vmul.f32 %v10964_v46, %v13070_v1  ;;  %v10966_v54 = vadd.f32 %v5883_v51, %v12894_v39 }
 0x46e   : > { %v6091_v50 = vunpack.c.l.bf16 %v6064_v26  ;;  %v6092_v37 = vunpack.c.h.bf16 %v6064_v26  ;;  %v6015_v12 = vadd.f32 %v13076_v56, %v5976_v38  ;;  %v5977_v23 = vmul.f32 %v10965_v27, %v13070_v1 }
 0x46f   : > { %v6089_v41 = vunpack.c.l.bf16 %v6063_v28  ;;  %v6090_v16 = vunpack.c.h.bf16 %v6063_v28  ;;  %v6013_v33 = vadd.f32 %v13076_v56, %v5974_v15  ;;  %v5975_v24 = vmul.f32 %v10966_v54, %v13070_v1  ;;  %v6203_v52 = vld [vmem:[#allocation4 + $0xf1] sm:$0xff]  ;;  %v6204_v3 = vld [vmem:[#allocation4 + $0xf9] sm:$0xff] }
 0x470   : > { %6124 = vst.msk [vmem:[#allocation4 + $0x121] sm:$0xff] %vm464_vm4, %v6091_v50  ;;  %6125 = vst.msk [vmem:[#allocation4 + $0x129] sm:$0xff] %vm464_vm4, %v6092_v37  ;;  %v6016_v39 = vadd.f32 %v13076_v56, %v5977_v23  ;;  %v6201_v0 = vld [vmem:[#allocation4 + $0xd9] sm:$0xff]  ;;  %v6202_v18 = vld [vmem:[#allocation4 + $0xe1] sm:$0xff]  ;;  %v6047_v25 = vmax.f32 %v6015_v12, 0.0  ;;  %v13229_v40 = vpack.c.bf16 %v6204_v3, %v6203_v52 }
 0x471   : > { %6122 = vst.msk [vmem:[#allocation4 + $0x109] sm:$0xff] %vm464_vm4, %v6089_v41  ;;  %6123 = vst.msk [vmem:[#allocation4 + $0x111] sm:$0xff] %vm464_vm4, %v6090_v16  ;;  %v6014_v5 = vadd.f32 %v13076_v56, %v5975_v24  ;;  %v10629_v53 = vpop.f32.mrb[28].mxu0  ;;  %v13226_v36 = vpack.c.bf16 %v6202_v18, %v6201_v0  ;;  %v6045_v57 = vmax.f32 %v6013_v33, 0.0  ;;  %v6134_v3 = vld [vmem:[#allocation4] sm:$0xff] }
 0x472   : > { %v6048_v63 = vmax.f32 %v6016_v39, 0.0  ;;  %v10967_v43 = vadd.f32 %v10629_v53, %v12898_v45  ;;  %v5896_v7 = vpop.f32.mrb[29].mxu0  ;;  %v6135_v39 = vld [vmem:[#allocation4 + $0x8] sm:$0xff] }
 0x473   : > { %v6046_v55 = vmax.f32 %v6014_v5, 0.0  ;;  %v10968_v17 = vadd.f32 %v5896_v7, %v12902_v35  ;;  %v10630_v4 = vpop.f32.mrb[30].mxu0  ;;  %10650 = vmatmul.mubr.msk.bf16.gmra.mrb[48].mxu1 %vm464_vm4, %v13226_v36  ;;  %v6166_v5 = vpack.c.bf16 %v6135_v39, %v6134_v3  ;;  %v6139_v7 = vld [vmem:[#allocation4 + $0x38] sm:$0xff]  ;;  %v6658_v3 = vld [vmem:[#allocation4 + $0x2] sm:$0xff]  ;;  %v6659_v39 = vld [vmem:[#allocation4 + $0xa] sm:$0xff] }
 0x474   : > { %v6066_v60 = vpack.c.bf16 %v6048_v63, %v6047_v25  ;;  %v5980_v44 = vmul.f32 %v10967_v43, %v13070_v1  ;;  %v10969_v20 = vadd.f32 %v10630_v4, %v12904_v31  ;;  %v5899_v29 = vpop.f32.mrb[31].mxu0  ;;  %10653 = vmatprep.mubr.msk.bf16.mxu1 %vm464_vm4, %v13229_v40  ;;  %v6136_v25 = vld [vmem:[#allocation4 + $0x18] sm:$0xff]  ;;  %v6137_v63 = vld [vmem:[#allocation4 + $0x20] sm:$0xff]  ;;  %v6138_v43 = vld [vmem:[#allocation4 + $0x30] sm:$0xff] }
 0x475   : > { %v6065_v45 = vpack.c.bf16 %v6046_v55, %v6045_v57  ;;  %v5978_v30 = vmul.f32 %v10968_v17, %v13070_v1  ;;  %v10970_v58 = vadd.f32 %v5899_v29, %v12906_v49  ;;  %v13275_v57 = vpack.c.bf16 %v6137_v63, %v6136_v25  ;;  %v13284_v4 = vld [vmem:[%s13775_s6 + $0xc] sm:$0xf]  ;;  %v6660_v63 = vld [vmem:[#allocation4 + $0x1a] sm:$0xff] }
 0x476   : > { %v6095_v48 = vunpack.c.l.bf16 %v6066_v60  ;;  %v6096_v35 = vunpack.c.h.bf16 %v6066_v60  ;;  %v6019_v62 = vadd.f32 %v13076_v56, %v5980_v44  ;;  %v5981_v13 = vmul.f32 %v10969_v20, %v13070_v1  ;;  %v6140_v60 = vld [vmem:[#allocation4 + $0x48] sm:$0xff]  ;;  %v6141_v44 = vld [vmem:[#allocation4 + $0x50] sm:$0xff] }
 0x477   : > { %v6093_v8 = vunpack.c.l.bf16 %v6065_v45  ;;  %v6094_v6 = vunpack.c.h.bf16 %v6065_v45  ;;  %v6017_v22 = vadd.f32 %v13076_v56, %v5978_v30  ;;  %v5979_v31 = vmul.f32 %v10970_v58, %v13070_v1  ;;  %v6207_v34 = vld [vmem:[#allocation4 + $0x121] sm:$0xff]  ;;  %v6208_v47 = vld [vmem:[#allocation4 + $0x129] sm:$0xff]  ;;  %v6144_v30 = vld [vmem:[#allocation4 + $0x78] sm:$0xff] }
 0x478   : > { %6128 = vst.msk [vmem:[#allocation4 + $0x151] sm:$0xff] %vm464_vm4, %v6095_v48  ;;  %6129 = vst.msk [vmem:[#allocation4 + $0x159] sm:$0xff] %vm464_vm4, %v6096_v35  ;;  %v6020_v49 = vadd.f32 %v13076_v56, %v5981_v13  ;;  %v6205_v9 = vld [vmem:[#allocation4 + $0x109] sm:$0xff]  ;;  %v6206_v46 = vld [vmem:[#allocation4 + $0x111] sm:$0xff]  ;;  %v6051_v38 = vmax.f32 %v6019_v62, 0.0  ;;  %v13252_v27 = vpack.c.bf16 %v6208_v47, %v6207_v34  ;;  %v6757_v55 = vsel %vm6281_vm3, %v13131_v14, 0 }
 0x479   : > { %6126 = vst.msk [vmem:[#allocation4 + $0x139] sm:$0xff] %vm464_vm4, %v6093_v8  ;;  %6127 = vst.msk [vmem:[#allocation4 + $0x141] sm:$0xff] %vm464_vm4, %v6094_v6  ;;  %v6018_v19 = vadd.f32 %v13076_v56, %v5979_v31  ;;  %v13250_v26 = vpack.c.bf16 %v6206_v46, %v6205_v9  ;;  %v6049_v51 = vmax.f32 %v6017_v22, 0.0  ;;  %v13279_v17 = vpack.c.bf16 %v6139_v7, %v6138_v43  ;;  %v6142_v14 = vld [vmem:[#allocation4 + $0x60] sm:$0xff]  ;;  %v6143_v20 = vld [vmem:[#allocation4 + $0x68] sm:$0xff] }
 0x47a   : > { %v6052_v1 = vmax.f32 %v6020_v49, 0.0  ;;  %v13292_v29 = vpack.c.bf16 %v6141_v44, %v6140_v60  ;;  %v13294_v45 = vpack.c.bf16 %v6143_v20, %v6142_v14  ;;  %v6145_v58 = vld [vmem:[#allocation4 + $0x80] sm:$0xff]  ;;  %v6146_v48 = vld [vmem:[#allocation4 + $0x90] sm:$0xff]  ;;  %v6147_v35 = vld [vmem:[#allocation4 + $0x98] sm:$0xff]  ;;  %v7051_v44 = vsel %vm6281_vm3, %v13284_v4, 0 }
 0x47b   : > { %v6050_v28 = vmax.f32 %v6018_v19, 0.0  ;;  %10654 = vmatmul.mubr.msk.bf16.gmra.mrb[52].mxu1 %vm464_vm4, %v13250_v26  ;;  %v13300_v62 = vpack.c.bf16 %v6145_v58, %v6144_v30  ;;  %v13302_v13 = vpack.c.bf16 %v6147_v35, %v6146_v48  ;;  %v6148_v8 = vld [vmem:[#allocation4 + $0xa8] sm:$0xff]  ;;  %v6149_v6 = vld [vmem:[#allocation4 + $0xb0] sm:$0xff]  ;;  %v6150_v22 = vld [vmem:[#allocation4 + $0xc0] sm:$0xff] }
 0x47c   : > { %v6068_v15 = vpack.c.bf16 %v6052_v1, %v6051_v38  ;;  %10657 = vmatprep.mubr.msk.bf16.mxu1 %vm464_vm4, %v13252_v27  ;;  %v6151_v31 = vld [vmem:[#allocation4 + $0xc8] sm:$0xff]  ;;  %v13308_v34 = vpack.c.bf16 %v6149_v6, %v6148_v8  ;;  %v6152_v49 = vld [vmem:[#allocation4 + $0xd8] sm:$0xff]  ;;  %v6153_v9 = vld [vmem:[#allocation4 + $0xe0] sm:$0xff] }
 0x47d   : > { %v6067_v54 = vpack.c.bf16 %v6050_v28, %v6049_v51  ;;  %v13310_v47 = vpack.c.bf16 %v6151_v31, %v6150_v22  ;;  %v6154_v46 = vld [vmem:[#allocation4 + $0xf0] sm:$0xff]  ;;  %v6155_v19 = vld [vmem:[#allocation4 + $0xf8] sm:$0xff]  ;;  %v13316_v38 = vpack.c.bf16 %v6153_v9, %v6152_v49  ;;  %v6156_v51 = vld [vmem:[#allocation4 + $0x108] sm:$0xff] }
 0x47e   : > { %v6099_v50 = vunpack.c.l.bf16 %v6068_v15  ;;  %v6100_v37 = vunpack.c.h.bf16 %v6068_v15  ;;  %v13318_v1 = vpack.c.bf16 %v6155_v19, %v6154_v46  ;;  %v6157_v28 = vld [vmem:[#allocation4 + $0x110] sm:$0xff]  ;;  %v6158_v15 = vld [vmem:[#allocation4 + $0x120] sm:$0xff] }
 0x47f   : > { %v6097_v12 = vunpack.c.l.bf16 %v6067_v54  ;;  %v6098_v56 = vunpack.c.h.bf16 %v6067_v54  ;;  %v6211_v23 = vld [vmem:[#allocation4 + $0x151] sm:$0xff]  ;;  %v6212_v41 = vld [vmem:[#allocation4 + $0x159] sm:$0xff]  ;;  %v6159_v54 = vld [vmem:[#allocation4 + $0x128] sm:$0xff] }
 0x480   : > { %6132 = vst.msk [vmem:[#allocation4 + $0x181] sm:$0xff] %vm464_vm4, %v6099_v50  ;;  %6133 = vst.msk [vmem:[#allocation4 + $0x189] sm:$0xff] %vm464_vm4, %v6100_v37  ;;  %v6209_v16 = vld [vmem:[#allocation4 + $0x139] sm:$0xff]  ;;  %v6210_v33 = vld [vmem:[#allocation4 + $0x141] sm:$0xff]  ;;  %v13264_v52 = vpack.c.bf16 %v6212_v41, %v6211_v23  ;;  %v13324_v50 = vpack.c.bf16 %v6157_v28, %v6156_v51  ;;  %v13326_v37 = vpack.c.bf16 %v6159_v54, %v6158_v15 }
 0x481   : > { %6130 = vst.msk [vmem:[#allocation4 + $0x169] sm:$0xff] %vm464_vm4, %v6097_v12  ;;  %6131 = vst.msk [vmem:[#allocation4 + $0x171] sm:$0xff] %vm464_vm4, %v6098_v56  ;;  %v13262_v24 = vpack.c.bf16 %v6210_v33, %v6209_v16  ;;  %v6160_v12 = vld [vmem:[#allocation4 + $0x138] sm:$0xff]  ;;  %v6161_v56 = vld [vmem:[#allocation4 + $0x140] sm:$0xff] }
 0x482   : > { %v6162_v23 = vld [vmem:[#allocation4 + $0x150] sm:$0xff]  ;;  %v6163_v41 = vld [vmem:[#allocation4 + $0x158] sm:$0xff]  ;;  %v13332_v16 = vpack.c.bf16 %v6161_v56, %v6160_v12  ;;  %v6661_v43 = vld [vmem:[#allocation4 + $0x22] sm:$0xff] }
 0x483   : > { %10658 = vmatmul.mubr.msk.bf16.gmra.mrb[56].mxu1 %vm464_vm4, %v13262_v24  ;;  %v13334_v33 = vpack.c.bf16 %v6163_v41, %v6162_v23  ;;  %v6662_v7 = vld [vmem:[#allocation4 + $0x32] sm:$0xff]  ;;  %v13345_v60 = vpack.c.bf16 %v6661_v43, %v6660_v63  ;;  %v6664_v30 = vld [vmem:[#allocation4 + $0x4a] sm:$0xff]  ;;  %v6666_v48 = vld [vmem:[#allocation4 + $0x62] sm:$0xff] }
 0x484   : > { %10661 = vmatprep.mubr.msk.bf16.mxu1 %vm464_vm4, %v13264_v52  ;;  %v9310_v20 = vld [vmem:[%s13775_s6 + $0x10] sm:$0xf]  ;;  %v6668_v6 = vld [vmem:[#allocation4 + $0x7a] sm:$0xff]  ;;  %v6669_v22 = vld [vmem:[#allocation4 + $0x82] sm:$0xff] }
 0x485   : > { %v6665_v58 = vld [vmem:[#allocation4 + $0x52] sm:$0xff]  ;;  %v6667_v35 = vld [vmem:[#allocation4 + $0x6a] sm:$0xff]  ;;  %v6671_v49 = vld [vmem:[#allocation4 + $0x9a] sm:$0xff]  ;;  %v13367_v9 = vpack.c.bf16 %v6669_v22, %v6668_v6 }
 0x486   : > { %v13361_v8 = vpack.c.bf16 %v6667_v35, %v6666_v48  ;;  %v6670_v31 = vld [vmem:[#allocation4 + $0x92] sm:$0xff]  ;;  %v6672_v19 = vld [vmem:[#allocation4 + $0xaa] sm:$0xff]  ;;  %v6674_v28 = vld [vmem:[#allocation4 + $0xc2] sm:$0xff] }
 0x487   : > { %v13369_v46 = vpack.c.bf16 %v6671_v49, %v6670_v31  ;;  %v6673_v51 = vld [vmem:[#allocation4 + $0xb2] sm:$0xff]  ;;  %v6675_v15 = vld [vmem:[#allocation4 + $0xca] sm:$0xff]  ;;  %v6676_v56 = vld [vmem:[#allocation4 + $0xda] sm:$0xff] }
 0x488   : > { %v6213_v0 = vld [vmem:[#allocation4 + $0x169] sm:$0xff]  ;;  %v6214_v18 = vld [vmem:[#allocation4 + $0x171] sm:$0xff]  ;;  %v13375_v54 = vpack.c.bf16 %v6673_v51, %v6672_v19  ;;  %v13377_v12 = vpack.c.bf16 %v6675_v15, %v6674_v28  ;;  %v6687_v48 = vld [vmem:[#allocation4 + $0x15a] sm:$0xff]  ;;  %v7345_v19 = vsel %vm6281_vm3, %v9310_v20, 0 }
 0x489   : > { %v13270_v53 = vpack.c.bf16 %v6214_v18, %v6213_v0  ;;  %v6164_v0 = vld [vmem:[#allocation4 + $0x168] sm:$0xff]  ;;  %v6165_v18 = vld [vmem:[#allocation4 + $0x170] sm:$0xff] }
 0x48a   : > { %v13340_v25 = vpack.c.bf16 %v6165_v18, %v6164_v0  ;;  %v6677_v23 = vld [vmem:[#allocation4 + $0xe2] sm:$0xff]  ;;  %v6678_v41 = vld [vmem:[#allocation4 + $0xf2] sm:$0xff]  ;;  %v6680_v18 = vld [vmem:[#allocation4 + $0x10a] sm:$0xff] }
 0x48b   : > { %10662 = vmatmul.mubr.msk.bf16.gmra.mrb[60].mxu1 %vm464_vm4, %v13270_v53  ;;  %v6682_v63 = vld [vmem:[#allocation4 + $0x122] sm:$0xff]  ;;  %v6683_v43 = vld [vmem:[#allocation4 + $0x12a] sm:$0xff]  ;;  %v6689_v31 = vld [vmem:[#allocation4 + $0x172] sm:$0xff] }
 0x48c   : > { %10667 = vmatprep.mubr.msk.bf16.mxu1 %vm464_vm4, %v6166_v5  ;;  %v6690_v5 = vpack.c.bf16 %v6659_v39, %v6658_v3  ;;  %v6679_v3 = vld [vmem:[#allocation4 + $0xfa] sm:$0xff]  ;;  %v13383_v39 = vpack.c.bf16 %v6677_v23, %v6676_v56  ;;  %v6688_v22 = vld [vmem:[#allocation4 + $0x16a] sm:$0xff]  ;;  %v9327_v51 = vld [vmem:[%s13775_s6 + $0x14] sm:$0xf] }
 0x48d   : > { %v13385_v0 = vpack.c.bf16 %v6679_v3, %v6678_v41  ;;  %v13407_v49 = vpack.c.bf16 %v6689_v31, %v6688_v22  ;;  %v7639_v15 = vsel %vm6281_vm3, %v9327_v51, 0  ;;  %v9344_v56 = vld [vmem:[%s13775_s6 + $0x18] sm:$0xf]  ;;  %v9378_v3 = vld [vmem:[%s13775_s6 + $0x20] sm:$0xf] }
 0x493   : > { %10668 = vmatmul.mubr.msk.bf16.vlgmr.msra.gmra.mrb[32].mxu1 %vm464_vm4, %v13275_v57 }
 0x494   : > { %10700 = vmatpush3.bf16.msra.mxu1 %v6757_v55  ;;  %10671 = vmatprep.mubr.msk.bf16.mxu1 %vm464_vm4, %v13279_v17  ;;  %v6663_v55 = vld [vmem:[#allocation4 + $0x3a] sm:$0xff] }
 0x495   : > { %11761 = vmatprep.subr.msk.bf16.mxu1 %vm6281_vm3, %v13284_v4  ;;  %v13349_v14 = vpack.c.bf16 %v6663_v55, %v6662_v7  ;;  %v13359_v4 = vpack.c.bf16 %v6665_v58, %v6664_v30  ;;  %v13393_v55 = vpack.c.bf16 %v6683_v43, %v6682_v63  ;;  %v6685_v30 = vld [vmem:[#allocation4 + $0x142] sm:$0xff]  ;;  %v6686_v58 = vld [vmem:[#allocation4 + $0x152] sm:$0xff] }
 0x496   : > { %v13401_v6 = vpack.c.bf16 %v6687_v48, %v6686_v58  ;;  %v8138_v63 = vld [vmem:[#allocation4 + $0x99] sm:$0xff] }
 0x49b   : > { %10672 = vmatmul.mubr.msk.bf16.gmra.mrb[36].mxu1 %vm464_vm4, %v13292_v29 }
 0x49c   : > { %10675 = vmatprep.mubr.msk.bf16.mxu1 %vm464_vm4, %v13294_v45 }
 0x4a3   : > { %10676 = vmatmul.mubr.msk.bf16.gmra.mrb[40].mxu1 %vm464_vm4, %v13300_v62 }
 0x4a4   : > { %10679 = vmatprep.mubr.msk.bf16.mxu1 %vm464_vm4, %v13302_v13 }
 0x4ab   : > { %10680 = vmatmul.mubr.msk.bf16.gmra.mrb[44].mxu1 %vm464_vm4, %v13308_v34 }
 0x4ac   : > { %10683 = vmatprep.mubr.msk.bf16.mxu1 %vm464_vm4, %v13310_v47 }
 0x4b3   : > { %10684 = vmatmul.mubr.msk.bf16.gmra.mrb[48].mxu1 %vm464_vm4, %v13316_v38 }
 0x4b4   : > { %10687 = vmatprep.mubr.msk.bf16.mxu1 %vm464_vm4, %v13318_v1 }
 0x4bb   : > { %10688 = vmatmul.mubr.msk.bf16.gmra.mrb[52].mxu1 %vm464_vm4, %v13324_v50 }
 0x4bc   : > { %10691 = vmatprep.mubr.msk.bf16.mxu1 %vm464_vm4, %v13326_v37 }
 0x4c3   : > { %10692 = vmatmul.mubr.msk.bf16.gmra.mrb[56].mxu1 %vm464_vm4, %v13332_v16 }
 0x4c4   : > { %10695 = vmatprep.mubr.msk.bf16.mxu1 %vm464_vm4, %v13334_v33 }
 0x4cb   : > { %10696 = vmatmul.mubr.msk.bf16.gmra.mrb[60].mxu1 %vm464_vm4, %v13340_v25 }
 0x4cc   : > { %10701 = vmatprep.mubr.msk.bf16.mxu1 %vm464_vm4, %v6690_v5  ;;  %v6681_v5 = vld [vmem:[#allocation4 + $0x112] sm:$0xff] }
 0x4cd   : > { %v13391_v7 = vpack.c.bf16 %v6681_v5, %v6680_v18  ;;  %v8136_v18 = vld [vmem:[#allocation4 + $0x81] sm:$0xff]  ;;  %v8137_v5 = vld [vmem:[#allocation4 + $0x91] sm:$0xff] }
 0x4d3   : > { %10702 = vmatmul.mubr.msk.bf16.vlgmr.msra.gmra.mrb[32].mxu1 %vm464_vm4, %v13345_v60 }
 0x4d4   : > { %10734 = vmatpush3.bf16.msra.mxu1 %v7051_v44  ;;  %10705 = vmatprep.mubr.msk.bf16.mxu1 %vm464_vm4, %v13349_v14  ;;  %v6684_v44 = vld [vmem:[#allocation4 + $0x13a] sm:$0xff] }
 0x4d5   : > { %11762 = vmatprep.subr.msk.bf16.mxu1 %vm6281_vm3, %v9310_v20  ;;  %v13399_v35 = vpack.c.bf16 %v6685_v30, %v6684_v44  ;;  %v6983_v20 = vld [vmem:[#allocation4 + $0x188] sm:$0xff]  ;;  %v8165_v44 = vpack.c.bf16 %v8138_v63, %v8137_v5 }
 0x4db   : > { %10706 = vmatmul.mubr.msk.bf16.gmra.mrb[36].mxu1 %vm464_vm4, %v13359_v4 }
 0x4dc   : > { %10709 = vmatprep.mubr.msk.bf16.mxu1 %vm464_vm4, %v13361_v8 }
 0x4e3   : > { %10710 = vmatmul.mubr.msk.bf16.gmra.mrb[40].mxu1 %vm464_vm4, %v13367_v9 }
 0x4e4   : > { %10713 = vmatprep.mubr.msk.bf16.mxu1 %vm464_vm4, %v13369_v46 }
 0x4eb   : > { %10714 = vmatmul.mubr.msk.bf16.gmra.mrb[44].mxu1 %vm464_vm4, %v13375_v54 }
 0x4ec   : > { %10717 = vmatprep.mubr.msk.bf16.mxu1 %vm464_vm4, %v13377_v12 }
 0x4f3   : > { %10718 = vmatmul.mubr.msk.bf16.gmra.mrb[48].mxu1 %vm464_vm4, %v13383_v39 }
 0x4f4   : > { %10721 = vmatprep.mubr.msk.bf16.mxu1 %vm464_vm4, %v13385_v0 }
 0x4fb   : > { %10722 = vmatmul.mubr.msk.bf16.gmra.mrb[52].mxu1 %vm464_vm4, %v13391_v7 }
 0x4fc   : > { %10725 = vmatprep.mubr.msk.bf16.mxu1 %vm464_vm4, %v13393_v55 }
 0x503   : > { %10726 = vmatmul.mubr.msk.bf16.gmra.mrb[56].mxu1 %vm464_vm4, %v13399_v35 }
 0x504   : > { %10729 = vmatprep.mubr.msk.bf16.mxu1 %vm464_vm4, %v13401_v6 }
 0x50b   : > { %10730 = vmatmul.mubr.msk.bf16.gmra.mrb[60].mxu1 %vm464_vm4, %v13407_v49 }
 0x50c   : > { %10735 = vmatprep.mubr.msk.bf16.mxu1 %vm464_vm4, %v13275_v57  ;;  %v6982_v57 = vld [vmem:[#allocation4 + $0x180] sm:$0xff] }
 0x50d   : > { %v13446_v28 = vpack.c.bf16 %v6983_v20, %v6982_v57 }
 0x513   : > { %10736 = vmatmul.mubr.msk.bf16.vlgmr.msra.gmra.mrb[32].mxu1 %vm464_vm4, %v13279_v17 }
 0x514   : > { %10768 = vmatpush3.bf16.msra.mxu1 %v7345_v19  ;;  %10739 = vmatprep.mubr.msk.bf16.mxu1 %vm464_vm4, %v13292_v29 }
 0x515   : > { %11763 = vmatprep.subr.msk.bf16.mxu1 %vm6281_vm3, %v9327_v51 }
 0x51b   : > { %10740 = vmatmul.mubr.msk.bf16.gmra.mrb[36].mxu1 %vm464_vm4, %v13294_v45 }
 0x51c   : > { %10743 = vmatprep.mubr.msk.bf16.mxu1 %vm464_vm4, %v13300_v62 }
 0x523   : > { %10744 = vmatmul.mubr.msk.bf16.gmra.mrb[40].mxu1 %vm464_vm4, %v13302_v13 }
 0x524   : > { %10747 = vmatprep.mubr.msk.bf16.mxu1 %vm464_vm4, %v13308_v34 }
 0x52b   : > { %10748 = vmatmul.mubr.msk.bf16.gmra.mrb[44].mxu1 %vm464_vm4, %v13310_v47 }
 0x52c   : > { %10751 = vmatprep.mubr.msk.bf16.mxu1 %vm464_vm4, %v13316_v38 }
 0x533   : > { %10752 = vmatmul.mubr.msk.bf16.gmra.mrb[48].mxu1 %vm464_vm4, %v13318_v1 }
 0x534   : > { %10755 = vmatprep.mubr.msk.bf16.mxu1 %vm464_vm4, %v13324_v50 }
 0x53b   : > { %10756 = vmatmul.mubr.msk.bf16.gmra.mrb[52].mxu1 %vm464_vm4, %v13326_v37 }
 0x53c   : > { %10759 = vmatprep.mubr.msk.bf16.mxu1 %vm464_vm4, %v13332_v16 }
 0x543   : > { %10760 = vmatmul.mubr.msk.bf16.gmra.mrb[56].mxu1 %vm464_vm4, %v13334_v33 }
 0x544   : > { %10763 = vmatprep.mubr.msk.bf16.mxu1 %vm464_vm4, %v13340_v25 }
 0x54b   : > { %10764 = vmatmul.mubr.msk.bf16.gmra.mrb[60].mxu1 %vm464_vm4, %v13446_v28 }
 0x54c   : > { %10769 = vmatprep.mubr.msk.bf16.mxu1 %vm464_vm4, %v13121_v42  ;;  %v7276_v42 = vld [vmem:[#allocation4 + $0x181] sm:$0xff] }
 0x553   : > { %10770 = vmatmul.mubr.msk.bf16.vlgmr.msra.gmra.mrb[32].mxu1 %vm464_vm4, %v13126_v59  ;;  %v7277_v59 = vld [vmem:[#allocation4 + $0x189] sm:$0xff] }
 0x554   : > { %10802 = vmatpush3.bf16.msra.mxu1 %v7639_v15  ;;  %10773 = vmatprep.mubr.msk.bf16.mxu1 %vm464_vm4, %v13154_v61  ;;  %v13485_v61 = vpack.c.bf16 %v7277_v59, %v7276_v42 }
 0x555   : > { %11764 = vmatprep.subr.msk.bf16.mxu1 %vm6281_vm3, %v9344_v56 }
 0x55b   : > { %10774 = vmatmul.mubr.msk.bf16.gmra.mrb[36].mxu1 %vm464_vm4, %v13157_v10  ;;  %v7934_v10 = vsel %vm6281_vm3, %v9344_v56, 0 }
 0x55c   : > { %10777 = vmatprep.mubr.msk.bf16.mxu1 %vm464_vm4, %v13178_v21  ;;  %v9361_v21 = vld [vmem:[%s13775_s6 + $0x1c] sm:$0xf] }
 0x55d   : > { %v8228_v41 = vsel %vm6281_vm3, %v9361_v21, 0 }
 0x563   : > { %10778 = vmatmul.mubr.msk.bf16.gmra.mrb[40].mxu1 %vm464_vm4, %v13181_v32  ;;  %v7570_v32 = vld [vmem:[#allocation4 + $0x182] sm:$0xff] }
 0x564   : > { %10781 = vmatprep.mubr.msk.bf16.mxu1 %vm464_vm4, %v13202_v2 }
 0x56b   : > { %10782 = vmatmul.mubr.msk.bf16.gmra.mrb[44].mxu1 %vm464_vm4, %v13205_v11 }
 0x56c   : > { %10785 = vmatprep.mubr.msk.bf16.mxu1 %vm464_vm4, %v13226_v36 }
 0x573   : > { %10786 = vmatmul.mubr.msk.bf16.gmra.mrb[48].mxu1 %vm464_vm4, %v13229_v40 }
 0x574   : > { %10789 = vmatprep.mubr.msk.bf16.mxu1 %vm464_vm4, %v13250_v26 }
 0x57b   : > { %10790 = vmatmul.mubr.msk.bf16.gmra.mrb[52].mxu1 %vm464_vm4, %v13252_v27 }
 0x57c   : > { %10793 = vmatprep.mubr.msk.bf16.mxu1 %vm464_vm4, %v13262_v24 }
 0x583   : > { %10794 = vmatmul.mubr.msk.bf16.gmra.mrb[56].mxu1 %vm464_vm4, %v13264_v52 }
 0x584   : > { %10797 = vmatprep.mubr.msk.bf16.mxu1 %vm464_vm4, %v13270_v53 }
 0x58b   : > { %10798 = vmatmul.mubr.msk.bf16.gmra.mrb[60].mxu1 %vm464_vm4, %v13485_v61 }
 0x58c   : > { %10803 = vmatprep.mubr.msk.bf16.mxu1 %vm464_vm4, %v13345_v60  ;;  %v7571_v60 = vld [vmem:[#allocation4 + $0x18a] sm:$0xff] }
 0x58d   : > { %v13524_v23 = vpack.c.bf16 %v7571_v60, %v7570_v32 }
 0x593   : > { %10804 = vmatmul.mubr.msk.bf16.vlgmr.msra.gmra.mrb[32].mxu1 %vm464_vm4, %v13349_v14 }
 0x594   : > { %10836 = vmatpush3.bf16.msra.mxu1 %v7934_v10  ;;  %10807 = vmatprep.mubr.msk.bf16.mxu1 %vm464_vm4, %v13359_v4 }
 0x595   : > { %11765 = vmatprep.subr.msk.bf16.mxu1 %vm6281_vm3, %v9361_v21 }
 0x59b   : > { %10808 = vmatmul.mubr.msk.bf16.gmra.mrb[36].mxu1 %vm464_vm4, %v13361_v8 }
 0x59c   : > { %10811 = vmatprep.mubr.msk.bf16.mxu1 %vm464_vm4, %v13367_v9 }
 0x5a3   : > { %10812 = vmatmul.mubr.msk.bf16.gmra.mrb[40].mxu1 %vm464_vm4, %v13369_v46 }
 0x5a4   : > { %10815 = vmatprep.mubr.msk.bf16.mxu1 %vm464_vm4, %v13375_v54 }
 0x5ab   : > { %10816 = vmatmul.mubr.msk.bf16.gmra.mrb[44].mxu1 %vm464_vm4, %v13377_v12 }
 0x5ac   : > { %10819 = vmatprep.mubr.msk.bf16.mxu1 %vm464_vm4, %v13383_v39 }
 0x5b3   : > { %10820 = vmatmul.mubr.msk.bf16.gmra.mrb[48].mxu1 %vm464_vm4, %v13385_v0 }
 0x5b4   : > { %10823 = vmatprep.mubr.msk.bf16.mxu1 %vm464_vm4, %v13391_v7 }
 0x5bb   : > { %10824 = vmatmul.mubr.msk.bf16.gmra.mrb[52].mxu1 %vm464_vm4, %v13393_v55 }
 0x5bc   : > { %10827 = vmatprep.mubr.msk.bf16.mxu1 %vm464_vm4, %v13399_v35 }
 0x5c3   : > { %10828 = vmatmul.mubr.msk.bf16.gmra.mrb[56].mxu1 %vm464_vm4, %v13401_v6 }
 0x5c4   : > { %10831 = vmatprep.mubr.msk.bf16.mxu1 %vm464_vm4, %v13407_v49 }
 0x5cb   : > { %10832 = vmatmul.mubr.msk.bf16.gmra.mrb[60].mxu1 %vm464_vm4, %v13524_v23 }
 0x5cc   : > { %10837 = vmatprep.mubr.msk.bf16.mxu1 %vm464_vm4, %v13279_v17  ;;  %v7865_v17 = vld [vmem:[#allocation4 + $0x198] sm:$0xff] }
 0x5d3   : > { %10838 = vmatmul.mubr.msk.bf16.vlgmr.msra.gmra.mrb[32].mxu1 %vm464_vm4, %v13292_v29  ;;  %v7866_v29 = vld [vmem:[#allocation4 + $0x1a0] sm:$0xff] }
 0x5d4   : > { %10870 = vmatpush3.bf16.msra.mxu1 %v8228_v41  ;;  %10841 = vmatprep.mubr.msk.bf16.mxu1 %vm464_vm4, %v13294_v45  ;;  %v7882_v45 = vpack.c.bf16 %v7866_v29, %v7865_v17 }
 0x5d5   : > { %11766 = vmatprep.subr.msk.bf16.mxu1 %vm6281_vm3, %v9378_v3 }
 0x5db   : > { %10842 = vmatmul.mubr.msk.bf16.gmra.mrb[36].mxu1 %vm464_vm4, %v13300_v62  ;;  %v8129_v62 = vld [vmem:[#allocation4 + $0x31] sm:$0xff] }
 0x5dc   : > { %10845 = vmatprep.mubr.msk.bf16.mxu1 %vm464_vm4, %v13302_v13  ;;  %v8130_v13 = vld [vmem:[#allocation4 + $0x39] sm:$0xff] }
 0x5e3   : > { %10846 = vmatmul.mubr.msk.bf16.gmra.mrb[40].mxu1 %vm464_vm4, %v13308_v34  ;;  %v8161_v34 = vpack.c.bf16 %v8130_v13, %v8129_v62 }
 0x5e4   : > { %10849 = vmatprep.mubr.msk.bf16.mxu1 %vm464_vm4, %v13310_v47  ;;  %v8131_v47 = vld [vmem:[#allocation4 + $0x49] sm:$0xff] }
 0x5eb   : > { %10850 = vmatmul.mubr.msk.bf16.gmra.mrb[44].mxu1 %vm464_vm4, %v13316_v38  ;;  %v8132_v38 = vld [vmem:[#allocation4 + $0x51] sm:$0xff] }
 0x5ec   : > { %10853 = vmatprep.mubr.msk.bf16.mxu1 %vm464_vm4, %v13318_v1  ;;  %v8133_v1 = vld [vmem:[#allocation4 + $0x61] sm:$0xff] }
 0x5f3   : > { %10854 = vmatmul.mubr.msk.bf16.gmra.mrb[48].mxu1 %vm464_vm4, %v13324_v50  ;;  %v8134_v50 = vld [vmem:[#allocation4 + $0x69] sm:$0xff] }
 0x5f4   : > { %10857 = vmatprep.mubr.msk.bf16.mxu1 %vm464_vm4, %v13326_v37  ;;  %v8162_v37 = vpack.c.bf16 %v8132_v38, %v8131_v47 }
 0x5fb   : > { %10858 = vmatmul.mubr.msk.bf16.gmra.mrb[52].mxu1 %vm464_vm4, %v13332_v16  ;;  %v8522_v16 = vsel %vm6281_vm3, %v9378_v3, 0 }
 0x5fc   : > { %10861 = vmatprep.mubr.msk.bf16.mxu1 %vm464_vm4, %v13334_v33  ;;  %v8163_v33 = vpack.c.bf16 %v8134_v50, %v8133_v1 }
 0x603   : > { %10862 = vmatmul.mubr.msk.bf16.gmra.mrb[56].mxu1 %vm464_vm4, %v13340_v25  ;;  %v8135_v25 = vld [vmem:[#allocation4 + $0x79] sm:$0xff] }
 0x604   : > { %10865 = vmatprep.mubr.msk.bf16.mxu1 %vm464_vm4, %v13446_v28  ;;  %v8164_v43 = vpack.c.bf16 %v8136_v18, %v8135_v25 }
 0x60b   : > { %10866 = vmatmul.mubr.msk.bf16.gmra.mrb[60].mxu1 %vm464_vm4, %v7882_v45 }
 0x60c   : > { %10871 = vmatprep.mubr.msk.bf16.mxu1 %vm464_vm4, %v8161_v34 }
 0x613   : > { %10872 = vmatmul.mubr.msk.bf16.vlgmr.msra.gmra.mrb[32].mxu1 %vm464_vm4, %v8162_v37 }
 0x614   : > { %10904 = vmatpush3.bf16.msra.mxu1 %v8522_v16  ;;  %10875 = vmatprep.mubr.msk.bf16.mxu1 %vm464_vm4, %v8163_v33 }
 0x61b   : > { %10876 = vmatmul.mubr.msk.bf16.gmra.mrb[36].mxu1 %vm464_vm4, %v8164_v43 }
 0x61c   : > { %10879 = vmatprep.mubr.msk.bf16.mxu1 %vm464_vm4, %v8165_v44 }
 0x623   : > { %10880 = vmatmul.mubr.msk.bf16.gmra.mrb[40].mxu1 %vm464_vm4, %v13202_v2  ;;  %v8159_v2 = vld [vmem:[#allocation4 + $0x199] sm:$0xff] }
 0x624   : > { %10883 = vmatprep.mubr.msk.bf16.mxu1 %vm464_vm4, %v13205_v11  ;;  %v8160_v11 = vld [vmem:[#allocation4 + $0x1a1] sm:$0xff] }
 0x62b   : > { %10884 = vmatmul.mubr.msk.bf16.gmra.mrb[44].mxu1 %vm464_vm4, %v13226_v36  ;;  %v8176_v36 = vpack.c.bf16 %v8160_v11, %v8159_v2 }
 0x62c   : > { %10887 = vmatprep.mubr.msk.bf16.mxu1 %vm464_vm4, %v13229_v40  ;;  %v8453_v40 = vld [vmem:[#allocation4 + $0x19a] sm:$0xff] }
 0x633   : > { %10888 = vmatmul.mubr.msk.bf16.gmra.mrb[48].mxu1 %vm464_vm4, %v13250_v26  ;;  %v8454_v26 = vld [vmem:[#allocation4 + $0x1a2] sm:$0xff] }
 0x634   : > { %10891 = vmatprep.mubr.msk.bf16.mxu1 %vm464_vm4, %v13252_v27  ;;  %v8470_v27 = vpack.c.bf16 %v8454_v26, %v8453_v40 }
 0x63b   : > { %10892 = vmatmul.mubr.msk.bf16.gmra.mrb[52].mxu1 %vm464_vm4, %v13262_v24  ;;  %v13625_v24 = vld [vmem:[%s13776_s7] ss:$0 sm:$0xff] }
 0x63c   : > { %10895 = vmatprep.mubr.msk.bf16.mxu1 %vm464_vm4, %v13264_v52 }
 0x643   : > { %10896 = vmatmul.mubr.msk.bf16.gmra.mrb[56].mxu1 %vm464_vm4, %v13270_v53  ;;  %v13630_v53 = vld [vmem:[%s13777_s8] ss:$0 sm:$0xff] }
 0x644   : > { %10899 = vmatprep.mubr.msk.bf16.mxu1 %vm464_vm4, %v13485_v61 }
 0x64b   : > { %10900 = vmatmul.mubr.msk.bf16.gmra.mrb[60].mxu1 %vm464_vm4, %v8176_v36 }
 0x64c   : > { %10905 = vmatprep.mubr.msk.bf16.mxu1 %vm464_vm4, %v13349_v14 }
 0x653   : > { %10906 = vmatmul.mubr.msk.bf16.vlgmr.msra.gmra.mrb[32].mxu1 %vm464_vm4, %v13359_v4 }
 0x654   : > { %10909 = vmatprep.mubr.msk.bf16.mxu1 %vm464_vm4, %v13361_v8 }
 0x65b   : > { %10910 = vmatmul.mubr.msk.bf16.gmra.mrb[36].mxu1 %vm464_vm4, %v13367_v9 }
 0x65c   : > { %10913 = vmatprep.mubr.msk.bf16.mxu1 %vm464_vm4, %v13369_v46 }
 0x663   : > { %10914 = vmatmul.mubr.msk.bf16.gmra.mrb[40].mxu1 %vm464_vm4, %v13375_v54 }
 0x664   : > { %10917 = vmatprep.mubr.msk.bf16.mxu1 %vm464_vm4, %v13377_v12 }
 0x66b   : > { %10918 = vmatmul.mubr.msk.bf16.gmra.mrb[44].mxu1 %vm464_vm4, %v13383_v39 }
 0x66c   : > { %10921 = vmatprep.mubr.msk.bf16.mxu1 %vm464_vm4, %v13385_v0 }
 0x673   : > { %10922 = vmatmul.mubr.msk.bf16.gmra.mrb[48].mxu1 %vm464_vm4, %v13391_v7 }
 0x674   : > { %10925 = vmatprep.mubr.msk.bf16.mxu1 %vm464_vm4, %v13393_v55 }
 0x67b   : > { %10926 = vmatmul.mubr.msk.bf16.gmra.mrb[52].mxu1 %vm464_vm4, %v13399_v35 }
 0x67c   : > { %10929 = vmatprep.mubr.msk.bf16.mxu1 %vm464_vm4, %v13401_v6 }
 0x683   : > { %10930 = vmatmul.mubr.msk.bf16.gmra.mrb[56].mxu1 %vm464_vm4, %v13407_v49 }
 0x684   : > { %10933 = vmatprep.mubr.msk.bf16.mxu1 %vm464_vm4, %v13524_v23 }
 0x68b   : > { %10934 = vmatmul.mubr.msk.bf16.gmra.mrb[60].mxu1 %vm464_vm4, %v8470_v27 }
 0x726   : > { %v10907_v52 = vpop.f32.mrb[32].mxu1 }
 0x727   : > { %v8726_v14 = vmul.f32 %v10907_v52, %v13625_v24  ;;  %v8558_v4 = vpop.f32.mrb[33].mxu1 }
 0x728   : > { %v8724_v8 = vmul.f32 %v13625_v24, %v8558_v4  ;;  %v10908_v9 = vpop.f32.mrb[34].mxu1 }
 0x729   : > { %v8765_v46 = vadd.f32 %v13630_v53, %v8726_v14  ;;  %v8727_v54 = vmul.f32 %v10908_v9, %v13625_v24  ;;  %v8561_v12 = vpop.f32.mrb[35].mxu1 }
 0x72a   : > { %v8763_v39 = vadd.f32 %v13630_v53, %v8724_v8  ;;  %v8725_v0 = vmul.f32 %v13625_v24, %v8561_v12 }
 0x72b   : > { %v8797_v7 = vmax.f32 %v8765_v46, 0.0  ;;  %v8766_v55 = vadd.f32 %v13630_v53, %v8727_v54 }
 0x72c   : > { %v8795_v30 = vmax.f32 %v8763_v39, 0.0  ;;  %v8764_v58 = vadd.f32 %v13630_v53, %v8725_v0 }
 0x72d   : > { %8829 = vst.msk [vmem:[%s13640_s28 + $0x10] sm:$0xff] %vm464_vm4, %v8797_v7  ;;  %v8798_v48 = vmax.f32 %v8766_v55, 0.0 }
 0x72e   : > { %8827 = vst.msk [vmem:[%s13640_s28] sm:$0xff] %vm464_vm4, %v8795_v30  ;;  %v8796_v35 = vmax.f32 %v8764_v58, 0.0  ;;  %v10911_v6 = vpop.f32.mrb[36].mxu1 }
 0x72f   : > { %8830 = vst.msk [vmem:[%s13640_s28 + $0x18] sm:$0xff] %vm464_vm4, %v8798_v48  ;;  %v8730_v22 = vmul.f32 %v10911_v6, %v13625_v24  ;;  %v8574_v31 = vpop.f32.mrb[37].mxu1 }
 0x730   : > { %8828 = vst.msk [vmem:[%s13640_s28 + $0x8] sm:$0xff] %vm464_vm4, %v8796_v35  ;;  %v8728_v49 = vmul.f32 %v13625_v24, %v8574_v31  ;;  %v10912_v19 = vpop.f32.mrb[38].mxu1 }
 0x731   : > { %v8769_v51 = vadd.f32 %v13630_v53, %v8730_v22  ;;  %v8731_v57 = vmul.f32 %v10912_v19, %v13625_v24  ;;  %v8577_v20 = vpop.f32.mrb[39].mxu1 }
 0x732   : > { %v8767_v28 = vadd.f32 %v13630_v53, %v8728_v49  ;;  %v8729_v15 = vmul.f32 %v13625_v24, %v8577_v20 }
 0x733   : > { %v8801_v56 = vmax.f32 %v8769_v51, 0.0  ;;  %v8770_v42 = vadd.f32 %v13630_v53, %v8731_v57 }
 0x734   : > { %v8799_v59 = vmax.f32 %v8767_v28, 0.0  ;;  %v8768_v61 = vadd.f32 %v13630_v53, %v8729_v15 }
 0x735   : > { %8833 = vst.msk [vmem:[%s13640_s28 + $0x30] sm:$0xff] %vm464_vm4, %v8801_v56  ;;  %v8802_v10 = vmax.f32 %v8770_v42, 0.0 }
 0x736   : > { %8831 = vst.msk [vmem:[%s13640_s28 + $0x20] sm:$0xff] %vm464_vm4, %v8799_v59  ;;  %v8800_v21 = vmax.f32 %v8768_v61, 0.0  ;;  %v10915_v32 = vpop.f32.mrb[40].mxu1 }
 0x737   : > { %8834 = vst.msk [vmem:[%s13640_s28 + $0x38] sm:$0xff] %vm464_vm4, %v8802_v10  ;;  %v8734_v60 = vmul.f32 %v10915_v32, %v13625_v24  ;;  %v8590_v23 = vpop.f32.mrb[41].mxu1 }
 0x738   : > { %8832 = vst.msk [vmem:[%s13640_s28 + $0x28] sm:$0xff] %vm464_vm4, %v8800_v21  ;;  %v8732_v41 = vmul.f32 %v13625_v24, %v8590_v23  ;;  %v10916_v3 = vpop.f32.mrb[42].mxu1 }
 0x739   : > { %v8773_v17 = vadd.f32 %v13630_v53, %v8734_v60  ;;  %v8735_v29 = vmul.f32 %v10916_v3, %v13625_v24  ;;  %v8593_v45 = vpop.f32.mrb[43].mxu1 }
 0x73a   : > { %v8771_v62 = vadd.f32 %v13630_v53, %v8732_v41  ;;  %v8733_v13 = vmul.f32 %v13625_v24, %v8593_v45 }
 0x73b   : > { %v8805_v34 = vmax.f32 %v8773_v17, 0.0  ;;  %v8774_v47 = vadd.f32 %v13630_v53, %v8735_v29 }
 0x73c   : > { %v8803_v38 = vmax.f32 %v8771_v62, 0.0  ;;  %v8772_v1 = vadd.f32 %v13630_v53, %v8733_v13 }
 0x73d   : > { %8837 = vst.msk [vmem:[%s13640_s28 + $0x50] sm:$0xff] %vm464_vm4, %v8805_v34  ;;  %v8806_v50 = vmax.f32 %v8774_v47, 0.0 }
 0x73e   : > { %8835 = vst.msk [vmem:[%s13640_s28 + $0x40] sm:$0xff] %vm464_vm4, %v8803_v38  ;;  %v8804_v37 = vmax.f32 %v8772_v1, 0.0  ;;  %v10919_v16 = vpop.f32.mrb[44].mxu1 }
 0x73f   : > { %8838 = vst.msk [vmem:[%s13640_s28 + $0x58] sm:$0xff] %vm464_vm4, %v8806_v50  ;;  %v8738_v33 = vmul.f32 %v10919_v16, %v13625_v24  ;;  %v8606_v25 = vpop.f32.mrb[45].mxu1 }
 0x740   : > { %8836 = vst.msk [vmem:[%s13640_s28 + $0x48] sm:$0xff] %vm464_vm4, %v8804_v37  ;;  %v8736_v18 = vmul.f32 %v13625_v24, %v8606_v25  ;;  %v10920_v5 = vpop.f32.mrb[46].mxu1 }
 0x741   : > { %v8777_v63 = vadd.f32 %v13630_v53, %v8738_v33  ;;  %v8739_v43 = vmul.f32 %v10920_v5, %v13625_v24  ;;  %v8609_v44 = vpop.f32.mrb[47].mxu1 }
 0x742   : > { %v8775_v2 = vadd.f32 %v13630_v53, %v8736_v18  ;;  %v8737_v11 = vmul.f32 %v13625_v24, %v8609_v44 }
 0x743   : > { %v8809_v36 = vmax.f32 %v8777_v63, 0.0  ;;  %v8778_v40 = vadd.f32 %v13630_v53, %v8739_v43 }
 0x744   : > { %v8807_v26 = vmax.f32 %v8775_v2, 0.0  ;;  %v8776_v27 = vadd.f32 %v13630_v53, %v8737_v11 }
 0x745   : > { %8841 = vst.msk [vmem:[%s13640_s28 + $0x70] sm:$0xff] %vm464_vm4, %v8809_v36  ;;  %v8810_v52 = vmax.f32 %v8778_v40, 0.0 }
 0x746   : > { %8839 = vst.msk [vmem:[%s13640_s28 + $0x60] sm:$0xff] %vm464_vm4, %v8807_v26  ;;  %v8808_v14 = vmax.f32 %v8776_v27, 0.0  ;;  %v10923_v4 = vpop.f32.mrb[48].mxu1 }
 0x747   : > { %8842 = vst.msk [vmem:[%s13640_s28 + $0x78] sm:$0xff] %vm464_vm4, %v8810_v52  ;;  %v8742_v8 = vmul.f32 %v10923_v4, %v13625_v24  ;;  %v8622_v9 = vpop.f32.mrb[49].mxu1 }
 0x748   : > { %8840 = vst.msk [vmem:[%s13640_s28 + $0x68] sm:$0xff] %vm464_vm4, %v8808_v14  ;;  %v8740_v46 = vmul.f32 %v13625_v24, %v8622_v9  ;;  %v10924_v54 = vpop.f32.mrb[50].mxu1 }
 0x749   : > { %v8781_v12 = vadd.f32 %v13630_v53, %v8742_v8  ;;  %v8743_v39 = vmul.f32 %v10924_v54, %v13625_v24  ;;  %v8625_v0 = vpop.f32.mrb[51].mxu1 }
 0x74a   : > { %v8779_v7 = vadd.f32 %v13630_v53, %v8740_v46  ;;  %v8741_v55 = vmul.f32 %v13625_v24, %v8625_v0 }
 0x74b   : > { %v8813_v30 = vmax.f32 %v8781_v12, 0.0  ;;  %v8782_v58 = vadd.f32 %v13630_v53, %v8743_v39 }
 0x74c   : > { %v8811_v48 = vmax.f32 %v8779_v7, 0.0  ;;  %v8780_v35 = vadd.f32 %v13630_v53, %v8741_v55 }
 0x74d   : > { %8845 = vst.msk [vmem:[%s13640_s28 + $0x90] sm:$0xff] %vm464_vm4, %v8813_v30  ;;  %v8814_v6 = vmax.f32 %v8782_v58, 0.0 }
 0x74e   : > { %8843 = vst.msk [vmem:[%s13640_s28 + $0x80] sm:$0xff] %vm464_vm4, %v8811_v48  ;;  %v8812_v22 = vmax.f32 %v8780_v35, 0.0  ;;  %v10927_v31 = vpop.f32.mrb[52].mxu1 }
 0x74f   : > { %8846 = vst.msk [vmem:[%s13640_s28 + $0x98] sm:$0xff] %vm464_vm4, %v8814_v6  ;;  %v8746_v49 = vmul.f32 %v10927_v31, %v13625_v24  ;;  %v8638_v19 = vpop.f32.mrb[53].mxu1 }
 0x750   : > { %8844 = vst.msk [vmem:[%s13640_s28 + $0x88] sm:$0xff] %vm464_vm4, %v8812_v22  ;;  %v8744_v51 = vmul.f32 %v13625_v24, %v8638_v19  ;;  %v10928_v57 = vpop.f32.mrb[54].mxu1 }
 0x751   : > { %v8785_v20 = vadd.f32 %v13630_v53, %v8746_v49  ;;  %v8747_v28 = vmul.f32 %v10928_v57, %v13625_v24  ;;  %v8641_v15 = vpop.f32.mrb[55].mxu1 }
 0x752   : > { %v8783_v56 = vadd.f32 %v13630_v53, %v8744_v51  ;;  %v8745_v42 = vmul.f32 %v13625_v24, %v8641_v15 }
 0x753   : > { %v8817_v59 = vmax.f32 %v8785_v20, 0.0  ;;  %v8786_v61 = vadd.f32 %v13630_v53, %v8747_v28 }
 0x754   : > { %v8815_v10 = vmax.f32 %v8783_v56, 0.0  ;;  %v8784_v21 = vadd.f32 %v13630_v53, %v8745_v42 }
 0x755   : > { %8849 = vst.msk [vmem:[%s13640_s28 + $0xb0] sm:$0xff] %vm464_vm4, %v8817_v59  ;;  %v8818_v32 = vmax.f32 %v8786_v61, 0.0 }
 0x756   : > { %8847 = vst.msk [vmem:[%s13640_s28 + $0xa0] sm:$0xff] %vm464_vm4, %v8815_v10  ;;  %v8816_v60 = vmax.f32 %v8784_v21, 0.0  ;;  %v10931_v23 = vpop.f32.mrb[56].mxu1 }
 0x757   : > { %8850 = vst.msk [vmem:[%s13640_s28 + $0xb8] sm:$0xff] %vm464_vm4, %v8818_v32  ;;  %v8750_v41 = vmul.f32 %v10931_v23, %v13625_v24  ;;  %v8654_v3 = vpop.f32.mrb[57].mxu1 }
 0x758   : > { %8848 = vst.msk [vmem:[%s13640_s28 + $0xa8] sm:$0xff] %vm464_vm4, %v8816_v60  ;;  %v8748_v17 = vmul.f32 %v13625_v24, %v8654_v3  ;;  %v10932_v29 = vpop.f32.mrb[58].mxu1 }
 0x759   : > { %v8789_v45 = vadd.f32 %v13630_v53, %v8750_v41  ;;  %v8751_v62 = vmul.f32 %v10932_v29, %v13625_v24  ;;  %v8657_v13 = vpop.f32.mrb[59].mxu1 }
 0x75a   : > { %v8787_v34 = vadd.f32 %v13630_v53, %v8748_v17  ;;  %v8749_v47 = vmul.f32 %v13625_v24, %v8657_v13 }
 0x75b   : > { %v8821_v38 = vmax.f32 %v8789_v45, 0.0  ;;  %v8790_v1 = vadd.f32 %v13630_v53, %v8751_v62 }
 0x75c   : > { %v8819_v50 = vmax.f32 %v8787_v34, 0.0  ;;  %v8788_v37 = vadd.f32 %v13630_v53, %v8749_v47 }
 0x75d   : > { %8853 = vst.msk [vmem:[%s13640_s28 + $0xd0] sm:$0xff] %vm464_vm4, %v8821_v38  ;;  %v8822_v16 = vmax.f32 %v8790_v1, 0.0 }
 0x75e   : > { %8851 = vst.msk [vmem:[%s13640_s28 + $0xc0] sm:$0xff] %vm464_vm4, %v8819_v50  ;;  %v8820_v33 = vmax.f32 %v8788_v37, 0.0  ;;  %v10935_v25 = vpop.f32.mrb[60].mxu1 }
 0x75f   : > { %8854 = vst.msk [vmem:[%s13640_s28 + $0xd8] sm:$0xff] %vm464_vm4, %v8822_v16  ;;  %v8754_v18 = vmul.f32 %v10935_v25, %v13625_v24  ;;  %v8670_v5 = vpop.f32.mrb[61].mxu1 }
 0x760   : > { %8852 = vst.msk [vmem:[%s13640_s28 + $0xc8] sm:$0xff] %vm464_vm4, %v8820_v33  ;;  %v8752_v63 = vmul.f32 %v13625_v24, %v8670_v5  ;;  %v10936_v43 = vpop.f32.mrb[62].mxu1 }
 0x761   : > { %v8793_v44 = vadd.f32 %v13630_v53, %v8754_v18  ;;  %v8755_v2 = vmul.f32 %v10936_v43, %v13625_v24  ;;  %v8673_v11 = vpop.f32.mrb[63].mxu1 }
 0x762   : > { %v8791_v36 = vadd.f32 %v13630_v53, %v8752_v63  ;;  %v8753_v40 = vmul.f32 %v13625_v24, %v8673_v11 }
 0x763   : > { %v8825_v26 = vmax.f32 %v8793_v44, 0.0  ;;  %v8794_v27 = vadd.f32 %v13630_v53, %v8755_v2 }
 0x764   : > { %v8823_v52 = vmax.f32 %v8791_v36, 0.0  ;;  %v8792_v14 = vadd.f32 %v13630_v53, %v8753_v40 }
 0x765   : > { %8857 = vst.msk [vmem:[%s13640_s28 + $0xf0] sm:$0xff] %vm464_vm4, %v8825_v26  ;;  %v8826_v4 = vmax.f32 %v8794_v27, 0.0 }
 0x766   : > { %8855 = vst.msk [vmem:[%s13640_s28 + $0xe0] sm:$0xff] %vm464_vm4, %v8823_v52  ;;  %v8824_v8 = vmax.f32 %v8792_v14, 0.0 }
 0x767   : > { %8858 = vst.msk [vmem:[%s13640_s28 + $0xf8] sm:$0xff] %vm464_vm4, %v8826_v4 }
 0x768   : > { %8856 = vst.msk [vmem:[%s13640_s28 + $0xe8] sm:$0xff] %vm464_vm4, %v8824_v8 }
 0x769 PF: > { %s19_s30 = sadd.s32 1, %s11783_s30  }
 0x76a   : > { %p16_p4 = scmp.ge.s32.totalorder %s19_s30, 4  }
 0x76c   :  { %18 = sbr.rel (!%p16_p4) target bundleno = 1 (0x1), region = 119 }

</bundles_post_ra>
